<compile_context>
chip_gen: v5e
topology: v5e:2x2
jax: 0.10.0
libtpu: 0.0.40
codegen_flags: <defaults>
</compile_context>

<pallas_src>
import jax
import jax.numpy as jnp
from jax.experimental import pallas as pl
from jax.experimental.pallas import tpu as pltpu

INPUT_SIZE = 64
HIDDEN_SIZE = 256
NUM_CLASSES = 40
PADDED_CLASSES = 128  # lane-dense output width (slice back to NUM_CLASSES outside)


def _rnn_kernel(x_ref,      # (T*B, D)  bf16  time-major flattened input
                wih0_ref,   # (D, H)    bf16  W_ih0^T
                whh0_ref,   # (H, H)    bf16  W_hh0^T
                b1_ref,     # (1, H)    f32   b_ih0 + b_hh0
                w2_ref,     # (2H, H)   bf16  [W_ih1^T ; W_hh1^T]
                b2_ref,     # (1, H)    f32   b_ih1 + b_hh1
                wfc_ref,    # (H, Cp)   bf16  fc weight, padded to Cp lanes
                bfc_ref,    # (1, Cp)   f32   fc bias, padded
                out_ref):   # (B, Cp)   f32
    TB, _ = x_ref.shape
    H = whh0_ref.shape[0]
    B = out_ref.shape[0]
    T = TB // B

    # Layer-1 input projection for ALL timesteps in one MXU launch (no serial
    # dependence on the recurrence), layer-1 bias folded in.  bf16 operands,
    # f32 accumulation.
    xproj = (jnp.dot(x_ref[...], wih0_ref[...],
                     preferred_element_type=jnp.float32)
             + b1_ref[...])                                   # (T*B, H) f32

    # Hoist the layer-2 bias broadcast out of the fully-unrolled loop.
    b2b = jnp.broadcast_to(b2_ref[...], (B, H))               # (B, H) f32

    # Hidden-state carries kept in bf16 (MXU/concat operands); one cast per
    # layer per step.
    h1b = jnp.zeros((B, H), jnp.bfloat16)
    h2b = jnp.zeros((B, H), jnp.bfloat16)

    # Fully-unrolled static time loop (T is small).  Weight refs are indexed at
    # the call sites so no huge bf16 weight values stay live across iterations.
    for t in range(T):
        xp_t = xproj[t * B:(t + 1) * B, :]                    # static slice, (B, H)
        # Layer 1: recurrent matmul only (K = H = 256 -> single weight tile on
        # v6e/v7x), then f32 add + tanh.
        h1 = jnp.tanh(xp_t + jnp.dot(h1b, whh0_ref[...],
                                     preferred_element_type=jnp.float32))
        h1b = h1.astype(jnp.bfloat16)                         # reused twice below
        # Layer 2: fused [W_ih1^T ; W_hh1^T] on concat([h1, h2]) (both bf16,
        # lane-aligned at 256).
        in2 = jnp.concatenate([h1b, h2b], axis=-1)            # (B, 2H) bf16
        h2 = jnp.tanh(jnp.dot(in2, w2_ref[...],
                              preferred_element_type=jnp.float32) + b2b)
        h2b = h2.astype(jnp.bfloat16)

    # Classifier head on the last hidden state; lane-dense (B, 128) store.
    out_ref[...] = (
        jnp.dot(h2b, wfc_ref[...], preferred_element_type=jnp.float32)
        + bfc_ref[...]
    ).astype(out_ref.dtype)


def rnn_model_forward(x_btd, params):
    """x_btd: (B, T, D) float32 batch-first (like PyTorch). Returns (B, num_classes)."""
    B, T, D = x_btd.shape
    H = params["whh0"].shape[0]
    Cp = params["wfc"].shape[1]

    # Time-major, flattened, bf16 input: the in-kernel x-projection matmul then
    # needs no reshape/cast, and there is no per-step mid-axis slicing of x.
    x_tm = jnp.transpose(x_btd, (1, 0, 2)).reshape(T * B, D).astype(jnp.bfloat16)

    flops = (2 * (T * B) * D * H            # batched layer-1 input projection
             + T * (2 * B * H * H           # layer-1 recurrent matmul
                    + 2 * B * (2 * H) * H)  # fused layer-2 matmul
             + 2 * B * H * Cp)              # fc head
    transcendentals = 2 * T * B * H
    bytes_accessed = (
        x_tm.size * 2
        + (params["wih0"].size + params["whh0"].size
           + params["w2"].size + params["wfc"].size) * 2      # bf16 weights
        + (params["b1"].size + params["b2"].size + params["bfc"].size) * 4
        + B * Cp * 4)

    vmem = pl.BlockSpec(memory_space=pltpu.MemorySpace.VMEM)
    out = pl.pallas_call(
        _rnn_kernel,
        out_shape=jax.ShapeDtypeStruct((B, Cp), jnp.float32),
        in_specs=[vmem] * 8,
        out_specs=vmem,
        cost_estimate=pl.CostEstimate(
            flops=flops,
            transcendentals=transcendentals,
            bytes_accessed=bytes_accessed),
    )(x_tm,
      params["wih0"], params["whh0"], params["b1"],
      params["w2"], params["b2"],
      params["wfc"], params["bfc"])
    return out[:, :NUM_CLASSES]


def init_params(key, input_size=INPUT_SIZE, hidden_size=HIDDEN_SIZE,
                num_classes=NUM_CLASSES, padded_classes=PADDED_CLASSES):
    """Deterministic init matching PyTorch parameter shapes, packed for the kernel:
    layer-1 weights kept separate (input projection is precomputed), layer-2
    weights fused [Wih^T ; Whh^T], bf16 weights, f32 combined biases, fc padded
    to a lane-dense width."""
    ks = jax.random.split(key, 10)
    bound = 1.0 / jnp.sqrt(hidden_size)
    u = lambda k, shape: jax.random.uniform(k, shape, jnp.float32, -bound, bound)
    # nn.RNN layer 0: weight_ih_l0 (H, D), weight_hh_l0 (H, H), biases (H,)
    wih0 = u(ks[0], (hidden_size, input_size))
    whh0 = u(ks[1], (hidden_size, hidden_size))
    b_ih0 = u(ks[2], (hidden_size,))
    b_hh0 = u(ks[3], (hidden_size,))
    # nn.RNN layer 1: weight_ih_l1 (H, H), weight_hh_l1 (H, H), biases (H,)
    wih1 = u(ks[4], (hidden_size, hidden_size))
    whh1 = u(ks[5], (hidden_size, hidden_size))
    b_ih1 = u(ks[6], (hidden_size,))
    b_hh1 = u(ks[7], (hidden_size,))
    # fc: (C, H) weight, (C,) bias
    wfc = u(ks[8], (num_classes, hidden_size))
    bfc = u(ks[9], (num_classes,))

    pad_c = padded_classes - num_classes
    return {
        "wih0": wih0.T.astype(jnp.bfloat16),                                   # (D, H)
        "whh0": whh0.T.astype(jnp.bfloat16),                                   # (H, H)
        "b1": (b_ih0 + b_hh0)[None, :],                                        # (1, H) f32
        "w2": jnp.concatenate([wih1.T, whh1.T], axis=0).astype(jnp.bfloat16),  # (2H, H)
        "b2": (b_ih1 + b_hh1)[None, :],                                        # (1, H) f32
        "wfc": jnp.pad(wfc.T, ((0, 0), (0, pad_c))).astype(jnp.bfloat16),      # (H, Cp)
        "bfc": jnp.pad(bfc, (0, pad_c))[None, :],                              # (1, Cp) f32
    }


def reference_forward(x_btd, params):
    """Pure-JAX reference (lax.scan) using identical arithmetic (bf16 operands,
    f32 accumulation / bias / tanh, bf16 hidden carries) for a tight check.
    NOTE: this validates the kernel against an identical bf16-weight recipe, not
    against a true f32 PyTorch nn.RNN (bf16 quantization compounds over T steps)."""
    B, T, D = x_btd.shape
    H = params["whh0"].shape[0]
    x_tm = jnp.transpose(x_btd, (1, 0, 2)).astype(jnp.bfloat16)   # (T, B, D)

    def step(carry, x_t):
        h1b, h2b = carry
        p = (jnp.dot(x_t, params["wih0"], preferred_element_type=jnp.float32)
             + params["b1"])
        h1 = jnp.tanh(p + jnp.dot(h1b, params["whh0"],
                                  preferred_element_type=jnp.float32))
        h1b = h1.astype(jnp.bfloat16)
        in2 = jnp.concatenate([h1b, h2b], axis=-1)
        h2 = jnp.tanh(jnp.dot(in2, params["w2"],
                              preferred_element_type=jnp.float32) + params["b2"])
        return (h1b, h2.astype(jnp.bfloat16)), None

    h0 = (jnp.zeros((B, H), jnp.bfloat16), jnp.zeros((B, H), jnp.bfloat16))
    (_, h2b), _ = jax.lax.scan(step, h0, x_tm)
    logits = (jnp.dot(h2b, params["wfc"], preferred_element_type=jnp.float32)
              + params["bfc"])
    return logits[:, :NUM_CLASSES]


if __name__ == "__main__":
    key = jax.random.PRNGKey(0)
    k_x, k_p = jax.random.split(key)

    B, T = 2, 8
    x = jax.random.normal(k_x, (B, T, INPUT_SIZE), jnp.float32)
    params = init_params(k_p)

    out = jax.block_until_ready(rnn_model_forward(x, params))
    ref = jax.block_until_ready(reference_forward(x, params))

    assert out.shape == (B, NUM_CLASSES)
    assert jnp.allclose(out, ref, atol=1e-3, rtol=1e-3), "mismatch vs reference"

    print("KERNEL_OK")
</pallas_src>

<mosaic_0001>
module attributes {stable_mosaic.version = 11 : i64} {
  func.func @_rnn_kernel(%arg0: memref<16x64xbf16, #tpu.memory_space<vmem>>, %arg1: memref<64x256xbf16, #tpu.memory_space<vmem>>, %arg2: memref<256x256xbf16, #tpu.memory_space<vmem>>, %arg3: memref<1x256xf32, #tpu.memory_space<vmem>>, %arg4: memref<512x256xbf16, #tpu.memory_space<vmem>>, %arg5: memref<1x256xf32, #tpu.memory_space<vmem>>, %arg6: memref<256x128xbf16, #tpu.memory_space<vmem>>, %arg7: memref<1x128xf32, #tpu.memory_space<vmem>>, %arg8: memref<2x128xf32, #tpu.memory_space<vmem>>) attributes {dimension_semantics = [], scalar_prefetch = 0 : i64, scratch_operands = 0 : i64, tpu.core_type = #tpu.core_type<tc>} {
    %c0 = arith.constant 0 : index
    %c0_0 = arith.constant 0 : index
    %0 = vector.load %arg0[%c0, %c0_0] : memref<16x64xbf16, #tpu.memory_space<vmem>>, vector<16x64xbf16>
    %c0_1 = arith.constant 0 : index
    %c0_2 = arith.constant 0 : index
    %1 = vector.load %arg1[%c0_1, %c0_2] : memref<64x256xbf16, #tpu.memory_space<vmem>>, vector<64x256xbf16>
    %cst = arith.constant dense<0.000000e+00> : vector<16x256xf32>
    %2 = tpu.matmul %0, %1, %cst {dimension_numbers = #tpu.dot_dimension_numbers<[1], [0], [0], [1], [0, 0, 1, 1], [], []>} : vector<16x64xbf16>, vector<64x256xbf16>, vector<16x256xf32> -> vector<16x256xf32>
    %c0_3 = arith.constant 0 : index
    %c0_4 = arith.constant 0 : index
    %3 = vector.load %arg3[%c0_3, %c0_4] : memref<1x256xf32, #tpu.memory_space<vmem>>, vector<1x256xf32>
    %4 = vector.broadcast %3 : vector<1x256xf32> to vector<16x256xf32>
    %5 = arith.addf %2, %4 : vector<16x256xf32>
    %c0_5 = arith.constant 0 : index
    %c0_6 = arith.constant 0 : index
    %6 = vector.load %arg5[%c0_5, %c0_6] : memref<1x256xf32, #tpu.memory_space<vmem>>, vector<1x256xf32>
    %7 = vector.shape_cast %6 : vector<1x256xf32> to vector<1x256xf32>
    %8 = vector.broadcast %7 : vector<1x256xf32> to vector<2x256xf32>
    %cst_7 = arith.constant 0.000000e+00 : bf16
    %9 = vector.broadcast %cst_7 : bf16 to vector<2x256xbf16>
    %cst_8 = arith.constant 0.000000e+00 : bf16
    %10 = vector.broadcast %cst_8 : bf16 to vector<2x256xbf16>
    %11 = vector.extract_strided_slice %5 {offsets = [0, 0], sizes = [2, 256], strides = [1, 1]} : vector<16x256xf32> to vector<2x256xf32>
    %c0_9 = arith.constant 0 : index
    %c0_10 = arith.constant 0 : index
    %12 = vector.load %arg2[%c0_9, %c0_10] : memref<256x256xbf16, #tpu.memory_space<vmem>>, vector<256x256xbf16>
    %cst_11 = arith.constant dense<0.000000e+00> : vector<2x256xf32>
    %13 = tpu.matmul %9, %12, %cst_11 {dimension_numbers = #tpu.dot_dimension_numbers<[1], [0], [0], [1], [0, 0, 1, 1], [], []>} : vector<2x256xbf16>, vector<256x256xbf16>, vector<2x256xf32> -> vector<2x256xf32>
    %14 = arith.addf %11, %13 : vector<2x256xf32>
    %15 = math.tanh %14 : vector<2x256xf32>
    %16 = arith.truncf %15 : vector<2x256xf32> to vector<2x256xbf16>
    %17 = tpu.concatenate %16, %10 in 1 : vector<2x256xbf16>, vector<2x256xbf16> -> vector<2x512xbf16>
    %c0_12 = arith.constant 0 : index
    %c0_13 = arith.constant 0 : index
    %18 = vector.load %arg4[%c0_12, %c0_13] : memref<512x256xbf16, #tpu.memory_space<vmem>>, vector<512x256xbf16>
    %cst_14 = arith.constant dense<0.000000e+00> : vector<2x256xf32>
    %19 = tpu.matmul %17, %18, %cst_14 {dimension_numbers = #tpu.dot_dimension_numbers<[1], [0], [0], [1], [0, 0, 1, 1], [], []>} : vector<2x512xbf16>, vector<512x256xbf16>, vector<2x256xf32> -> vector<2x256xf32>
    %20 = arith.addf %19, %8 : vector<2x256xf32>
    %21 = math.tanh %20 : vector<2x256xf32>
    %22 = arith.truncf %21 : vector<2x256xf32> to vector<2x256xbf16>
    %23 = vector.extract_strided_slice %5 {offsets = [2, 0], sizes = [2, 256], strides = [1, 1]} : vector<16x256xf32> to vector<2x256xf32>
    %c0_15 = arith.constant 0 : index
    %c0_16 = arith.constant 0 : index
    %24 = vector.load %arg2[%c0_15, %c0_16] : memref<256x256xbf16, #tpu.memory_space<vmem>>, vector<256x256xbf16>
    %cst_17 = arith.constant dense<0.000000e+00> : vector<2x256xf32>
    %25 = tpu.matmul %16, %24, %cst_17 {dimension_numbers = #tpu.dot_dimension_numbers<[1], [0], [0], [1], [0, 0, 1, 1], [], []>} : vector<2x256xbf16>, vector<256x256xbf16>, vector<2x256xf32> -> vector<2x256xf32>
    %26 = arith.addf %23, %25 : vector<2x256xf32>
    %27 = math.tanh %26 : vector<2x256xf32>
    %28 = arith.truncf %27 : vector<2x256xf32> to vector<2x256xbf16>
    %29 = tpu.concatenate %28, %22 in 1 : vector<2x256xbf16>, vector<2x256xbf16> -> vector<2x512xbf16>
    %c0_18 = arith.constant 0 : index
    %c0_19 = arith.constant 0 : index
    %30 = vector.load %arg4[%c0_18, %c0_19] : memref<512x256xbf16, #tpu.memory_space<vmem>>, vector<512x256xbf16>
    %cst_20 = arith.constant dense<0.000000e+00> : vector<2x256xf32>
    %31 = tpu.matmul %29, %30, %cst_20 {dimension_numbers = #tpu.dot_dimension_numbers<[1], [0], [0], [1], [0, 0, 1, 1], [], []>} : vector<2x512xbf16>, vector<512x256xbf16>, vector<2x256xf32> -> vector<2x256xf32>
    %32 = arith.addf %31, %8 : vector<2x256xf32>
    %33 = math.tanh %32 : vector<2x256xf32>
    %34 = arith.truncf %33 : vector<2x256xf32> to vector<2x256xbf16>
    %35 = vector.extract_strided_slice %5 {offsets = [4, 0], sizes = [2, 256], strides = [1, 1]} : vector<16x256xf32> to vector<2x256xf32>
    %c0_21 = arith.constant 0 : index
    %c0_22 = arith.constant 0 : index
    %36 = vector.load %arg2[%c0_21, %c0_22] : memref<256x256xbf16, #tpu.memory_space<vmem>>, vector<256x256xbf16>
    %cst_23 = arith.constant dense<0.000000e+00> : vector<2x256xf32>
    %37 = tpu.matmul %28, %36, %cst_23 {dimension_numbers = #tpu.dot_dimension_numbers<[1], [0], [0], [1], [0, 0, 1, 1], [], []>} : vector<2x256xbf16>, vector<256x256xbf16>, vector<2x256xf32> -> vector<2x256xf32>
    %38 = arith.addf %35, %37 : vector<2x256xf32>
    %39 = math.tanh %38 : vector<2x256xf32>
    %40 = arith.truncf %39 : vector<2x256xf32> to vector<2x256xbf16>
    %41 = tpu.concatenate %40, %34 in 1 : vector<2x256xbf16>, vector<2x256xbf16> -> vector<2x512xbf16>
    %c0_24 = arith.constant 0 : index
    %c0_25 = arith.constant 0 : index
    %42 = vector.load %arg4[%c0_24, %c0_25] : memref<512x256xbf16, #tpu.memory_space<vmem>>, vector<512x256xbf16>
    %cst_26 = arith.constant dense<0.000000e+00> : vector<2x256xf32>
    %43 = tpu.matmul %41, %42, %cst_26 {dimension_numbers = #tpu.dot_dimension_numbers<[1], [0], [0], [1], [0, 0, 1, 1], [], []>} : vector<2x512xbf16>, vector<512x256xbf16>, vector<2x256xf32> -> vector<2x256xf32>
    %44 = arith.addf %43, %8 : vector<2x256xf32>
    %45 = math.tanh %44 : vector<2x256xf32>
    %46 = arith.truncf %45 : vector<2x256xf32> to vector<2x256xbf16>
    %47 = vector.extract_strided_slice %5 {offsets = [6, 0], sizes = [2, 256], strides = [1, 1]} : vector<16x256xf32> to vector<2x256xf32>
    %c0_27 = arith.constant 0 : index
    %c0_28 = arith.constant 0 : index
    %48 = vector.load %arg2[%c0_27, %c0_28] : memref<256x256xbf16, #tpu.memory_space<vmem>>, vector<256x256xbf16>
    %cst_29 = arith.constant dense<0.000000e+00> : vector<2x256xf32>
    %49 = tpu.matmul %40, %48, %cst_29 {dimension_numbers = #tpu.dot_dimension_numbers<[1], [0], [0], [1], [0, 0, 1, 1], [], []>} : vector<2x256xbf16>, vector<256x256xbf16>, vector<2x256xf32> -> vector<2x256xf32>
    %50 = arith.addf %47, %49 : vector<2x256xf32>
    %51 = math.tanh %50 : vector<2x256xf32>
    %52 = arith.truncf %51 : vector<2x256xf32> to vector<2x256xbf16>
    %53 = tpu.concatenate %52, %46 in 1 : vector<2x256xbf16>, vector<2x256xbf16> -> vector<2x512xbf16>
    %c0_30 = arith.constant 0 : index
    %c0_31 = arith.constant 0 : index
    %54 = vector.load %arg4[%c0_30, %c0_31] : memref<512x256xbf16, #tpu.memory_space<vmem>>, vector<512x256xbf16>
    %cst_32 = arith.constant dense<0.000000e+00> : vector<2x256xf32>
    %55 = tpu.matmul %53, %54, %cst_32 {dimension_numbers = #tpu.dot_dimension_numbers<[1], [0], [0], [1], [0, 0, 1, 1], [], []>} : vector<2x512xbf16>, vector<512x256xbf16>, vector<2x256xf32> -> vector<2x256xf32>
    %56 = arith.addf %55, %8 : vector<2x256xf32>
    %57 = math.tanh %56 : vector<2x256xf32>
    %58 = arith.truncf %57 : vector<2x256xf32> to vector<2x256xbf16>
    %59 = vector.extract_strided_slice %5 {offsets = [8, 0], sizes = [2, 256], strides = [1, 1]} : vector<16x256xf32> to vector<2x256xf32>
    %c0_33 = arith.constant 0 : index
    %c0_34 = arith.constant 0 : index
    %60 = vector.load %arg2[%c0_33, %c0_34] : memref<256x256xbf16, #tpu.memory_space<vmem>>, vector<256x256xbf16>
    %cst_35 = arith.constant dense<0.000000e+00> : vector<2x256xf32>
    %61 = tpu.matmul %52, %60, %cst_35 {dimension_numbers = #tpu.dot_dimension_numbers<[1], [0], [0], [1], [0, 0, 1, 1], [], []>} : vector<2x256xbf16>, vector<256x256xbf16>, vector<2x256xf32> -> vector<2x256xf32>
    %62 = arith.addf %59, %61 : vector<2x256xf32>
    %63 = math.tanh %62 : vector<2x256xf32>
    %64 = arith.truncf %63 : vector<2x256xf32> to vector<2x256xbf16>
    %65 = tpu.concatenate %64, %58 in 1 : vector<2x256xbf16>, vector<2x256xbf16> -> vector<2x512xbf16>
    %c0_36 = arith.constant 0 : index
    %c0_37 = arith.constant 0 : index
    %66 = vector.load %arg4[%c0_36, %c0_37] : memref<512x256xbf16, #tpu.memory_space<vmem>>, vector<512x256xbf16>
    %cst_38 = arith.constant dense<0.000000e+00> : vector<2x256xf32>
    %67 = tpu.matmul %65, %66, %cst_38 {dimension_numbers = #tpu.dot_dimension_numbers<[1], [0], [0], [1], [0, 0, 1, 1], [], []>} : vector<2x512xbf16>, vector<512x256xbf16>, vector<2x256xf32> -> vector<2x256xf32>
    %68 = arith.addf %67, %8 : vector<2x256xf32>
    %69 = math.tanh %68 : vector<2x256xf32>
    %70 = arith.truncf %69 : vector<2x256xf32> to vector<2x256xbf16>
    %71 = vector.extract_strided_slice %5 {offsets = [10, 0], sizes = [2, 256], strides = [1, 1]} : vector<16x256xf32> to vector<2x256xf32>
    %c0_39 = arith.constant 0 : index
    %c0_40 = arith.constant 0 : index
    %72 = vector.load %arg2[%c0_39, %c0_40] : memref<256x256xbf16, #tpu.memory_space<vmem>>, vector<256x256xbf16>
    %cst_41 = arith.constant dense<0.000000e+00> : vector<2x256xf32>
    %73 = tpu.matmul %64, %72, %cst_41 {dimension_numbers = #tpu.dot_dimension_numbers<[1], [0], [0], [1], [0, 0, 1, 1], [], []>} : vector<2x256xbf16>, vector<256x256xbf16>, vector<2x256xf32> -> vector<2x256xf32>
    %74 = arith.addf %71, %73 : vector<2x256xf32>
    %75 = math.tanh %74 : vector<2x256xf32>
    %76 = arith.truncf %75 : vector<2x256xf32> to vector<2x256xbf16>
    %77 = tpu.concatenate %76, %70 in 1 : vector<2x256xbf16>, vector<2x256xbf16> -> vector<2x512xbf16>
    %c0_42 = arith.constant 0 : index
    %c0_43 = arith.constant 0 : index
    %78 = vector.load %arg4[%c0_42, %c0_43] : memref<512x256xbf16, #tpu.memory_space<vmem>>, vector<512x256xbf16>
    %cst_44 = arith.constant dense<0.000000e+00> : vector<2x256xf32>
    %79 = tpu.matmul %77, %78, %cst_44 {dimension_numbers = #tpu.dot_dimension_numbers<[1], [0], [0], [1], [0, 0, 1, 1], [], []>} : vector<2x512xbf16>, vector<512x256xbf16>, vector<2x256xf32> -> vector<2x256xf32>
    %80 = arith.addf %79, %8 : vector<2x256xf32>
    %81 = math.tanh %80 : vector<2x256xf32>
    %82 = arith.truncf %81 : vector<2x256xf32> to vector<2x256xbf16>
    %83 = vector.extract_strided_slice %5 {offsets = [12, 0], sizes = [2, 256], strides = [1, 1]} : vector<16x256xf32> to vector<2x256xf32>
    %c0_45 = arith.constant 0 : index
    %c0_46 = arith.constant 0 : index
    %84 = vector.load %arg2[%c0_45, %c0_46] : memref<256x256xbf16, #tpu.memory_space<vmem>>, vector<256x256xbf16>
    %cst_47 = arith.constant dense<0.000000e+00> : vector<2x256xf32>
    %85 = tpu.matmul %76, %84, %cst_47 {dimension_numbers = #tpu.dot_dimension_numbers<[1], [0], [0], [1], [0, 0, 1, 1], [], []>} : vector<2x256xbf16>, vector<256x256xbf16>, vector<2x256xf32> -> vector<2x256xf32>
    %86 = arith.addf %83, %85 : vector<2x256xf32>
    %87 = math.tanh %86 : vector<2x256xf32>
    %88 = arith.truncf %87 : vector<2x256xf32> to vector<2x256xbf16>
    %89 = tpu.concatenate %88, %82 in 1 : vector<2x256xbf16>, vector<2x256xbf16> -> vector<2x512xbf16>
    %c0_48 = arith.constant 0 : index
    %c0_49 = arith.constant 0 : index
    %90 = vector.load %arg4[%c0_48, %c0_49] : memref<512x256xbf16, #tpu.memory_space<vmem>>, vector<512x256xbf16>
    %cst_50 = arith.constant dense<0.000000e+00> : vector<2x256xf32>
    %91 = tpu.matmul %89, %90, %cst_50 {dimension_numbers = #tpu.dot_dimension_numbers<[1], [0], [0], [1], [0, 0, 1, 1], [], []>} : vector<2x512xbf16>, vector<512x256xbf16>, vector<2x256xf32> -> vector<2x256xf32>
    %92 = arith.addf %91, %8 : vector<2x256xf32>
    %93 = math.tanh %92 : vector<2x256xf32>
    %94 = arith.truncf %93 : vector<2x256xf32> to vector<2x256xbf16>
    %95 = vector.extract_strided_slice %5 {offsets = [14, 0], sizes = [2, 256], strides = [1, 1]} : vector<16x256xf32> to vector<2x256xf32>
    %c0_51 = arith.constant 0 : index
    %c0_52 = arith.constant 0 : index
    %96 = vector.load %arg2[%c0_51, %c0_52] : memref<256x256xbf16, #tpu.memory_space<vmem>>, vector<256x256xbf16>
    %cst_53 = arith.constant dense<0.000000e+00> : vector<2x256xf32>
    %97 = tpu.matmul %88, %96, %cst_53 {dimension_numbers = #tpu.dot_dimension_numbers<[1], [0], [0], [1], [0, 0, 1, 1], [], []>} : vector<2x256xbf16>, vector<256x256xbf16>, vector<2x256xf32> -> vector<2x256xf32>
    %98 = arith.addf %95, %97 : vector<2x256xf32>
    %99 = math.tanh %98 : vector<2x256xf32>
    %100 = arith.truncf %99 : vector<2x256xf32> to vector<2x256xbf16>
    %101 = tpu.concatenate %100, %94 in 1 : vector<2x256xbf16>, vector<2x256xbf16> -> vector<2x512xbf16>
    %c0_54 = arith.constant 0 : index
    %c0_55 = arith.constant 0 : index
    %102 = vector.load %arg4[%c0_54, %c0_55] : memref<512x256xbf16, #tpu.memory_space<vmem>>, vector<512x256xbf16>
    %cst_56 = arith.constant dense<0.000000e+00> : vector<2x256xf32>
    %103 = tpu.matmul %101, %102, %cst_56 {dimension_numbers = #tpu.dot_dimension_numbers<[1], [0], [0], [1], [0, 0, 1, 1], [], []>} : vector<2x512xbf16>, vector<512x256xbf16>, vector<2x256xf32> -> vector<2x256xf32>
    %104 = arith.addf %103, %8 : vector<2x256xf32>
    %105 = math.tanh %104 : vector<2x256xf32>
    %106 = arith.truncf %105 : vector<2x256xf32> to vector<2x256xbf16>
    %c0_57 = arith.constant 0 : index
    %c0_58 = arith.constant 0 : index
    %107 = vector.load %arg6[%c0_57, %c0_58] : memref<256x128xbf16, #tpu.memory_space<vmem>>, vector<256x128xbf16>
    %cst_59 = arith.constant dense<0.000000e+00> : vector<2x128xf32>
    %108 = tpu.matmul %106, %107, %cst_59 {dimension_numbers = #tpu.dot_dimension_numbers<[1], [0], [0], [1], [0, 0, 1, 1], [], []>} : vector<2x256xbf16>, vector<256x128xbf16>, vector<2x128xf32> -> vector<2x128xf32>
    %c0_60 = arith.constant 0 : index
    %c0_61 = arith.constant 0 : index
    %109 = vector.load %arg7[%c0_60, %c0_61] : memref<1x128xf32, #tpu.memory_space<vmem>>, vector<1x128xf32>
    %110 = vector.broadcast %109 : vector<1x128xf32> to vector<2x128xf32>
    %111 = arith.addf %108, %110 : vector<2x128xf32>
    %c0_62 = arith.constant 0 : index
    %c0_63 = arith.constant 0 : index
    %112 = vector.load %arg8[%c0_62, %c0_63] : memref<2x128xf32, #tpu.memory_space<vmem>>, vector<2x128xf32>
    tpu.vector_store %arg8[%c0_62, %c0_63], %111 {strides = array<i32>} : memref<2x128xf32, #tpu.memory_space<vmem>>, vector<2x128xf32>,
    return
  }
}

</mosaic_0001>

<bundles_post_ra>
// kernel: tpu_custom_call.1
= control target key start
LH: loop header
LB: loop body
LE: loop exit
PB: predicated region body
PF: predicated region fallthrough
CT: control target
= control target key end

     0   :  { %13 = vsyncpa [#allocation3], 0  ;;  %s4408_s0 = inlined_call_operand.hbm [shape: bf16[16,64], index: 0, kind: input, shape index: {}]   ;;  %s4409_s1 = inlined_call_operand.hbm [shape: bf16[64,256], index: 1, kind: input, shape index: {}]   ;;  %s4410_s2 = inlined_call_operand.hbm [shape: bf16[256,256], index: 2, kind: input, shape index: {}]   ;;  %s4411_s3 = inlined_call_operand.vmem [shape: f32[1,256], index: 3, kind: input, shape index: {}]   ;;  %s4412_s4 = inlined_call_operand.hbm [shape: bf16[512,256], index: 4, kind: input, shape index: {}]   ;;  %s4413_s5 = inlined_call_operand.vmem [shape: f32[1,256], index: 5, kind: input, shape index: {}]   ;;  %s4414_s6 = inlined_call_operand.hbm [shape: bf16[256,128], index: 6, kind: input, shape index: {}]   ;;  %s4415_s7 = inlined_call_operand.vmem [shape: f32[1,128], index: 7, kind: input, shape index: {}]   ;;  %s4416_s8 = inlined_call_operand.hbm [shape: f32[2,128], index: 8, kind: output, shape index: {}]  }
   0x1   :  { %14 = vsyncpa [#allocation6], 0 }
   0x2   :  { %15 = vsyncpa [#allocation9], 0  ;;  %s34_s29 = sshll.u32 %s4409_s1, 4  ;;  %s35_s29 = int_to_ptr.hbm [resolvable:$true] %s34_s29 }
   0x3   :  { %16 = vsyncpa [#allocation4], 0  ;;  %s3287_s30 = smov [#allocation5]   ;;  %s62_s12 = sshll.u32 %s4412_s4, 4  ;;  %s63_s12 = int_to_ptr.hbm [resolvable:$true] %s62_s12 }
   0x4   :  { %s36_s9 = sshll.u32 %s3287_s30, 4  ;;  %s3288_s13 = smov 128   ;;  %s37_s9 = int_to_ptr.vmem [resolvable:$true] %s36_s9 }
   0x5   :  { %s3289_s14 = smov 8   ;;  %s3290_s15 = smov [#allocation8]  }
   0x6   :  { %42 = dma.hbm_to_vmem [thread:$0]  %s35_s29, 1024, %s37_s9, [#allocation6], %s3288_s13, %s3288_s13, %s3289_s14  }
   0x7   :  { %s64_s16 = sshll.u32 %s3290_s15, 4  ;;  %s21_s19 = sshll.u32 %s4408_s0, 4  ;;  %s65_s16 = int_to_ptr.vmem [resolvable:$true] %s64_s16  ;;  %s22_s19 = int_to_ptr.hbm [resolvable:$true] %s21_s19 }
   0x8   :  { %70 = dma.hbm_to_vmem [thread:$0]  %s63_s12, 8192, %s65_s16, [#allocation9], %s3288_s13, %s3288_s13, %s3289_s14  }
   0x9   :  { %s3291_s1 = smov [#allocation2]   ;;  %s47_s4 = sshll.u32 %s4410_s2, 4  ;;  %s48_s4 = int_to_ptr.hbm [resolvable:$true] %s47_s4 }
   0xa   :  { %s23_s20 = sshll.u32 %s3291_s1, 4  ;;  %s3292_s23 = smov 64   ;;  %s24_s20 = int_to_ptr.vmem [resolvable:$true] %s23_s20 }
   0xb   :  { %s3293_s24 = smov 4   ;;  %s3294_s25 = smov [#allocation7]  }
   0xc   :  { %29 = dma.hbm_to_vmem [thread:$0]  %s22_s19, 128, %s24_s20, [#allocation3], %s3292_s23, %s3292_s23, %s3293_s24  }
   0xd   :  { %s49_s26 = sshll.u32 %s3294_s25, 4  ;;  %s77_s0 = sshll.u32 %s4414_s6, 4  ;;  %s50_s26 = int_to_ptr.vmem [resolvable:$true] %s49_s26  ;;  %s78_s0 = int_to_ptr.hbm [resolvable:$true] %s77_s0 }
   0xe   :  { %55 = dma.hbm_to_vmem [thread:$0]  %s48_s4, 4096, %s50_s26, [#allocation6], %s3288_s13, %s3288_s13, %s3289_s14  }
   0xf   :  { %s3295_s29 = smov [#allocation10]  }
  0x10   :  { %s79_s30 = sshll.u32 %s3295_s29, 4  ;;  %s80_s30 = int_to_ptr.vmem [resolvable:$true] %s79_s30 }
  0x11   :  { %85 = dma.hbm_to_vmem [thread:$0]  %s78_s0, 2048, %s80_s30, [#allocation9], %s3292_s23, %s3292_s23, %s3293_s24  }
  0x12   :  { %3279 = dma.done.wait [#allocation3], 128  }
  0x13   :  { %3280 = vsyncadd [#allocation3], 4294967168 }
  0x14   :  { %3281 = dma.done.wait [#allocation6], 5120  }
  0x15   :  { %3282 = vsyncadd [#allocation6], 4294962176 }
  0x16   :  { %3283 = dma.done.wait [#allocation9], 10240  }
  0x17   :  { %3284 = vsyncadd [#allocation9], 4294957056  ;;  %v2482_v0 = vld [vmem:[#allocation5 + $0x30] sm:$0xf]  ;;  %v2946_v1 = vld [vmem:[#allocation5 + $0x34] sm:$0xf0] }
  0x18   :  { %v2945_v2 = vld [vmem:[#allocation5 + $0x34] sm:$0xf]  ;;  %v2483_v3 = vor.u32 %v2946_v1, %v2482_v0  ;;  %v2484_v4 = vld [vmem:[#allocation5 + $0x38] sm:$0xf0]  ;;  %v2548_v5 = vld [vmem:[#allocation7 + $0x70] sm:$0xf] }
  0x19   :  { %v2962_v6 = vld [vmem:[#allocation7 + $0x74] sm:$0xf0]  ;;  %v2487_v7 = vor.u32 %v2945_v2, %v2484_v4  ;;  %v2612_v9 = vld [vmem:[#allocation7 + $0xf0] sm:$0xf]  ;;  %v2474_v11 = vld [vmem:[#allocation5 + $0x20] sm:$0xf] }
  0x1a   :  { %v3358_v8 = vor.u32 %v2962_v6, %v2548_v5  ;;  %v2978_v10 = vld [vmem:[#allocation7 + $0xf4] sm:$0xf0]  ;;  %178 = vmatpush.bf16.msra.mxu0 %v2483_v3  ;;  %v2944_v13 = vld [vmem:[#allocation5 + $0x24] sm:$0xf0]  ;;  %v2943_v14 = vld [vmem:[#allocation5 + $0x24] sm:$0xf] }
  0x1b   :  { %v3360_v12 = vor.u32 %v2978_v10, %v2612_v9  ;;  %v2476_v15 = vld [vmem:[#allocation5 + $0x28] sm:$0xf0]  ;;  %192 = vmatpush.bf16.msra.mxu1 %v2487_v7  ;;  %v2475_v16 = vor.u32 %v2944_v13, %v2474_v11  ;;  %v2540_v18 = vld [vmem:[#allocation7 + $0x60] sm:$0xf]  ;;  %v2960_v19 = vld [vmem:[#allocation7 + $0x64] sm:$0xf0] }
  0x1c   :  { %400 = vmatpush.bf16.msra.mxu2 %v3358_v8  ;;  %v2479_v17 = vor.u32 %v2943_v14, %v2476_v15  ;;  %v2604_v20 = vld [vmem:[#allocation7 + $0xe0] sm:$0xf]  ;;  %v3364_v21 = vor.u32 %v2960_v19, %v2540_v18  ;;  %v2976_v22 = vld [vmem:[#allocation7 + $0xe4] sm:$0xf0]  ;;  %v2466_v23 = vld [vmem:[#allocation5 + $0x10] sm:$0xf] }
  0x1d   :  { %413 = vmatpush.bf16.msra.mxu3 %v3360_v12  ;;  %v2942_v24 = vld [vmem:[#allocation5 + $0x14] sm:$0xf0]  ;;  %v3366_v25 = vor.u32 %v2976_v22, %v2604_v20  ;;  %v2941_v26 = vld [vmem:[#allocation5 + $0x14] sm:$0xf]  ;;  %v2468_v27 = vld [vmem:[#allocation5 + $0x18] sm:$0xf0] }
  0x1e   :  { %v2532_v28 = vld [vmem:[#allocation7 + $0x50] sm:$0xf]  ;;  %179 = vmatpush.bf16.msra.mxu0 %v2475_v16  ;;  %v2467_v29 = vor.u32 %v2942_v24, %v2466_v23  ;;  %v2958_v30 = vld [vmem:[#allocation7 + $0x54] sm:$0xf0]  ;;  %v2471_v33 = vor.u32 %v2941_v26, %v2468_v27  ;;  %v2458_v35 = vld [vmem:[#allocation5] sm:$0xf] }
  0x1f   :  { %v2596_v31 = vld [vmem:[#allocation7 + $0xd0] sm:$0xf]  ;;  %v2974_v32 = vld [vmem:[#allocation7 + $0xd4] sm:$0xf0]  ;;  %193 = vmatpush.bf16.msra.mxu1 %v2479_v17  ;;  %v3369_v34 = vor.u32 %v2958_v30, %v2532_v28  ;;  %v2940_v36 = vld [vmem:[#allocation5 + $0x4] sm:$0xf0] }
  0x20   :  { %401 = vmatpush.bf16.msra.mxu2 %v3364_v21  ;;  %v2939_v37 = vld [vmem:[#allocation5 + $0x4] sm:$0xf]  ;;  %v3372_v38 = vor.u32 %v2974_v32, %v2596_v31  ;;  %v2460_v39 = vld [vmem:[#allocation5 + $0x8] sm:$0xf0]  ;;  %v2524_v40 = vld [vmem:[#allocation7 + $0x40] sm:$0xf]  ;;  %v2459_v45 = vor.u32 %v2940_v36, %v2458_v35 }
  0x21   :  { %414 = vmatpush.bf16.msra.mxu3 %v3366_v25  ;;  %v2956_v41 = vld [vmem:[#allocation7 + $0x44] sm:$0xf0]  ;;  %v2588_v42 = vld [vmem:[#allocation7 + $0xc0] sm:$0xf]  ;;  %v2961_v44 = vld [vmem:[#allocation7 + $0x74] sm:$0xf]  ;;  %v2463_v49 = vor.u32 %v2939_v37, %v2460_v39 }
  0x22   :  { %v2972_v43 = vld [vmem:[#allocation7 + $0xc4] sm:$0xf0]  ;;  %180 = vmatpush.bf16.msra.mxu0 %v2467_v29  ;;  %v2550_v46 = vld [vmem:[#allocation7 + $0x78] sm:$0xf0]  ;;  %v2977_v47 = vld [vmem:[#allocation7 + $0xf4] sm:$0xf]  ;;  %v3375_v50 = vor.u32 %v2956_v41, %v2524_v40 }
  0x23   :  { %v2614_v48 = vld [vmem:[#allocation7 + $0xf8] sm:$0xf0]  ;;  %194 = vmatpush.bf16.msra.mxu1 %v2471_v33  ;;  %v2516_v51 = vld [vmem:[#allocation7 + $0x30] sm:$0xf]  ;;  %v3378_v52 = vor.u32 %v2972_v43, %v2588_v42  ;;  %v3380_v53 = vor.u32 %v2961_v44, %v2550_v46  ;;  %v2954_v54 = vld [vmem:[#allocation7 + $0x34] sm:$0xf0] }
  0x24   :  { %402 = vmatpush.bf16.msra.mxu2 %v3369_v34  ;;  %v2580_v55 = vld [vmem:[#allocation7 + $0xb0] sm:$0xf]  ;;  %v2970_v56 = vld [vmem:[#allocation7 + $0xb4] sm:$0xf0]  ;;  %v3382_v57 = vor.u32 %v2977_v47, %v2614_v48  ;;  %v2959_v58 = vld [vmem:[#allocation7 + $0x64] sm:$0xf]  ;;  %v3385_v63 = vor.u32 %v2954_v54, %v2516_v51 }
  0x25   :  { %415 = vmatpush.bf16.msra.mxu3 %v3372_v38  ;;  %v2542_v59 = vld [vmem:[#allocation7 + $0x68] sm:$0xf0]  ;;  %v2938_v60 = vld [vmem:[#allocation2] sm:$0xff]  ;;  %v2975_v61 = vld [vmem:[#allocation7 + $0xe4] sm:$0xf]  ;;  %vm170_vm0 = vcmask 523264   ;;  %v3389_v0 = vor.u32 %v2970_v56, %v2580_v55 }
  0x26   :  { %4608 = vst [vmem:[#allocation16_spill] sm:$0xff] %v3382_v57  ;;  %181 = vmatpush.bf16.msra.mxu0 %v2459_v45  ;;  %v2606_v62 = vld [vmem:[#allocation7 + $0xe8] sm:$0xf0]  ;;  %v3391_v1 = vor.u32 %v2959_v58, %v2542_v59  ;;  %v2508_v2 = vld [vmem:[#allocation7 + $0x20] sm:$0xf]  ;;  %v4417_v56 = vmov 0  }
  0x27   :  { %195 = vmatpush.bf16.msra.mxu1 %v2463_v49  ;;  %4609 = vst [vmem:[#allocation17_spill] sm:$0xff] %v3385_v63  ;;  %v2952_v3 = vld [vmem:[#allocation7 + $0x24] sm:$0xf0]  ;;  %v2572_v4 = vld [vmem:[#allocation7 + $0xa0] sm:$0xf]  ;;  %v3394_v5 = vor.u32 %v2975_v61, %v2606_v62  ;;  %s3297_s11 = smov [#allocation11]  }
  0x28   :  { %403 = vmatpush.bf16.msra.mxu2 %v3375_v50  ;;  %4610 = vst [vmem:[#allocation18_spill] sm:$0xff] %v3389_v0  ;;  %v2968_v6 = vld [vmem:[#allocation7 + $0xa4] sm:$0xf0]  ;;  %v2957_v7 = vld [vmem:[#allocation7 + $0x54] sm:$0xf]  ;;  %v3399_v13 = vor.u32 %v2952_v3, %v2508_v2  ;;  %s2438_s12 = sshll.u32 %s3297_s11, 4  ;;  %s2439_s12 = int_to_ptr.vmem [resolvable:$true] %s2438_s12 }
  0x29   :  { %416 = vmatpush.bf16.msra.mxu3 %v3378_v52  ;;  %4611 = vst [vmem:[#allocation19_spill] sm:$0xff] %v3391_v1  ;;  %2488 = vmatmul.msk.bf16.vlgmr.msra.gmra.mxu0 %vm170_vm0, %v2938_v60  ;;  %v2534_v9 = vld [vmem:[#allocation7 + $0x58] sm:$0xf0]  ;;  %v2973_v10 = vld [vmem:[#allocation7 + $0xd4] sm:$0xf]  ;;  %v3403_v14 = vor.u32 %v2968_v6, %v2572_v4  ;;  %s2440_s15 = sshll.u32 %s4416_s8, 4  ;;  %s2441_s15 = int_to_ptr.hbm [resolvable:$true] %s2440_s15 }
  0x2a   :  { %426 = vmatpush.bf16.msrb.mxu0 %v3380_v53  ;;  %4612 = vst [vmem:[#allocation20_spill] sm:$0xff] %v3394_v5  ;;  %2489 = vmatmul.msk.bf16.vlgmr.msra.gmra.mxu1 %vm170_vm0, %v2938_v60  ;;  %v2598_v11 = vld [vmem:[#allocation7 + $0xd8] sm:$0xf0]  ;;  %v3405_v15 = vor.u32 %v2957_v7, %v2534_v9  ;;  %v2500_v16 = vld [vmem:[#allocation7 + $0x10] sm:$0xf] }
  0x2b   :  { %439 = vmatpush.bf16.msrb.mxu1 %v3382_v57  ;;  %4613 = vst [vmem:[#allocation21_spill] sm:$0xff] %v3399_v13  ;;  %v2950_v17 = vld [vmem:[#allocation7 + $0x14] sm:$0xf0]  ;;  %v2564_v18 = vld [vmem:[#allocation7 + $0x90] sm:$0xf]  ;;  %v3408_v19 = vor.u32 %v2973_v10, %v2598_v11 }
  0x2c   :  { %404 = vmatpush.bf16.msra.mxu2 %v3385_v63  ;;  %4614 = vst [vmem:[#allocation22_spill] sm:$0xff] %v3403_v14  ;;  %v2966_v20 = vld [vmem:[#allocation7 + $0x94] sm:$0xf0]  ;;  %v2955_v22 = vld [vmem:[#allocation7 + $0x44] sm:$0xf]  ;;  %v3411_v27 = vor.u32 %v2950_v17, %v2500_v16 }
  0x2d   :  { %417 = vmatpush.bf16.msra.mxu3 %v3389_v0  ;;  %4615 = vst [vmem:[#allocation23_spill] sm:$0xff] %v3405_v15  ;;  %v2526_v23 = vld [vmem:[#allocation7 + $0x48] sm:$0xf0]  ;;  %v2971_v24 = vld [vmem:[#allocation7 + $0xc4] sm:$0xf]  ;;  %v3415_v28 = vor.u32 %v2966_v20, %v2564_v18 }
  0x2e   :  { %427 = vmatpush.bf16.msrb.mxu0 %v3391_v1  ;;  %4616 = vst [vmem:[#allocation24_spill] sm:$0xff] %v3408_v19  ;;  %v2590_v26 = vld [vmem:[#allocation7 + $0xc8] sm:$0xf0]  ;;  %v3417_v29 = vor.u32 %v2955_v22, %v2526_v23  ;;  %v2492_v30 = vld [vmem:[#allocation7] sm:$0xf] }
  0x2f   :  { %440 = vmatpush.bf16.msrb.mxu1 %v3394_v5  ;;  %4617 = vst [vmem:[#allocation25_spill] sm:$0xff] %v3411_v27  ;;  %v2948_v31 = vld [vmem:[#allocation7 + $0x4] sm:$0xf0]  ;;  %v2556_v32 = vld [vmem:[#allocation7 + $0x80] sm:$0xf]  ;;  %v3420_v33 = vor.u32 %v2971_v24, %v2590_v26 }
  0x30   :  { %405 = vmatpush.bf16.msra.mxu2 %v3399_v13  ;;  %4618 = vst [vmem:[#allocation26_spill] sm:$0xff] %v3415_v28  ;;  %v2964_v35 = vld [vmem:[#allocation7 + $0x84] sm:$0xf0]  ;;  %v2953_v36 = vld [vmem:[#allocation7 + $0x34] sm:$0xf]  ;;  %v3423_v41 = vor.u32 %v2948_v31, %v2492_v30 }
  0x31   :  { %418 = vmatpush.bf16.msra.mxu3 %v3403_v14  ;;  %4619 = vst [vmem:[#allocation27_spill] sm:$0xff] %v3417_v29  ;;  %v2518_v37 = vld [vmem:[#allocation7 + $0x38] sm:$0xf0]  ;;  %v2969_v39 = vld [vmem:[#allocation7 + $0xb4] sm:$0xf]  ;;  %v3427_v42 = vor.u32 %v2964_v35, %v2556_v32 }
  0x32   :  { %428 = vmatpush.bf16.msrb.mxu0 %v3405_v15  ;;  %4620 = vst [vmem:[#allocation28_spill] sm:$0xff] %v3420_v33  ;;  %v2582_v40 = vld [vmem:[#allocation7 + $0xb8] sm:$0xf0]  ;;  %v3429_v43 = vor.u32 %v2953_v36, %v2518_v37  ;;  %v2951_v45 = vld [vmem:[#allocation7 + $0x24] sm:$0xf] }
  0x33   :  { %441 = vmatpush.bf16.msrb.mxu1 %v3408_v19  ;;  %4621 = vst [vmem:[#allocation29_spill] sm:$0xff] %v3423_v41  ;;  %v3432_v44 = vor.u32 %v2969_v39, %v2582_v40  ;;  %v2510_v46 = vld [vmem:[#allocation7 + $0x28] sm:$0xf0]  ;;  %v2967_v47 = vld [vmem:[#allocation7 + $0xa4] sm:$0xf] }
  0x34   :  { %406 = vmatpush.bf16.msra.mxu2 %v3411_v27  ;;  %4622 = vst [vmem:[#allocation30_spill] sm:$0xff] %v3427_v42  ;;  %v2574_v48 = vld [vmem:[#allocation7 + $0xa8] sm:$0xf0]  ;;  %v3437_v49 = vor.u32 %v2951_v45, %v2510_v46  ;;  %v2949_v54 = vld [vmem:[#allocation7 + $0x14] sm:$0xf] }
  0x35   :  { %419 = vmatpush.bf16.msra.mxu3 %v3415_v28  ;;  %4623 = vst [vmem:[#allocation31_spill] sm:$0xff] %v3429_v43  ;;  %v3440_v51 = vor.u32 %v2967_v47, %v2574_v48  ;;  %v2502_v55 = vld [vmem:[#allocation7 + $0x18] sm:$0xf0]  ;;  %v2965_v58 = vld [vmem:[#allocation7 + $0x94] sm:$0xf] }
  0x36   :  { %429 = vmatpush.bf16.msrb.mxu0 %v3417_v29  ;;  %4624 = vst [vmem:[#allocation32_spill] sm:$0xff] %v3432_v44  ;;  %v2566_v59 = vld [vmem:[#allocation7 + $0x98] sm:$0xf0]  ;;  %v3445_v60 = vor.u32 %v2949_v54, %v2502_v55  ;;  %v2947_v62 = vld [vmem:[#allocation7 + $0x4] sm:$0xf] }
  0x37   :  { %442 = vmatpush.bf16.msrb.mxu1 %v3420_v33  ;;  %4625 = vst [vmem:[#allocation33_spill] sm:$0xff] %v3437_v49  ;;  %v3448_v61 = vor.u32 %v2965_v58, %v2566_v59  ;;  %v2494_v2 = vld [vmem:[#allocation7 + $0x8] sm:$0xf0]  ;;  %v2963_v3 = vld [vmem:[#allocation7 + $0x84] sm:$0xf] }
  0x38   :  { %407 = vmatpush.bf16.msra.mxu2 %v3423_v41  ;;  %4626 = vst [vmem:[#allocation34_spill] sm:$0xff] %v3440_v51  ;;  %v2558_v4 = vld [vmem:[#allocation7 + $0x88] sm:$0xf0]  ;;  %v2804_v6 = vld [vmem:[#allocation8 + $0x170] sm:$0xf]  ;;  %v3451_v11 = vor.u32 %v2947_v62, %v2494_v2 }
  0x39   :  { %420 = vmatpush.bf16.msra.mxu3 %v3427_v42  ;;  %v3026_v7 = vld [vmem:[#allocation8 + $0x174] sm:$0xf0]  ;;  %v2868_v9 = vld [vmem:[#allocation8 + $0x1f0] sm:$0xf]  ;;  %v3454_v16 = vor.u32 %v2963_v3, %v2558_v4  ;;  %v2796_v20 = vld [vmem:[#allocation8 + $0x160] sm:$0xf] }
  0x3a   :  { %430 = vmatpush.bf16.msrb.mxu0 %v3429_v43  ;;  %v3042_v10 = vld [vmem:[#allocation8 + $0x1f4] sm:$0xf0]  ;;  %v3456_v17 = vor.u32 %v3026_v7, %v2804_v6  ;;  %v3024_v22 = vld [vmem:[#allocation8 + $0x164] sm:$0xf0]  ;;  %v2860_v23 = vld [vmem:[#allocation8 + $0x1e0] sm:$0xf] }
  0x3b   :  { %443 = vmatpush.bf16.msrb.mxu1 %v3432_v44  ;;  %408 = vmatmul.bf16.vlgmr.msra.gmra.mxu2 %v4417_v56  ;;  %4627 = vst [vmem:[#allocation35_spill] sm:$0xff] %v3454_v16  ;;  %v3458_v18 = vor.u32 %v3042_v10, %v2868_v9  ;;  %v3040_v24 = vld [vmem:[#allocation8 + $0x1e4] sm:$0xf0]  ;;  %v2676_v26 = vld [vmem:[#allocation8 + $0x70] sm:$0xf]  ;;  %v3465_v36 = vor.u32 %v3024_v22, %v2796_v20 }
  0x3c   :  { %421 = vmatmul.bf16.vlgmr.msra.gmra.mxu3 %v4417_v56  ;;  %4628 = vst [vmem:[#allocation36_spill] sm:$0xff] %v3456_v17  ;;  %v2994_v30 = vld [vmem:[#allocation8 + $0x74] sm:$0xf0]  ;;  %v2740_v32 = vld [vmem:[#allocation8 + $0xf0] sm:$0xf]  ;;  %v3470_v40 = vor.u32 %v3040_v24, %v2860_v23 }
  0x3d   :  { %4629 = vst [vmem:[#allocation37_spill] sm:$0xff] %v3458_v18  ;;  %v3461_v31 = vor.u32 %v2994_v30, %v2676_v26  ;;  %v3010_v35 = vld [vmem:[#allocation8 + $0xf4] sm:$0xf0]  ;;  %v2788_v37 = vld [vmem:[#allocation8 + $0x150] sm:$0xf] }
  0x3e   :  { %431 = vmatpush.bf16.msrb.mxu0 %v3437_v49  ;;  %4631 = vst [vmem:[#allocation39_spill] sm:$0xff] %v3465_v36  ;;  %v3467_v39 = vor.u32 %v3010_v35, %v2740_v32  ;;  %v3022_v45 = vld [vmem:[#allocation8 + $0x154] sm:$0xf0]  ;;  %v2852_v46 = vld [vmem:[#allocation8 + $0x1d0] sm:$0xf] }
  0x3f   :  { %444 = vmatpush.bf16.msrb.mxu1 %v3440_v51  ;;  %4630 = vst [vmem:[#allocation38_spill] sm:$0xff] %v3461_v31  ;;  %v3038_v47 = vld [vmem:[#allocation8 + $0x1d4] sm:$0xf0]  ;;  %848 = vmatpush.bf16.msrb.mxu2 %v3461_v31  ;;  %v2668_v48 = vld [vmem:[#allocation8 + $0x60] sm:$0xf]  ;;  %v3479_v62 = vor.u32 %v3022_v45, %v2788_v37 }
  0x40   :  { %4632 = vst [vmem:[#allocation40_spill] sm:$0xff] %v3467_v39  ;;  %861 = vmatpush.bf16.msrb.mxu3 %v3467_v39  ;;  %v2992_v54 = vld [vmem:[#allocation8 + $0x64] sm:$0xf0]  ;;  %v2732_v55 = vld [vmem:[#allocation8 + $0xe0] sm:$0xf]  ;;  %v3484_v4 = vor.u32 %v3038_v47, %v2852_v46 }
  0x41   :  { %4633 = vst [vmem:[#allocation41_spill] sm:$0xff] %v3470_v40  ;;  %v3476_v58 = vor.u32 %v2992_v54, %v2668_v48  ;;  %v3008_v59 = vld [vmem:[#allocation8 + $0xe4] sm:$0xf0]  ;;  %v2780_v2 = vld [vmem:[#allocation8 + $0x140] sm:$0xf] }
  0x42   :  { %432 = vmatpush.bf16.msrb.mxu0 %v3445_v60  ;;  %4635 = vst [vmem:[#allocation43_spill] sm:$0xff] %v3479_v62  ;;  %v3481_v3 = vor.u32 %v3008_v59, %v2732_v55  ;;  %v3020_v6 = vld [vmem:[#allocation8 + $0x144] sm:$0xf0]  ;;  %v2844_v7 = vld [vmem:[#allocation8 + $0x1c0] sm:$0xf] }
  0x43   :  { %445 = vmatpush.bf16.msrb.mxu1 %v3448_v61  ;;  %4634 = vst [vmem:[#allocation42_spill] sm:$0xff] %v3476_v58  ;;  %v3036_v9 = vld [vmem:[#allocation8 + $0x1c4] sm:$0xf0]  ;;  %849 = vmatpush.bf16.msrb.mxu2 %v3476_v58  ;;  %v2660_v10 = vld [vmem:[#allocation8 + $0x50] sm:$0xf]  ;;  %v3491_v26 = vor.u32 %v3020_v6, %v2780_v2 }
  0x44   :  { %4636 = vst [vmem:[#allocation44_spill] sm:$0xff] %v3481_v3  ;;  %862 = vmatpush.bf16.msrb.mxu3 %v3481_v3  ;;  %v2990_v20 = vld [vmem:[#allocation8 + $0x54] sm:$0xf0]  ;;  %v2724_v22 = vld [vmem:[#allocation8 + $0xd0] sm:$0xf]  ;;  %v3496_v35 = vor.u32 %v3036_v9, %v2844_v7 }
  0x45   :  { %4637 = vst [vmem:[#allocation45_spill] sm:$0xff] %v3484_v4  ;;  %v3488_v23 = vor.u32 %v2990_v20, %v2660_v10  ;;  %v3006_v24 = vld [vmem:[#allocation8 + $0xd4] sm:$0xf0]  ;;  %v2772_v30 = vld [vmem:[#allocation8 + $0x130] sm:$0xf] }
  0x46   :  { %433 = vmatpush.bf16.msrb.mxu0 %v3451_v11  ;;  %4639 = vst [vmem:[#allocation47_spill] sm:$0xff] %v3491_v26  ;;  %v3493_v32 = vor.u32 %v3006_v24, %v2724_v22  ;;  %v3018_v37 = vld [vmem:[#allocation8 + $0x134] sm:$0xf0]  ;;  %v2836_v45 = vld [vmem:[#allocation8 + $0x1b0] sm:$0xf] }
  0x47   :  { %446 = vmatpush.bf16.msrb.mxu1 %v3454_v16  ;;  %4638 = vst [vmem:[#allocation46_spill] sm:$0xff] %v3488_v23  ;;  %v3034_v46 = vld [vmem:[#allocation8 + $0x1b4] sm:$0xf0]  ;;  %850 = vmatpush.bf16.msrb.mxu2 %v3488_v23  ;;  %v2652_v47 = vld [vmem:[#allocation8 + $0x40] sm:$0xf]  ;;  %v3503_v2 = vor.u32 %v3018_v37, %v2772_v30 }
  0x48   :  { %4640 = vst [vmem:[#allocation48_spill] sm:$0xff] %v3493_v32  ;;  %863 = vmatpush.bf16.msrb.mxu3 %v3493_v32  ;;  %v2988_v48 = vld [vmem:[#allocation8 + $0x44] sm:$0xf0]  ;;  %v2716_v54 = vld [vmem:[#allocation8 + $0xc0] sm:$0xf]  ;;  %v3508_v7 = vor.u32 %v3034_v46, %v2836_v45 }
  0x49   :  { %434 = vmatmul.bf16.vlgmr.msrb.gmra.mxu0 %v4417_v56  ;;  %4641 = vst [vmem:[#allocation49_spill] sm:$0xff] %v3496_v35  ;;  %v3500_v55 = vor.u32 %v2988_v48, %v2652_v47  ;;  %v3004_v59 = vld [vmem:[#allocation8 + $0xc4] sm:$0xf0]  ;;  %v2764_v9 = vld [vmem:[#allocation8 + $0x120] sm:$0xf] }
  0x4a   :  { %874 = vmatpush.bf16.msra.mxu0 %v3456_v17  ;;  %447 = vmatmul.bf16.vlgmr.msrb.gmra.mxu1 %v4417_v56  ;;  %4643 = vst [vmem:[#allocation51_spill] sm:$0xff] %v3503_v2  ;;  %v3505_v6 = vor.u32 %v3004_v59, %v2716_v54  ;;  %v3016_v10 = vld [vmem:[#allocation8 + $0x124] sm:$0xf0]  ;;  %v2828_v20 = vld [vmem:[#allocation8 + $0x1a0] sm:$0xf] }
  0x4b   :  { %887 = vmatpush.bf16.msra.mxu1 %v3458_v18  ;;  %4642 = vst [vmem:[#allocation50_spill] sm:$0xff] %v3500_v55  ;;  %851 = vmatpush.bf16.msrb.mxu2 %v3500_v55  ;;  %v3032_v22 = vld [vmem:[#allocation8 + $0x1a4] sm:$0xf0]  ;;  %v3513_v24 = vor.u32 %v3016_v10, %v2764_v9  ;;  %v2756_v37 = vld [vmem:[#allocation8 + $0x110] sm:$0xf] }
  0x4c   :  { %4644 = vst [vmem:[#allocation52_spill] sm:$0xff] %v3505_v6  ;;  %864 = vmatpush.bf16.msrb.mxu3 %v3505_v6  ;;  %v3516_v30 = vor.u32 %v3032_v22, %v2828_v20  ;;  %v3014_v47 = vld [vmem:[#allocation8 + $0x114] sm:$0xf0]  ;;  %v2820_v45 = vld [vmem:[#allocation8 + $0x190] sm:$0xf] }
  0x4d   :  { %4645 = vst [vmem:[#allocation53_spill] sm:$0xff] %v3508_v7  ;;  %v3030_v46 = vld [vmem:[#allocation8 + $0x194] sm:$0xf0]  ;;  %v3519_v48 = vor.u32 %v3014_v47, %v2756_v37  ;;  %v2748_v59 = vld [vmem:[#allocation8 + $0x100] sm:$0xf] }
  0x4e   :  { %875 = vmatpush.bf16.msra.mxu0 %v3465_v36  ;;  %4646 = vst [vmem:[#allocation54_spill] sm:$0xff] %v3513_v24  ;;  %v3522_v54 = vor.u32 %v3030_v46, %v2820_v45  ;;  %v3012_v56 = vld [vmem:[#allocation8 + $0x104] sm:$0xf0]  ;;  %v2812_v9 = vld [vmem:[#allocation8 + $0x180] sm:$0xf] }
  0x4f   :  { %888 = vmatpush.bf16.msra.mxu1 %v3470_v40  ;;  %4647 = vst [vmem:[#allocation55_spill] sm:$0xff] %v3516_v30  ;;  %v3028_v10 = vld [vmem:[#allocation8 + $0x184] sm:$0xf0]  ;;  %v3025_v6 = vld [vmem:[#allocation8 + $0x174] sm:$0xf]  ;;  %v3525_v32 = vor.u32 %v3012_v56, %v2748_v59 }
  0x50   :  { %4648 = vst [vmem:[#allocation56_spill] sm:$0xff] %v3519_v48  ;;  %v2806_v55 = vld [vmem:[#allocation8 + $0x178] sm:$0xf0]  ;;  %v3041_v20 = vld [vmem:[#allocation8 + $0x1f4] sm:$0xf]  ;;  %v3528_v37 = vor.u32 %v3028_v10, %v2812_v9 }
  0x51   :  { %4649 = vst [vmem:[#allocation57_spill] sm:$0xff] %v3522_v54  ;;  %v2870_v22 = vld [vmem:[#allocation8 + $0x1f8] sm:$0xf0]  ;;  %v3530_v47 = vor.u32 %v3025_v6, %v2806_v55  ;;  %v3023_v46 = vld [vmem:[#allocation8 + $0x164] sm:$0xf] }
  0x52   :  { %876 = vmatpush.bf16.msra.mxu0 %v3479_v62  ;;  %4650 = vst [vmem:[#allocation58_spill] sm:$0xff] %v3525_v32  ;;  %v3532_v45 = vor.u32 %v3041_v20, %v2870_v22  ;;  %v2798_v23 = vld [vmem:[#allocation8 + $0x168] sm:$0xf0]  ;;  %v3039_v3 = vld [vmem:[#allocation8 + $0x1e4] sm:$0xf]  ;;  %v4656_v20 = vmov 0  }
  0x53   :  { %889 = vmatpush.bf16.msra.mxu1 %v3484_v4  ;;  %4651 = vst [vmem:[#allocation59_spill] sm:$0xff] %v3528_v37  ;;  %v2862_v58 = vld [vmem:[#allocation8 + $0x1e8] sm:$0xf0]  ;;  %v3537_v56 = vor.u32 %v3023_v46, %v2798_v23  ;;  %v3021_v55 = vld [vmem:[#allocation8 + $0x154] sm:$0xf] }
  0x54   :  { %4652 = vst [vmem:[#allocation60_spill] sm:$0xff] %v3530_v47  ;;  %v3540_v59 = vor.u32 %v3039_v3, %v2862_v58  ;;  %v2790_v6 = vld [vmem:[#allocation8 + $0x158] sm:$0xf0]  ;;  %v3037_v9 = vld [vmem:[#allocation8 + $0x1d4] sm:$0xf] }
  0x55   :  { %4653 = vst [vmem:[#allocation61_spill] sm:$0xff] %v3532_v45  ;;  %v2854_v10 = vld [vmem:[#allocation8 + $0x1d8] sm:$0xf0]  ;;  %v3545_v22 = vor.u32 %v3021_v55, %v2790_v6  ;;  %v3019_v46 = vld [vmem:[#allocation8 + $0x144] sm:$0xf] }
  0x56   :  { %877 = vmatpush.bf16.msra.mxu0 %v3491_v26  ;;  %4654 = vst [vmem:[#allocation62_spill] sm:$0xff] %v3537_v56  ;;  %v3548_v23 = vor.u32 %v3037_v9, %v2854_v10  ;;  %v2782_v39 = vld [vmem:[#allocation8 + $0x148] sm:$0xf0]  ;;  %v3035_v58 = vld [vmem:[#allocation8 + $0x1c4] sm:$0xf] }
  0x57   :  { %890 = vmatpush.bf16.msra.mxu1 %v3496_v35  ;;  %4655 = vst [vmem:[#allocation63_spill] sm:$0xff] %v3540_v59  ;;  %v2846_v3 = vld [vmem:[#allocation8 + $0x1c8] sm:$0xf0]  ;;  %v3551_v31 = vor.u32 %v3019_v46, %v2782_v39  ;;  %v3017_v41 = vld [vmem:[#allocation8 + $0x134] sm:$0xf] }
  0x58   :  { %4657 = vst [vmem:[#allocation64_spill] sm:$0xff] %v3545_v22  ;;  %v3554_v42 = vor.u32 %v3035_v58, %v2846_v3  ;;  %v2774_v28 = vld [vmem:[#allocation8 + $0x138] sm:$0xf0]  ;;  %v3033_v55 = vld [vmem:[#allocation8 + $0x1b4] sm:$0xf] }
  0x59   :  { %4658 = vst [vmem:[#allocation65_spill] sm:$0xff] %v3548_v23  ;;  %v2838_v6 = vld [vmem:[#allocation8 + $0x1b8] sm:$0xf0]  ;;  %v3557_v9 = vor.u32 %v3017_v41, %v2774_v28  ;;  %v2644_v39 = vld [vmem:[#allocation8 + $0x30] sm:$0xf] }
  0x5a   :  { %878 = vmatpush.bf16.msra.mxu0 %v3503_v2  ;;  %4659 = vst [vmem:[#allocation66_spill] sm:$0xff] %v3551_v31  ;;  %v3560_v10 = vor.u32 %v3033_v55, %v2838_v6  ;;  %v2986_v46 = vld [vmem:[#allocation8 + $0x34] sm:$0xf0]  ;;  %v2708_v58 = vld [vmem:[#allocation8 + $0xb0] sm:$0xf] }
  0x5b   :  { %891 = vmatpush.bf16.msra.mxu1 %v3508_v7  ;;  %4660 = vst [vmem:[#allocation67_spill] sm:$0xff] %v3554_v42  ;;  %v3564_v3 = vor.u32 %v2986_v46, %v2644_v39  ;;  %v3002_v27 = vld [vmem:[#allocation8 + $0xb4] sm:$0xf0]  ;;  %v3015_v14 = vld [vmem:[#allocation8 + $0x124] sm:$0xf] }
  0x5c   :  { %4661 = vst [vmem:[#allocation68_spill] sm:$0xff] %v3557_v9  ;;  %v2766_v13 = vld [vmem:[#allocation8 + $0x128] sm:$0xf0]  ;;  %v3566_v0 = vor.u32 %v3002_v27, %v2708_v58  ;;  %v3031_v41 = vld [vmem:[#allocation8 + $0x1a4] sm:$0xf] }
  0x5d   :  { %4662 = vst [vmem:[#allocation69_spill] sm:$0xff] %v3560_v10  ;;  %v3568_v28 = vor.u32 %v3015_v14, %v2766_v13  ;;  %v2830_v63 = vld [vmem:[#allocation8 + $0x1a8] sm:$0xf0]  ;;  %v2636_v55 = vld [vmem:[#allocation8 + $0x20] sm:$0xf]  ;;  %852 = vmatpush.bf16.msrb.mxu2 %v3564_v3 }
  0x5e   :  { %879 = vmatpush.bf16.msra.mxu0 %v3513_v24  ;;  %4663 = vst [vmem:[#allocation70_spill] sm:$0xff] %v3564_v3  ;;  %v3571_v6 = vor.u32 %v3031_v41, %v2830_v63  ;;  %865 = vmatpush.bf16.msrb.mxu3 %v3566_v0  ;;  %v3013_v13 = vld [vmem:[#allocation8 + $0x114] sm:$0xf]  ;;  %v2758_v14 = vld [vmem:[#allocation8 + $0x118] sm:$0xf0] }
  0x5f   :  { %892 = vmatpush.bf16.msra.mxu1 %v3516_v30  ;;  %4664 = vst [vmem:[#allocation71_spill] sm:$0xff] %v3566_v0  ;;  %v3029_v46 = vld [vmem:[#allocation8 + $0x194] sm:$0xf]  ;;  %v3580_v58 = vor.u32 %v3013_v13, %v2758_v14  ;;  %v2822_v63 = vld [vmem:[#allocation8 + $0x198] sm:$0xf0] }
  0x60   :  { %4665 = vst [vmem:[#allocation72_spill] sm:$0xff] %v3568_v28  ;;  %v3582_v41 = vor.u32 %v3029_v46, %v2822_v63  ;;  %v2998_v0 = vld [vmem:[#allocation8 + $0x94] sm:$0xf0]  ;;  %v3011_v3 = vld [vmem:[#allocation8 + $0x104] sm:$0xf] }
  0x61   :  { %4666 = vst [vmem:[#allocation73_spill] sm:$0xff] %v3571_v6  ;;  %v2750_v13 = vld [vmem:[#allocation8 + $0x108] sm:$0xf0]  ;;  %v3027_v63 = vld [vmem:[#allocation8 + $0x184] sm:$0xf] }
  0x62   :  { %880 = vmatpush.bf16.msra.mxu0 %v3519_v48  ;;  %4669 = vst [vmem:[#allocation76_spill] sm:$0xff] %v3580_v58  ;;  %v3592_v46 = vor.u32 %v3011_v3, %v2750_v13  ;;  %v2993_v3 = vld [vmem:[#allocation8 + $0x74] sm:$0xf]  ;;  %v2742_v13 = vld [vmem:[#allocation8 + $0xf8] sm:$0xf0] }
  0x63   :  { %893 = vmatpush.bf16.msra.mxu1 %v3522_v54  ;;  %4670 = vst [vmem:[#allocation77_spill] sm:$0xff] %v3582_v41 }
  0x64   :  { %4673 = vst [vmem:[#allocation80_spill] sm:$0xff] %v3592_v46 }
  0x66   :  { %881 = vmatpush.bf16.msra.mxu0 %v3525_v32 }
  0x67   :  { %894 = vmatpush.bf16.msra.mxu1 %v3528_v37 }
  0x69   :  { %882 = vmatmul.bf16.vlgmr.msra.gmra.mxu0 %v4656_v20 }
  0x6a   :  { %926 = vmatpush.bf16.msrb.mxu0 %v3530_v47  ;;  %895 = vmatmul.bf16.vlgmr.msra.gmra.mxu1 %v4656_v20 }
  0x6b   :  { %939 = vmatpush.bf16.msrb.mxu1 %v3532_v45 }
  0x6e   :  { %927 = vmatpush.bf16.msrb.mxu0 %v3537_v56 }
  0x6f   :  { %940 = vmatpush.bf16.msrb.mxu1 %v3540_v59 }
  0x72   :  { %928 = vmatpush.bf16.msrb.mxu0 %v3545_v22 }
  0x73   :  { %941 = vmatpush.bf16.msrb.mxu1 %v3548_v23 }
  0x76   :  { %929 = vmatpush.bf16.msrb.mxu0 %v3551_v31  ;;  %v2996_v31 = vld [vmem:[#allocation8 + $0x84] sm:$0xf0] }
  0x77   :  { %942 = vmatpush.bf16.msrb.mxu1 %v3554_v42  ;;  %v3000_v42 = vld [vmem:[#allocation8 + $0xa4] sm:$0xf0] }
  0x7a   :  { %930 = vmatpush.bf16.msrb.mxu0 %v3557_v9  ;;  %v2700_v9 = vld [vmem:[#allocation8 + $0xa0] sm:$0xf] }
  0x7b   :  { %943 = vmatpush.bf16.msrb.mxu1 %v3560_v10  ;;  %v2984_v10 = vld [vmem:[#allocation8 + $0x24] sm:$0xf0]  ;;  %v3577_v27 = vor.u32 %v3000_v42, %v2700_v9  ;;  %v2692_v42 = vld [vmem:[#allocation8 + $0x90] sm:$0xf] }
  0x7c   :  { %v3575_v39 = vor.u32 %v2984_v10, %v2636_v55  ;;  %v2628_v10 = vld [vmem:[#allocation8 + $0x10] sm:$0xf]  ;;  %v2982_v55 = vld [vmem:[#allocation8 + $0x14] sm:$0xf0]  ;;  %v3590_v14 = vor.u32 %v2998_v0, %v2692_v42  ;;  %v3009_v42 = vld [vmem:[#allocation8 + $0xf4] sm:$0xf] }
  0x7d   :  { %4668 = vst [vmem:[#allocation75_spill] sm:$0xff] %v3577_v27  ;;  %866 = vmatpush.bf16.msrb.mxu3 %v3577_v27  ;;  %v3588_v9 = vor.u32 %v2982_v55, %v2628_v10  ;;  %v2678_v55 = vld [vmem:[#allocation8 + $0x78] sm:$0xf0] }
  0x7e   :  { %931 = vmatpush.bf16.msrb.mxu0 %v3568_v28  ;;  %4667 = vst [vmem:[#allocation74_spill] sm:$0xff] %v3575_v39  ;;  %853 = vmatpush.bf16.msrb.mxu2 %v3575_v39  ;;  %v2814_v39 = vld [vmem:[#allocation8 + $0x188] sm:$0xf0]  ;;  %v2684_v28 = vld [vmem:[#allocation8 + $0x80] sm:$0xf] }
  0x7f   :  { %944 = vmatpush.bf16.msrb.mxu1 %v3571_v6  ;;  %4671 = vst [vmem:[#allocation78_spill] sm:$0xff] %v3588_v9  ;;  %v2620_v6 = vld [vmem:[#allocation8] sm:$0xf]  ;;  %v3595_v27 = vor.u32 %v3027_v63, %v2814_v39  ;;  %v3601_v0 = vor.u32 %v2996_v31, %v2684_v28  ;;  %v3605_v39 = vor.u32 %v2993_v3, %v2678_v55  ;;  %v2991_v31 = vld [vmem:[#allocation8 + $0x64] sm:$0xf] }
  0x80   :  { %4672 = vst [vmem:[#allocation79_spill] sm:$0xff] %v3590_v14  ;;  %v3608_v63 = vor.u32 %v3009_v42, %v2742_v13  ;;  %v2670_v28 = vld [vmem:[#allocation8 + $0x68] sm:$0xf0]  ;;  %v2989_v42 = vld [vmem:[#allocation8 + $0x54] sm:$0xf] }
  0x81   :  { %4674 = vst [vmem:[#allocation81_spill] sm:$0xff] %v3595_v27  ;;  %867 = vmatpush.bf16.msrb.mxu3 %v3590_v14  ;;  %v2734_v3 = vld [vmem:[#allocation8 + $0xe8] sm:$0xf0]  ;;  %v2662_v13 = vld [vmem:[#allocation8 + $0x58] sm:$0xf0] }
  0x82   :  { %932 = vmatpush.bf16.msrb.mxu0 %v3580_v58  ;;  %854 = vmatpush.bf16.msrb.mxu2 %v3588_v9  ;;  %v2980_v58 = vld [vmem:[#allocation8 + $0x4] sm:$0xf0]  ;;  %4676 = vst [vmem:[#allocation83_spill] sm:$0xff] %v3601_v0 }
  0x83   :  { %945 = vmatpush.bf16.msrb.mxu1 %v3582_v41  ;;  %v3599_v10 = vor.u32 %v2980_v58, %v2620_v6  ;;  %4677 = vst [vmem:[#allocation84_spill] sm:$0xff] %v3605_v39  ;;  %v3007_v6 = vld [vmem:[#allocation8 + $0xe4] sm:$0xf]  ;;  %v3618_v58 = vor.u32 %v2991_v31, %v2670_v28 }
  0x84   :  { %4678 = vst [vmem:[#allocation85_spill] sm:$0xff] %v3608_v63  ;;  %v3621_v55 = vor.u32 %v3007_v6, %v2734_v3  ;;  %v2987_v28 = vld [vmem:[#allocation8 + $0x44] sm:$0xf]  ;;  %v2654_v6 = vld [vmem:[#allocation8 + $0x48] sm:$0xf0] }
  0x85   :  { %4675 = vst [vmem:[#allocation82_spill] sm:$0xff] %v3599_v10  ;;  %868 = vmatpush.bf16.msrb.mxu3 %v3601_v0  ;;  %v3003_v3 = vld [vmem:[#allocation8 + $0xc4] sm:$0xf] }
  0x86   :  { %933 = vmatpush.bf16.msrb.mxu0 %v3592_v46  ;;  %855 = vmatpush.bf16.msrb.mxu2 %v3599_v10  ;;  %4679 = vst [vmem:[#allocation86_spill] sm:$0xff] %v3618_v58 }
  0x87   :  { %946 = vmatpush.bf16.msrb.mxu1 %v3595_v27  ;;  %4680 = vst [vmem:[#allocation87_spill] sm:$0xff] %v3621_v55 }
  0x89   :  { %934 = vmatmul.bf16.vlgmr.msrb.gmra.mxu0 %v4656_v20  ;;  %913 = vmatpush.bf16.msra.mxu3 %v3608_v63 }
  0x8a   :  { %981 = vmatpush.bf16.msra.mxu0 %v3380_v53  ;;  %900 = vmatpush.bf16.msra.mxu2 %v3605_v39 }
  0x8b   :  { %994 = vmatpush.bf16.msra.mxu1 %v3382_v57 }
  0x8c   :  { %947 = vmatmul.bf16.vlgmr.msrb.gmra.mxu1 %v4656_v20  ;;  %v3626_v20 = vor.u32 %v2989_v42, %v2662_v13  ;;  %v3001_v13 = vld [vmem:[#allocation8 + $0xb4] sm:$0xf] }
  0x8d   :  { %914 = vmatpush.bf16.msra.mxu3 %v3621_v55 }
  0x8e   :  { %982 = vmatpush.bf16.msra.mxu0 %v3391_v1  ;;  %901 = vmatpush.bf16.msra.mxu2 %v3618_v58  ;;  %4681 = vst [vmem:[#allocation88_spill] sm:$0xff] %v3626_v20  ;;  %v2726_v1 = vld [vmem:[#allocation8 + $0xd8] sm:$0xf0] }
  0x8f   :  { %995 = vmatpush.bf16.msra.mxu1 %v3394_v5  ;;  %v3005_v5 = vld [vmem:[#allocation8 + $0xd4] sm:$0xf] }
  0x90   :  { %v3629_v31 = vor.u32 %v3005_v5, %v2726_v1  ;;  %v2985_v1 = vld [vmem:[#allocation8 + $0x34] sm:$0xf]  ;;  %v2646_v5 = vld [vmem:[#allocation8 + $0x38] sm:$0xf0] }
  0x92   :  { %983 = vmatpush.bf16.msra.mxu0 %v3405_v15  ;;  %4682 = vst [vmem:[#allocation89_spill] sm:$0xff] %v3629_v31  ;;  %902 = vmatpush.bf16.msra.mxu2 %v3626_v20  ;;  %v2718_v15 = vld [vmem:[#allocation8 + $0xc8] sm:$0xf0] }
  0x93   :  { %996 = vmatpush.bf16.msra.mxu1 %v3408_v19  ;;  %915 = vmatpush.bf16.msra.mxu3 %v3629_v31  ;;  %v3634_v19 = vor.u32 %v2987_v28, %v2654_v6  ;;  %v3637_v42 = vor.u32 %v3003_v3, %v2718_v15  ;;  %v2983_v15 = vld [vmem:[#allocation8 + $0x24] sm:$0xf]  ;;  %v2638_v6 = vld [vmem:[#allocation8 + $0x28] sm:$0xf0] }
  0x94   :  { %v2999_v3 = vld [vmem:[#allocation8 + $0xa4] sm:$0xf] }
  0x95   :  { %4683 = vst [vmem:[#allocation90_spill] sm:$0xff] %v3634_v19 }
  0x96   :  { %984 = vmatpush.bf16.msra.mxu0 %v3417_v29  ;;  %4684 = vst [vmem:[#allocation91_spill] sm:$0xff] %v3637_v42  ;;  %903 = vmatpush.bf16.msra.mxu2 %v3634_v19  ;;  %v2710_v29 = vld [vmem:[#allocation8 + $0xb8] sm:$0xf0] }
  0x97   :  { %997 = vmatpush.bf16.msra.mxu1 %v3420_v33  ;;  %916 = vmatpush.bf16.msra.mxu3 %v3637_v42  ;;  %v3642_v33 = vor.u32 %v2985_v1, %v2646_v5  ;;  %v3645_v28 = vor.u32 %v3001_v13, %v2710_v29  ;;  %v2981_v1 = vld [vmem:[#allocation8 + $0x14] sm:$0xf]  ;;  %v2630_v5 = vld [vmem:[#allocation8 + $0x18] sm:$0xf0] }
  0x98   :  { %v2997_v29 = vld [vmem:[#allocation8 + $0x94] sm:$0xf]  ;;  %v2694_v13 = vld [vmem:[#allocation8 + $0x98] sm:$0xf0] }
  0x99   :  { %4685 = vst [vmem:[#allocation92_spill] sm:$0xff] %v3642_v33 }
  0x9a   :  { %985 = vmatpush.bf16.msra.mxu0 %v3429_v43  ;;  %4686 = vst [vmem:[#allocation93_spill] sm:$0xff] %v3645_v28  ;;  %904 = vmatpush.bf16.msra.mxu2 %v3642_v33  ;;  %v2702_v43 = vld [vmem:[#allocation8 + $0xa8] sm:$0xf0] }
  0x9b   :  { %998 = vmatpush.bf16.msra.mxu1 %v3432_v44  ;;  %917 = vmatpush.bf16.msra.mxu3 %v3645_v28  ;;  %v3650_v44 = vor.u32 %v2983_v15, %v2638_v6  ;;  %v3653_v57 = vor.u32 %v2999_v3, %v2702_v43  ;;  %v2979_v6 = vld [vmem:[#allocation8 + $0x4] sm:$0xf]  ;;  %v2622_v3 = vld [vmem:[#allocation8 + $0x8] sm:$0xf0] }
  0x9d   :  { %4687 = vst [vmem:[#allocation94_spill] sm:$0xff] %v3650_v44 }
  0x9e   :  { %986 = vmatpush.bf16.msra.mxu0 %v3437_v49  ;;  %4688 = vst [vmem:[#allocation95_spill] sm:$0xff] %v3653_v57  ;;  %905 = vmatpush.bf16.msra.mxu2 %v3650_v44  ;;  %v3660_v49 = vor.u32 %v2997_v29, %v2694_v13  ;;  %v2686_v29 = vld [vmem:[#allocation8 + $0x88] sm:$0xf0] }
  0x9f   :  { %999 = vmatpush.bf16.msra.mxu1 %v3440_v51  ;;  %v3657_v51 = vor.u32 %v2981_v1, %v2630_v5  ;;  %918 = vmatpush.bf16.msra.mxu3 %v3653_v57  ;;  %v2995_v1 = vld [vmem:[#allocation8 + $0x84] sm:$0xf]  ;;  %v3668_v5 = vor.u32 %v2979_v6, %v2622_v3  ;;  %v3681_v6 = vld [vmem:[%s4411_s3] sm:$0x3] }
  0xa0   :  { %4690 = vst [vmem:[#allocation97_spill] sm:$0xff] %v3660_v49  ;;  %v3670_v13 = vor.u32 %v2995_v1, %v2686_v29 }
  0xa1   :  { %4689 = vst [vmem:[#allocation96_spill] sm:$0xff] %v3657_v51 }
  0xa2   :  { %987 = vmatpush.bf16.msra.mxu0 %v3445_v60  ;;  %906 = vmatpush.bf16.msra.mxu2 %v3657_v51  ;;  %4691 = vst [vmem:[#allocation98_spill] sm:$0xff] %v3668_v5 }
  0xa3   :  { %1000 = vmatpush.bf16.msra.mxu1 %v3448_v61  ;;  %919 = vmatpush.bf16.msra.mxu3 %v3660_v49  ;;  %4692 = vst [vmem:[#allocation99_spill] sm:$0xff] %v3670_v13 }
  0xa4   :  { %4693 = vst [vmem:[#allocation100_spill] sm:$0xff] %v3681_v6 }
  0xa6   :  { %988 = vmatpush.bf16.msra.mxu0 %v3451_v11  ;;  %v183_v15 = vpop.f32.mrf.mxu0  ;;  %907 = vmatpush.bf16.msra.mxu2 %v3668_v5 }
  0xa7   :  { %1001 = vmatpush.bf16.msra.mxu1 %v3454_v16  ;;  %v197_v43 = vpop.f32.mrf.mxu1  ;;  %920 = vmatpush.bf16.msra.mxu3 %v3670_v13 }
  0xaa   :  { %1064 = vmatpush.bf16.msrb.mxu0 %v3456_v17 }
  0xab   :  { %1077 = vmatpush.bf16.msrb.mxu1 %v3458_v18 }
  0xae   :  { %1065 = vmatpush.bf16.msrb.mxu0 %v3465_v36  ;;  %v3683_v3 = vpop.f32.mrf.mxu0 }
  0xaf   :  { %1078 = vmatpush.bf16.msrb.mxu1 %v3470_v40  ;;  %4694 = vst [vmem:[#allocation101_spill] sm:$0xff] %v3683_v3  ;;  %v3685_v1 = vpop.f32.mrf.mxu1  ;;  %v4511_v40 = vperm.slane %v3681_v6, 0 }
  0xb0   :  { %4695 = vst [vmem:[#allocation102_spill] sm:$0xff] %v3685_v1 }
  0xb1   :  { %v3694_v18 = vadd.f32 %v183_v15, %v4511_v40 }
  0xb2   :  { %1066 = vmatpush.bf16.msrb.mxu0 %v3479_v62 }
  0xb3   :  { %1079 = vmatpush.bf16.msrb.mxu1 %v3484_v4  ;;  %v4512_v4 = vperm.slane %v3681_v6, 1 }
  0xb5   :  { %v3700_v16 = vadd.f32 %v197_v43, %v4512_v4 }
  0xb6   :  { %1067 = vmatpush.bf16.msrb.mxu0 %v3491_v26 }
  0xb7   :  { %1080 = vmatpush.bf16.msrb.mxu1 %v3496_v35 }
  0xba   :  { %1068 = vmatpush.bf16.msrb.mxu0 %v3503_v2 }
  0xbb   :  { %1081 = vmatpush.bf16.msrb.mxu1 %v3508_v7 }
  0xbe   :  { %v409_v29 = vpop.f32.mrf.mxu2  ;;  %1069 = vmatpush.bf16.msrb.mxu0 %v3513_v24 }
  0xbf   :  { %v422_v36 = vpop.f32.mrf.mxu3  ;;  %1082 = vmatpush.bf16.msrb.mxu1 %v3516_v30 }
  0xc0   :  { %v423_v62 = vadd.f32 %v422_v36, %v409_v29 }
  0xc2   :  { %v452_v1 = vadd.f32 %v423_v62, %v3694_v18  ;;  %1070 = vmatpush.bf16.msrb.mxu0 %v3519_v48 }
  0xc3   :  { %1083 = vmatpush.bf16.msrb.mxu1 %v3522_v54  ;;  %v4720_v54 = vld [vmem:[#allocation71_spill] sm:$0xff] }
  0xc4   :  { %3071 = vtanh.f32 %v452_v1 }
  0xc6   :  { %v435_v3 = vpop.f32.mrf.mxu0  ;;  %v411_v26 = vpop.f32.mrf.mxu2  ;;  %1071 = vmatpush.bf16.msrb.mxu0 %v3525_v32  ;;  %v4719_v32 = vld [vmem:[#allocation70_spill] sm:$0xff] }
  0xc7   :  { %v448_v17 = vpop.f32.mrf.mxu1  ;;  %v424_v29 = vpop.f32.mrf.mxu3  ;;  %1084 = vmatpush.bf16.msrb.mxu1 %v3528_v37  ;;  %v4718_v37 = vld [vmem:[#allocation52_spill] sm:$0xff] }
  0xc8   :  { %v449_v36 = vadd.f32 %v448_v17, %v435_v3 }
  0xca   :  { %v453_v15 = vadd.f32 %v449_v36, %v3700_v16  ;;  %v3072_v43 = vpop.eup %3071  ;;  %v4696_v36 = vld [vmem:[#allocation66_spill] sm:$0xff] }
  0xcc   :  { %3073 = vtanh.f32 %v453_v15  ;;  %v4697_v15 = vld [vmem:[#allocation67_spill] sm:$0xff] }
  0xce   :  { %v437_v62 = vpop.f32.mrf.mxu0 }
  0xcf   :  { %v450_v26 = vpop.f32.mrf.mxu1  ;;  %v4698_v62 = vld [vmem:[#allocation17_spill] sm:$0xff] }
  0xd0   :  { %v4699_v26 = vld [vmem:[#allocation18_spill] sm:$0xff] }
  0xd2   :  { %v3074_v17 = vpop.eup %3073 }
  0xd3   :  { %v456_v3 = vpack.c.bf16 %v3074_v17, %v3072_v43 }
  0xd5   :  { %v458_v29 = vunpack.c.l.b16 %v456_v3  ;;  %v459_v40 = vunpack.c.h.b16 %v456_v3  ;;  %v4700_v3 = vld [vmem:[#allocation68_spill] sm:$0xff] }
  0xd7   :  { %v460_v4 = vpack.c.b16 %v458_v29, %v458_v29  ;;  %v461_v6 = vpack.c.b16 %v459_v40, %v459_v40  ;;  %v4701_v29 = vld [vmem:[#allocation69_spill] sm:$0xff] }
  0xd9   :  { %856 = vmatmul.bf16.vlgmr.msrb.gmra.mxu2 %v460_v4  ;;  %869 = vmatmul.bf16.vlgmr.msrb.gmra.mxu3 %v461_v6 }
  0xda   :  { %989 = vmatmul.bf16.vlgmr.msra.gmra.mxu0 %v460_v4  ;;  %1002 = vmatmul.bf16.vlgmr.msra.gmra.mxu1 %v461_v6 }
  0xdb   :  { %955 = vmatpush.bf16.msrb.mxu2 %v3358_v8  ;;  %968 = vmatpush.bf16.msrb.mxu3 %v3360_v12 }
  0xdc   :  { %1116 = vmatpush.bf16.msra.mxu0 %v3530_v47  ;;  %1129 = vmatpush.bf16.msra.mxu1 %v3532_v45  ;;  %v4708_v45 = vld [vmem:[#allocation76_spill] sm:$0xff]  ;;  %v4717_v47 = vld [vmem:[#allocation50_spill] sm:$0xff] }
  0xdf   :  { %956 = vmatpush.bf16.msrb.mxu2 %v3364_v21  ;;  %969 = vmatpush.bf16.msrb.mxu3 %v3366_v25 }
  0xe0   :  { %1117 = vmatpush.bf16.msra.mxu0 %v3537_v56  ;;  %1130 = vmatpush.bf16.msra.mxu1 %v3540_v59  ;;  %v4704_v59 = vld [vmem:[#allocation72_spill] sm:$0xff]  ;;  %v4707_v56 = vld [vmem:[#allocation26_spill] sm:$0xff] }
  0xe3   :  { %957 = vmatpush.bf16.msrb.mxu2 %v3369_v34  ;;  %970 = vmatpush.bf16.msrb.mxu3 %v3372_v38 }
  0xe4   :  { %1118 = vmatpush.bf16.msra.mxu0 %v3545_v22  ;;  %1131 = vmatpush.bf16.msra.mxu1 %v3548_v23  ;;  %v4702_v23 = vld [vmem:[#allocation21_spill] sm:$0xff]  ;;  %v4703_v22 = vld [vmem:[#allocation22_spill] sm:$0xff] }
  0xe6   :  { %v3719_v40 = vpop.f32.mrf.mxu0 }
  0xe7   :  { %v3721_v1 = vpop.f32.mrf.mxu1  ;;  %958 = vmatpush.bf16.msrb.mxu2 %v3375_v50  ;;  %971 = vmatpush.bf16.msrb.mxu3 %v3378_v52 }
  0xe8   :  { %1119 = vmatpush.bf16.msra.mxu0 %v4696_v36  ;;  %1132 = vmatpush.bf16.msra.mxu1 %v4697_v15  ;;  %v4705_v36 = vld [vmem:[#allocation73_spill] sm:$0xff] }
  0xe9   :  { %908 = vmatmul.bf16.vlgmr.msra.gmra.mxu2 %v460_v4  ;;  %921 = vmatmul.bf16.vlgmr.msra.gmra.mxu3 %v461_v6  ;;  %v4706_v15 = vld [vmem:[#allocation25_spill] sm:$0xff] }
  0xeb   :  { %959 = vmatpush.bf16.msrb.mxu2 %v4698_v62  ;;  %972 = vmatpush.bf16.msrb.mxu3 %v4699_v26 }
  0xec   :  { %1120 = vmatpush.bf16.msra.mxu0 %v4700_v3  ;;  %1133 = vmatpush.bf16.msra.mxu1 %v4701_v29  ;;  %v4711_v29 = vld [vmem:[#allocation38_spill] sm:$0xff]  ;;  %v4712_v3 = vld [vmem:[#allocation40_spill] sm:$0xff] }
  0xee   :  { %v885_v43 = vpop.f32.mrf.mxu0 }
  0xef   :  { %v898_v17 = vpop.f32.mrf.mxu1  ;;  %960 = vmatpush.bf16.msrb.mxu2 %v4702_v23  ;;  %973 = vmatpush.bf16.msrb.mxu3 %v4703_v22  ;;  %v4709_v43 = vld [vmem:[#allocation29_spill] sm:$0xff] }
  0xf0   :  { %1121 = vmatpush.bf16.msra.mxu0 %v4704_v59  ;;  %1134 = vmatpush.bf16.msra.mxu1 %v4705_v36  ;;  %v4710_v17 = vld [vmem:[#allocation30_spill] sm:$0xff]  ;;  %v4714_v59 = vld [vmem:[#allocation44_spill] sm:$0xff] }
  0xf1   :  { %v4713_v36 = vld [vmem:[#allocation42_spill] sm:$0xff] }
  0xf3   :  { %961 = vmatpush.bf16.msrb.mxu2 %v4706_v15  ;;  %974 = vmatpush.bf16.msrb.mxu3 %v4707_v56 }
  0xf4   :  { %1122 = vmatpush.bf16.msra.mxu0 %v4708_v45  ;;  %1135 = vmatpush.bf16.msra.mxu1 %v3582_v41  ;;  %v4715_v45 = vld [vmem:[#allocation46_spill] sm:$0xff]  ;;  %v4716_v41 = vld [vmem:[#allocation48_spill] sm:$0xff] }
  0xf7   :  { %962 = vmatpush.bf16.msrb.mxu2 %v4709_v43  ;;  %975 = vmatpush.bf16.msrb.mxu3 %v4710_v17 }
  0xf8   :  { %1123 = vmatpush.bf16.msra.mxu0 %v3592_v46  ;;  %1136 = vmatpush.bf16.msra.mxu1 %v3595_v27  ;;  %v4721_v46 = vld [vmem:[#allocation74_spill] sm:$0xff] }
  0xfa   :  { %963 = vmatmul.bf16.vlgmr.msrb.gmra.mxu2 %v460_v4  ;;  %976 = vmatmul.bf16.vlgmr.msrb.gmra.mxu3 %v461_v6  ;;  %v4722_v4 = vld [vmem:[#allocation75_spill] sm:$0xff] }
  0xfb   :  { %1038 = vmatpush.bf16.msra.mxu2 %v4711_v29  ;;  %1051 = vmatpush.bf16.msra.mxu3 %v4712_v3 }
  0xff   :  { %1039 = vmatpush.bf16.msra.mxu2 %v4713_v36  ;;  %1052 = vmatpush.bf16.msra.mxu3 %v4714_v59 }
 0x103   :  { %1040 = vmatpush.bf16.msra.mxu2 %v4715_v45  ;;  %1053 = vmatpush.bf16.msra.mxu3 %v4716_v41 }
 0x106   :  { %v935_v6 = vpop.f32.mrf.mxu0 }
 0x107   :  { %1041 = vmatpush.bf16.msra.mxu2 %v4717_v47  ;;  %1054 = vmatpush.bf16.msra.mxu3 %v4718_v37 }
 0x109   :  { %v948_v27 = vpop.f32.mrf.mxu1 }
 0x10b   :  { %1042 = vmatpush.bf16.msra.mxu2 %v4719_v32  ;;  %1055 = vmatpush.bf16.msra.mxu3 %v4720_v54 }
 0x10f   :  { %1043 = vmatpush.bf16.msra.mxu2 %v4721_v46  ;;  %1056 = vmatpush.bf16.msra.mxu3 %v4722_v4 }
 0x113   :  { %1044 = vmatpush.bf16.msra.mxu2 %v3588_v9  ;;  %1057 = vmatpush.bf16.msra.mxu3 %v3590_v14  ;;  %v937_v9 = vpop.f32.mrf.mxu0 }
 0x117   :  { %1045 = vmatpush.bf16.msra.mxu2 %v3599_v10  ;;  %1058 = vmatpush.bf16.msra.mxu3 %v3601_v0  ;;  %v950_v0 = vpop.f32.mrf.mxu1 }
 0x11b   :  { %1090 = vmatpush.bf16.msrb.mxu2 %v3605_v39  ;;  %1103 = vmatpush.bf16.msrb.mxu3 %v3608_v63 }
 0x11f   :  { %1091 = vmatpush.bf16.msrb.mxu2 %v3618_v58  ;;  %1104 = vmatpush.bf16.msrb.mxu3 %v3621_v55 }
 0x123   :  { %1092 = vmatpush.bf16.msrb.mxu2 %v3626_v20  ;;  %1105 = vmatpush.bf16.msrb.mxu3 %v3629_v31 }
 0x127   :  { %1093 = vmatpush.bf16.msrb.mxu2 %v3634_v19  ;;  %1106 = vmatpush.bf16.msrb.mxu3 %v3637_v42 }
 0x12b   :  { %1094 = vmatpush.bf16.msrb.mxu2 %v3642_v33  ;;  %1107 = vmatpush.bf16.msrb.mxu3 %v3645_v28  ;;  %v202_v28 = vld [vmem:[%s4413_s5] sm:$0x3] }
 0x12c   :  { %v3780_v31 = vperm.slane %v202_v28, 0 }
 0x12e   :  { %4723 = vst [vmem:[#allocation17_spill] sm:$0xff] %v3780_v31 }
 0x12f   :  { %1095 = vmatpush.bf16.msrb.mxu2 %v3650_v44  ;;  %1108 = vmatpush.bf16.msrb.mxu3 %v3653_v57 }
 0x133   :  { %1096 = vmatpush.bf16.msrb.mxu2 %v3657_v51  ;;  %1109 = vmatpush.bf16.msrb.mxu3 %v3660_v49 }
 0x137   :  { %1097 = vmatpush.bf16.msrb.mxu2 %v3668_v5  ;;  %1110 = vmatpush.bf16.msrb.mxu3 %v3670_v13  ;;  %v3783_v5 = vperm.slane %v202_v28, 1 }
 0x157   :  { %v990_v9 = vpop.f32.mrf.mxu0  ;;  %v1003_v19 = vpop.f32.mrf.mxu1 }
 0x15c   :  { %v857_v42 = vpop.f32.mrf.mxu2  ;;  %v870_v0 = vpop.f32.mrf.mxu3 }
 0x15d   :  { %v858_v51 = vadd.f32 %v857_v42, %v3780_v31 }
 0x15f   :  { %v992_v33 = vpop.f32.mrf.mxu0  ;;  %v1005_v44 = vpop.f32.mrf.mxu1  ;;  %v871_v20 = vadd.f32 %v870_v0, %v858_v51 }
 0x161   :  { %v884_v13 = vadd.f32 %v3719_v40, %v871_v20 }
 0x163   :  { %v897_v10 = vadd.f32 %v3721_v1, %v884_v13 }
 0x164   :  { %v859_v57 = vpop.f32.mrf.mxu2  ;;  %v872_v49 = vpop.f32.mrf.mxu3 }
 0x165   :  { %3075 = vtanh.f32 %v897_v10  ;;  %v1004_v57 = vadd.f32 %v1003_v19, %v990_v9 }
 0x167   :  { %v1010_v42 = vrot.slane %v1004_v57, 6 }
 0x16b   :  { %v3076_v49 = vpop.eup %3075 }
 0x16c   :  { %v909_v55 = vpop.f32.mrf.mxu2  ;;  %v922_v58 = vpop.f32.mrf.mxu3 }
 0x16d   :  { %v910_v63 = vadd.f32 %v909_v55, %v3783_v5 }
 0x16f   :  { %v923_v39 = vadd.f32 %v922_v58, %v910_v63  ;;  %v1014_v63 = vadd.f32 %v1010_v42, %v3700_v16  ;;  %v4728_v42 = vld [vmem:[#allocation24_spill] sm:$0xff] }
 0x171   :  { %v936_v33 = vadd.f32 %v935_v6, %v923_v39  ;;  %v4724_v6 = vld [vmem:[#allocation16_spill] sm:$0xff] }
 0x173   :  { %v949_v44 = vadd.f32 %v948_v27, %v936_v33 }
 0x174   :  { %v911_v14 = vpop.f32.mrf.mxu2  ;;  %v924_v4 = vpop.f32.mrf.mxu3 }
 0x175   :  { %3077 = vtanh.f32 %v949_v44 }
 0x176   :  { %3079 = vtanh.f32 %v1014_v63  ;;  %v4729_v63 = vld [vmem:[#allocation27_spill] sm:$0xff] }
 0x17b   :  { %v3078_v51 = vpop.eup %3077 }
 0x17c   :  { %v954_v28 = vpack.c.bf16 %v3078_v51, %v3076_v49  ;;  %v3080_v9 = vpop.eup %3079  ;;  %v4727_v51 = vld [vmem:[#allocation23_spill] sm:$0xff] }
 0x17d   :  { %v964_v0 = vpop.f32.mrf.mxu2  ;;  %v977_v20 = vpop.f32.mrf.mxu3 }
 0x17e   :  { %v978_v40 = vadd.f32 %v977_v20, %v964_v0  ;;  %v1024_v31 = vunpack.c.l.b16 %v954_v28  ;;  %v1025_v46 = vunpack.c.h.b16 %v954_v28 }
 0x180   :  { %v1009_v58 = vrot.slane %v978_v40, 6  ;;  %v1026_v55 = vpack.c.b16 %v1024_v31, %v1024_v31  ;;  %v1027_v39 = vpack.c.b16 %v1025_v46, %v1025_v46  ;;  %v4725_v31 = vld [vmem:[#allocation19_spill] sm:$0xff]  ;;  %v4726_v46 = vld [vmem:[#allocation20_spill] sm:$0xff] }
 0x182   :  { %v1013_v27 = vadd.f32 %v1009_v58, %v3694_v18  ;;  %v1028_v14 = vrot.slane %v1026_v55, 7  ;;  %v1029_v10 = vrot.slane %v1027_v39, 7  ;;  %v4730_v58 = vld [vmem:[#allocation28_spill] sm:$0xff]  ;;  %v4731_v55 = vld [vmem:[#allocation31_spill] sm:$0xff] }
 0x183   :  { %v4732_v39 = vld [vmem:[#allocation32_spill] sm:$0xff] }
 0x184   :  { %3081 = vtanh.f32 %v1013_v27  ;;  %v1032_v19 = vrot.slane %v1028_v14, 1  ;;  %v1033_v13 = vrot.slane %v1029_v10, 1  ;;  %v4733_v27 = vld [vmem:[#allocation33_spill] sm:$0xff]  ;;  %v4734_v14 = vld [vmem:[#allocation34_spill] sm:$0xff]  ;;  %v4735_v10 = vld [vmem:[#allocation35_spill] sm:$0xff] }
 0x185   :  { %v966_v1 = vpop.f32.mrf.mxu2  ;;  %v979_v4 = vpop.f32.mrf.mxu3 }
 0x186   :  { %1072 = vmatmul.bf16.vlgmr.msrb.gmra.mxu0 %v1032_v19  ;;  %1085 = vmatmul.bf16.vlgmr.msrb.gmra.mxu1 %v1033_v13  ;;  %v4738_v1 = vld [vmem:[#allocation39_spill] sm:$0xff]  ;;  %v4739_v4 = vld [vmem:[#allocation41_spill] sm:$0xff] }
 0x187   :  { %1171 = vmatpush.bf16.msrb.mxu0 %v3380_v53  ;;  %1184 = vmatpush.bf16.msrb.mxu1 %v4724_v6 }
 0x18a   :  { %v3082_v33 = vpop.eup %3081 }
 0x18b   :  { %1172 = vmatpush.bf16.msrb.mxu0 %v4725_v31  ;;  %1185 = vmatpush.bf16.msrb.mxu1 %v4726_v46  ;;  %v1017_v44 = vpack.c.bf16 %v3080_v9, %v3082_v33  ;;  %v4740_v9 = vld [vmem:[#allocation43_spill] sm:$0xff]  ;;  %v4741_v33 = vld [vmem:[#allocation45_spill] sm:$0xff] }
 0x18d   :  { %v1019_v57 = vunpack.c.l.b16 %v1017_v44  ;;  %v1020_v49 = vunpack.c.h.b16 %v1017_v44  ;;  %v4742_v44 = vld [vmem:[#allocation47_spill] sm:$0xff] }
 0x18f   :  { %1173 = vmatpush.bf16.msrb.mxu0 %v4727_v51  ;;  %1186 = vmatpush.bf16.msrb.mxu1 %v4728_v42  ;;  %v1021_v28 = vpack.c.b16 %v1019_v57, %v1019_v57  ;;  %v1022_v0 = vpack.c.b16 %v1020_v49, %v1020_v49  ;;  %v4743_v57 = vld [vmem:[#allocation57_spill] sm:$0xff]  ;;  %v4744_v49 = vld [vmem:[#allocation58_spill] sm:$0xff] }
 0x191   :  { %v1030_v20 = vrot.slane %v1021_v28, 1  ;;  %v1031_v40 = vrot.slane %v1022_v0, 1  ;;  %v4745_v28 = vld [vmem:[#allocation59_spill] sm:$0xff]  ;;  %v4746_v0 = vld [vmem:[#allocation60_spill] sm:$0xff] }
 0x193   :  { %1046 = vmatmul.bf16.vlgmr.msra.gmra.mxu2 %v1030_v20  ;;  %1059 = vmatmul.bf16.vlgmr.msra.gmra.mxu3 %v1031_v40 }
 0x194   :  { %1145 = vmatpush.bf16.msra.mxu2 %v3358_v8  ;;  %1158 = vmatpush.bf16.msra.mxu3 %v3360_v12 }
 0x195   :  { %1174 = vmatpush.bf16.msrb.mxu0 %v4729_v63  ;;  %1187 = vmatpush.bf16.msrb.mxu1 %v4730_v58 }
 0x196   :  { %1124 = vmatmul.bf16.vlgmr.msra.gmra.mxu0 %v1032_v19  ;;  %1137 = vmatmul.bf16.vlgmr.msra.gmra.mxu1 %v1033_v13  ;;  %v4736_v19 = vld [vmem:[#allocation36_spill] sm:$0xff]  ;;  %v4737_v13 = vld [vmem:[#allocation37_spill] sm:$0xff] }
 0x198   :  { %1146 = vmatpush.bf16.msra.mxu2 %v3364_v21  ;;  %1159 = vmatpush.bf16.msra.mxu3 %v3366_v25 }
 0x199   :  { %1175 = vmatpush.bf16.msrb.mxu0 %v4731_v55  ;;  %1188 = vmatpush.bf16.msrb.mxu1 %v4732_v39 }
 0x19c   :  { %1147 = vmatpush.bf16.msra.mxu2 %v3369_v34  ;;  %1160 = vmatpush.bf16.msra.mxu3 %v3372_v38 }
 0x19d   :  { %1176 = vmatpush.bf16.msrb.mxu0 %v4733_v27  ;;  %1189 = vmatpush.bf16.msrb.mxu1 %v4734_v14 }
 0x1a0   :  { %1148 = vmatpush.bf16.msra.mxu2 %v3375_v50  ;;  %1161 = vmatpush.bf16.msra.mxu3 %v3378_v52 }
 0x1a1   :  { %1177 = vmatpush.bf16.msrb.mxu0 %v3445_v60  ;;  %1190 = vmatpush.bf16.msrb.mxu1 %v3448_v61 }
 0x1a3   :  { %1098 = vmatmul.bf16.vlgmr.msrb.gmra.mxu2 %v1030_v20  ;;  %1111 = vmatmul.bf16.vlgmr.msrb.gmra.mxu3 %v1031_v40 }
 0x1a4   :  { %1149 = vmatpush.bf16.msra.mxu2 %v4698_v62  ;;  %1162 = vmatpush.bf16.msra.mxu3 %v4699_v26 }
 0x1a5   :  { %1178 = vmatpush.bf16.msrb.mxu0 %v3451_v11  ;;  %1191 = vmatpush.bf16.msrb.mxu1 %v4735_v10 }
 0x1a8   :  { %1179 = vmatmul.bf16.vlgmr.msrb.gmra.mxu0 %v1030_v20  ;;  %1192 = vmatmul.bf16.vlgmr.msrb.gmra.mxu1 %v1031_v40 }
 0x1a9   :  { %1254 = vmatpush.bf16.msra.mxu0 %v4736_v19  ;;  %1267 = vmatpush.bf16.msra.mxu1 %v4737_v13 }
 0x1aa   :  { %1150 = vmatpush.bf16.msra.mxu2 %v4702_v23  ;;  %1163 = vmatpush.bf16.msra.mxu3 %v4703_v22 }
 0x1ad   :  { %1255 = vmatpush.bf16.msra.mxu0 %v4738_v1  ;;  %1268 = vmatpush.bf16.msra.mxu1 %v4739_v4 }
 0x1ae   :  { %1151 = vmatpush.bf16.msra.mxu2 %v4706_v15  ;;  %1164 = vmatpush.bf16.msra.mxu3 %v4707_v56 }
 0x1b1   :  { %1256 = vmatpush.bf16.msra.mxu0 %v4740_v9  ;;  %1269 = vmatpush.bf16.msra.mxu1 %v4741_v33 }
 0x1b2   :  { %1152 = vmatpush.bf16.msra.mxu2 %v4709_v43  ;;  %1165 = vmatpush.bf16.msra.mxu3 %v4710_v17 }
 0x1b5   :  { %1257 = vmatpush.bf16.msra.mxu0 %v4742_v44  ;;  %1270 = vmatpush.bf16.msra.mxu1 %v3496_v35 }
 0x1b6   :  { %1228 = vmatpush.bf16.msrb.mxu2 %v4711_v29  ;;  %1241 = vmatpush.bf16.msrb.mxu3 %v4712_v3 }
 0x1b7   :  { %1153 = vmatmul.bf16.vlgmr.msra.gmra.mxu2 %v1030_v20  ;;  %1166 = vmatmul.bf16.vlgmr.msra.gmra.mxu3 %v1031_v40  ;;  %v4747_v20 = vld [vmem:[#allocation61_spill] sm:$0xff]  ;;  %v4748_v40 = vld [vmem:[#allocation74_spill] sm:$0xff] }
 0x1b9   :  { %1258 = vmatpush.bf16.msra.mxu0 %v3503_v2  ;;  %1271 = vmatpush.bf16.msra.mxu1 %v3508_v7  ;;  %v4784_v7 = vld [vmem:[#allocation17_spill] sm:$0xff] }
 0x1ba   :  { %1229 = vmatpush.bf16.msrb.mxu2 %v4713_v36  ;;  %1242 = vmatpush.bf16.msrb.mxu3 %v4714_v59 }
 0x1bd   :  { %1259 = vmatpush.bf16.msra.mxu0 %v3513_v24  ;;  %1272 = vmatpush.bf16.msra.mxu1 %v3516_v30 }
 0x1be   :  { %1230 = vmatpush.bf16.msrb.mxu2 %v4715_v45  ;;  %1243 = vmatpush.bf16.msrb.mxu3 %v4716_v41 }
 0x1c1   :  { %1260 = vmatpush.bf16.msra.mxu0 %v3519_v48  ;;  %1273 = vmatpush.bf16.msra.mxu1 %v4743_v57  ;;  %v4751_v48 = vld [vmem:[#allocation63_spill] sm:$0xff]  ;;  %v4752_v57 = vld [vmem:[#allocation78_spill] sm:$0xff] }
 0x1c2   :  { %1231 = vmatpush.bf16.msrb.mxu2 %v4717_v47  ;;  %1244 = vmatpush.bf16.msrb.mxu3 %v4718_v37  ;;  %v4749_v47 = vld [vmem:[#allocation75_spill] sm:$0xff]  ;;  %v4750_v37 = vld [vmem:[#allocation62_spill] sm:$0xff] }
 0x1c5   :  { %1261 = vmatpush.bf16.msra.mxu0 %v4744_v49  ;;  %1274 = vmatpush.bf16.msra.mxu1 %v4745_v28  ;;  %v4755_v49 = vld [vmem:[#allocation65_spill] sm:$0xff]  ;;  %v4756_v28 = vld [vmem:[#allocation82_spill] sm:$0xff] }
 0x1c6   :  { %1232 = vmatpush.bf16.msrb.mxu2 %v4719_v32  ;;  %1245 = vmatpush.bf16.msrb.mxu3 %v4720_v54  ;;  %v4753_v32 = vld [vmem:[#allocation79_spill] sm:$0xff]  ;;  %v4754_v54 = vld [vmem:[#allocation64_spill] sm:$0xff] }
 0x1c9   :  { %1306 = vmatpush.bf16.msrb.mxu0 %v4746_v0  ;;  %1319 = vmatpush.bf16.msrb.mxu1 %v4747_v20  ;;  %v4757_v0 = vld [vmem:[#allocation83_spill] sm:$0xff]  ;;  %v4758_v20 = vld [vmem:[#allocation84_spill] sm:$0xff] }
 0x1ca   :  { %1233 = vmatpush.bf16.msrb.mxu2 %v4748_v40  ;;  %1246 = vmatpush.bf16.msrb.mxu3 %v4749_v47  ;;  %v4759_v40 = vld [vmem:[#allocation85_spill] sm:$0xff]  ;;  %v4760_v47 = vld [vmem:[#allocation66_spill] sm:$0xff] }
 0x1cd   :  { %1307 = vmatpush.bf16.msrb.mxu0 %v4750_v37  ;;  %1320 = vmatpush.bf16.msrb.mxu1 %v4751_v48  ;;  %v4761_v37 = vld [vmem:[#allocation67_spill] sm:$0xff]  ;;  %v4762_v48 = vld [vmem:[#allocation86_spill] sm:$0xff] }
 0x1ce   :  { %1234 = vmatpush.bf16.msrb.mxu2 %v4752_v57  ;;  %1247 = vmatpush.bf16.msrb.mxu3 %v4753_v32  ;;  %v4763_v57 = vld [vmem:[#allocation87_spill] sm:$0xff]  ;;  %v4764_v32 = vld [vmem:[#allocation68_spill] sm:$0xff] }
 0x1d1   :  { %1308 = vmatpush.bf16.msrb.mxu0 %v4754_v54  ;;  %1321 = vmatpush.bf16.msrb.mxu1 %v4755_v49  ;;  %v4765_v54 = vld [vmem:[#allocation69_spill] sm:$0xff]  ;;  %v4766_v49 = vld [vmem:[#allocation88_spill] sm:$0xff] }
 0x1d2   :  { %1235 = vmatpush.bf16.msrb.mxu2 %v4756_v28  ;;  %1248 = vmatpush.bf16.msrb.mxu3 %v4757_v0  ;;  %v4767_v28 = vld [vmem:[#allocation89_spill] sm:$0xff]  ;;  %v4768_v0 = vld [vmem:[#allocation72_spill] sm:$0xff] }
 0x1d5   :  { %1309 = vmatpush.bf16.msrb.mxu0 %v4760_v47  ;;  %1322 = vmatpush.bf16.msrb.mxu1 %v4761_v37  ;;  %v4771_v47 = vld [vmem:[#allocation91_spill] sm:$0xff]  ;;  %v4772_v37 = vld [vmem:[#allocation76_spill] sm:$0xff] }
 0x1d6   :  { %1280 = vmatpush.bf16.msra.mxu2 %v4758_v20  ;;  %1293 = vmatpush.bf16.msra.mxu3 %v4759_v40  ;;  %v4769_v20 = vld [vmem:[#allocation73_spill] sm:$0xff]  ;;  %v4770_v40 = vld [vmem:[#allocation90_spill] sm:$0xff] }
 0x1d9   :  { %1310 = vmatpush.bf16.msrb.mxu0 %v4764_v32  ;;  %1323 = vmatpush.bf16.msrb.mxu1 %v4765_v54  ;;  %v4775_v32 = vld [vmem:[#allocation93_spill] sm:$0xff]  ;;  %v4776_v54 = vld [vmem:[#allocation80_spill] sm:$0xff] }
 0x1da   :  { %1281 = vmatpush.bf16.msra.mxu2 %v4762_v48  ;;  %1294 = vmatpush.bf16.msra.mxu3 %v4763_v57  ;;  %v4773_v48 = vld [vmem:[#allocation77_spill] sm:$0xff]  ;;  %v4774_v57 = vld [vmem:[#allocation92_spill] sm:$0xff] }
 0x1dd   :  { %1311 = vmatpush.bf16.msrb.mxu0 %v4768_v0  ;;  %1324 = vmatpush.bf16.msrb.mxu1 %v4769_v20  ;;  %v4779_v0 = vld [vmem:[#allocation95_spill] sm:$0xff]  ;;  %v4780_v20 = vld [vmem:[#allocation96_spill] sm:$0xff] }
 0x1de   :  { %1282 = vmatpush.bf16.msra.mxu2 %v4766_v49  ;;  %1295 = vmatpush.bf16.msra.mxu3 %v4767_v28  ;;  %v4777_v49 = vld [vmem:[#allocation81_spill] sm:$0xff]  ;;  %v4778_v28 = vld [vmem:[#allocation94_spill] sm:$0xff] }
 0x1e1   :  { %1312 = vmatpush.bf16.msrb.mxu0 %v4772_v37  ;;  %1325 = vmatpush.bf16.msrb.mxu1 %v4773_v48  ;;  %v4783_v37 = vld [vmem:[#allocation99_spill] sm:$0xff] }
 0x1e2   :  { %1283 = vmatpush.bf16.msra.mxu2 %v4770_v40  ;;  %1296 = vmatpush.bf16.msra.mxu3 %v4771_v47  ;;  %v4781_v40 = vld [vmem:[#allocation97_spill] sm:$0xff]  ;;  %v4782_v47 = vld [vmem:[#allocation98_spill] sm:$0xff] }
 0x1e5   :  { %1313 = vmatpush.bf16.msrb.mxu0 %v4776_v54  ;;  %1326 = vmatpush.bf16.msrb.mxu1 %v4777_v49 }
 0x1e6   :  { %1284 = vmatpush.bf16.msra.mxu2 %v4774_v57  ;;  %1297 = vmatpush.bf16.msra.mxu3 %v4775_v32 }
 0x1ea   :  { %1285 = vmatpush.bf16.msra.mxu2 %v4778_v28  ;;  %1298 = vmatpush.bf16.msra.mxu3 %v4779_v0 }
 0x1ee   :  { %1286 = vmatpush.bf16.msra.mxu2 %v4780_v20  ;;  %1299 = vmatpush.bf16.msra.mxu3 %v4781_v40 }
 0x1f2   :  { %1287 = vmatpush.bf16.msra.mxu2 %v4782_v47  ;;  %1300 = vmatpush.bf16.msra.mxu3 %v4783_v37 }
 0x203   :  { %v1073_v48 = vpop.f32.mrf.mxu0  ;;  %v1086_v57 = vpop.f32.mrf.mxu1 }
 0x20b   :  { %v1075_v30 = vpop.f32.mrf.mxu0  ;;  %v1088_v32 = vpop.f32.mrf.mxu1 }
 0x213   :  { %v1125_v24 = vpop.f32.mrf.mxu0  ;;  %v1138_v54 = vpop.f32.mrf.mxu1 }
 0x216   :  { %v1047_v41 = vpop.f32.mrf.mxu2  ;;  %v1060_v49 = vpop.f32.mrf.mxu3 }
 0x217   :  { %v1048_v0 = vadd.f32 %v1047_v41, %v4784_v7 }
 0x219   :  { %v1061_v59 = vadd.f32 %v1060_v49, %v1048_v0 }
 0x21b   :  { %v1127_v45 = vpop.f32.mrf.mxu0  ;;  %v1140_v28 = vpop.f32.mrf.mxu1  ;;  %v1074_v47 = vadd.f32 %v1073_v48, %v1061_v59 }
 0x21d   :  { %v1087_v32 = vadd.f32 %v1086_v57, %v1074_v47 }
 0x21e   :  { %v1049_v2 = vpop.f32.mrf.mxu2  ;;  %v1062_v20 = vpop.f32.mrf.mxu3 }
 0x21f   :  { %3083 = vtanh.f32 %v1087_v32 }
 0x225   :  { %v1180_v40 = vpop.f32.mrf.mxu0  ;;  %v1193_v36 = vpop.f32.mrf.mxu1 }
 0x226   :  { %v1099_v35 = vpop.f32.mrf.mxu2  ;;  %v1112_v37 = vpop.f32.mrf.mxu3  ;;  %v1194_v2 = vadd.f32 %v1193_v36, %v1180_v40 }
 0x227   :  { %v1100_v44 = vadd.f32 %v1099_v35, %v3783_v5  ;;  %v3084_v41 = vpop.eup %3083 }
 0x228   :  { %v1200_v0 = vrot.slane %v1194_v2, 4 }
 0x229   :  { %v1113_v30 = vadd.f32 %v1112_v37, %v1100_v44 }
 0x22a   :  { %v1204_v37 = vadd.f32 %v1200_v0, %v3700_v16  ;;  %v4786_v0 = vld [vmem:[#allocation29_spill] sm:$0xff] }
 0x22b   :  { %v1126_v3 = vadd.f32 %v1125_v24, %v1113_v30 }
 0x22d   :  { %v1139_v29 = vadd.f32 %v1138_v54, %v1126_v3  ;;  %v1182_v17 = vpop.f32.mrf.mxu0  ;;  %v1195_v43 = vpop.f32.mrf.mxu1 }
 0x22e   :  { %v1101_v45 = vpop.f32.mrf.mxu2  ;;  %v1114_v28 = vpop.f32.mrf.mxu3 }
 0x22f   :  { %3085 = vtanh.f32 %v1139_v29 }
 0x230   :  { %3087 = vtanh.f32 %v1204_v37  ;;  %v4791_v37 = vld [vmem:[#allocation49_spill] sm:$0xff] }
 0x235   :  { %v3086_v49 = vpop.eup %3085 }
 0x236   :  { %v1144_v20 = vpack.c.bf16 %v3086_v49, %v3084_v41  ;;  %v3088_v40 = vpop.eup %3087  ;;  %v4785_v49 = vld [vmem:[#allocation45_spill] sm:$0xff] }
 0x238   :  { %v1214_v33 = vunpack.c.l.b16 %v1144_v20  ;;  %v1215_v35 = vunpack.c.h.b16 %v1144_v20  ;;  %v4787_v20 = vld [vmem:[#allocation30_spill] sm:$0xff] }
 0x23a   :  { %v1154_v48 = vpop.f32.mrf.mxu2  ;;  %v1167_v59 = vpop.f32.mrf.mxu3  ;;  %v1216_v54 = vpack.c.b16 %v1214_v33, %v1214_v33  ;;  %v1217_v47 = vpack.c.b16 %v1215_v35, %v1215_v35  ;;  %v4790_v35 = vld [vmem:[#allocation47_spill] sm:$0xff] }
 0x23b   :  { %v1168_v7 = vadd.f32 %v1167_v59, %v1154_v48  ;;  %v4788_v48 = vld [vmem:[#allocation38_spill] sm:$0xff]  ;;  %v4789_v59 = vld [vmem:[#allocation40_spill] sm:$0xff] }
 0x23c   :  { %v1218_v43 = vrot.slane %v1216_v54, 6  ;;  %v1219_v17 = vrot.slane %v1217_v47, 6  ;;  %v4793_v54 = vld [vmem:[#allocation44_spill] sm:$0xff]  ;;  %v4794_v47 = vld [vmem:[#allocation51_spill] sm:$0xff] }
 0x23d   :  { %v1199_v24 = vrot.slane %v1168_v7, 4 }
 0x23e   :  { %v1222_v36 = vrot.slane %v1218_v43, 2  ;;  %v1223_v29 = vrot.slane %v1219_v17, 2  ;;  %v4796_v43 = vld [vmem:[#allocation46_spill] sm:$0xff]  ;;  %v4797_v17 = vld [vmem:[#allocation48_spill] sm:$0xff] }
 0x23f   :  { %v1203_v3 = vadd.f32 %v1199_v24, %v3694_v18  ;;  %v4792_v24 = vld [vmem:[#allocation42_spill] sm:$0xff] }
 0x240   :  { %1262 = vmatmul.bf16.vlgmr.msra.gmra.mxu0 %v1222_v36  ;;  %1275 = vmatmul.bf16.vlgmr.msra.gmra.mxu1 %v1223_v29 }
 0x241   :  { %3089 = vtanh.f32 %v1203_v3  ;;  %1361 = vmatpush.bf16.msra.mxu0 %v3380_v53  ;;  %1374 = vmatpush.bf16.msra.mxu1 %v4724_v6  ;;  %v4795_v3 = vld [vmem:[#allocation53_spill] sm:$0xff] }
 0x242   :  { %v1156_v44 = vpop.f32.mrf.mxu2  ;;  %v1169_v57 = vpop.f32.mrf.mxu3 }
 0x243   :  { %v4800_v44 = vld [vmem:[#allocation50_spill] sm:$0xff]  ;;  %v4801_v57 = vld [vmem:[#allocation52_spill] sm:$0xff] }
 0x245   :  { %1362 = vmatpush.bf16.msra.mxu0 %v4725_v31  ;;  %1375 = vmatpush.bf16.msra.mxu1 %v4726_v46 }
 0x247   :  { %v3090_v7 = vpop.eup %3089 }
 0x248   :  { %v1207_v33 = vpack.c.bf16 %v3088_v40, %v3090_v7  ;;  %v4802_v40 = vld [vmem:[#allocation56_spill] sm:$0xff]  ;;  %v4803_v7 = vld [vmem:[#allocation57_spill] sm:$0xff] }
 0x249   :  { %1363 = vmatpush.bf16.msra.mxu0 %v4727_v51  ;;  %1376 = vmatpush.bf16.msra.mxu1 %v4728_v42 }
 0x24a   :  { %v1209_v30 = vunpack.c.l.b16 %v1207_v33  ;;  %v1210_v32 = vunpack.c.h.b16 %v1207_v33  ;;  %v4804_v33 = vld [vmem:[#allocation70_spill] sm:$0xff] }
 0x24c   :  { %v1211_v45 = vpack.c.b16 %v1209_v30, %v1209_v30  ;;  %v1212_v28 = vpack.c.b16 %v1210_v32, %v1210_v32  ;;  %v4805_v30 = vld [vmem:[#allocation71_spill] sm:$0xff]  ;;  %v4806_v32 = vld [vmem:[#allocation58_spill] sm:$0xff] }
 0x24d   :  { %1364 = vmatpush.bf16.msra.mxu0 %v4729_v63  ;;  %1377 = vmatpush.bf16.msra.mxu1 %v4730_v58 }
 0x24e   :  { %v1220_v2 = vrot.slane %v1211_v45, 2  ;;  %v1221_v41 = vrot.slane %v1212_v28, 2  ;;  %v4807_v45 = vld [vmem:[#allocation59_spill] sm:$0xff]  ;;  %v4808_v28 = vld [vmem:[#allocation60_spill] sm:$0xff] }
 0x250   :  { %1236 = vmatmul.bf16.vlgmr.msrb.gmra.mxu2 %v1220_v2  ;;  %1249 = vmatmul.bf16.vlgmr.msrb.gmra.mxu3 %v1221_v41 }
 0x251   :  { %1335 = vmatpush.bf16.msrb.mxu2 %v3358_v8  ;;  %1348 = vmatpush.bf16.msrb.mxu3 %v3360_v12 }
 0x252   :  { %1314 = vmatmul.bf16.vlgmr.msrb.gmra.mxu0 %v1222_v36  ;;  %1327 = vmatmul.bf16.vlgmr.msrb.gmra.mxu1 %v1223_v29  ;;  %v4798_v36 = vld [vmem:[#allocation54_spill] sm:$0xff]  ;;  %v4799_v29 = vld [vmem:[#allocation55_spill] sm:$0xff] }
 0x253   :  { %1365 = vmatpush.bf16.msra.mxu0 %v4731_v55  ;;  %1378 = vmatpush.bf16.msra.mxu1 %v4732_v39 }
 0x255   :  { %1336 = vmatpush.bf16.msrb.mxu2 %v3364_v21  ;;  %1349 = vmatpush.bf16.msrb.mxu3 %v3366_v25 }
 0x257   :  { %1366 = vmatpush.bf16.msra.mxu0 %v4733_v27  ;;  %1379 = vmatpush.bf16.msra.mxu1 %v4734_v14 }
 0x259   :  { %1337 = vmatpush.bf16.msrb.mxu2 %v3369_v34  ;;  %1350 = vmatpush.bf16.msrb.mxu3 %v3372_v38 }
 0x25b   :  { %1367 = vmatpush.bf16.msra.mxu0 %v3445_v60  ;;  %1380 = vmatpush.bf16.msra.mxu1 %v3448_v61 }
 0x25d   :  { %1338 = vmatpush.bf16.msrb.mxu2 %v3375_v50  ;;  %1351 = vmatpush.bf16.msrb.mxu3 %v3378_v52 }
 0x25f   :  { %1368 = vmatpush.bf16.msra.mxu0 %v3451_v11  ;;  %1381 = vmatpush.bf16.msra.mxu1 %v4735_v10 }
 0x260   :  { %1288 = vmatmul.bf16.vlgmr.msra.gmra.mxu2 %v1220_v2  ;;  %1301 = vmatmul.bf16.vlgmr.msra.gmra.mxu3 %v1221_v41 }
 0x261   :  { %1339 = vmatpush.bf16.msrb.mxu2 %v4698_v62  ;;  %1352 = vmatpush.bf16.msrb.mxu3 %v4699_v26 }
 0x262   :  { %1369 = vmatmul.bf16.vlgmr.msra.gmra.mxu0 %v1220_v2  ;;  %1382 = vmatmul.bf16.vlgmr.msra.gmra.mxu1 %v1221_v41 }
 0x263   :  { %1444 = vmatpush.bf16.msrb.mxu0 %v4736_v19  ;;  %1457 = vmatpush.bf16.msrb.mxu1 %v4737_v13 }
 0x265   :  { %1340 = vmatpush.bf16.msrb.mxu2 %v4702_v23  ;;  %1353 = vmatpush.bf16.msrb.mxu3 %v4703_v22 }
 0x267   :  { %1445 = vmatpush.bf16.msrb.mxu0 %v4738_v1  ;;  %1458 = vmatpush.bf16.msrb.mxu1 %v4739_v4 }
 0x269   :  { %1341 = vmatpush.bf16.msrb.mxu2 %v4706_v15  ;;  %1354 = vmatpush.bf16.msrb.mxu3 %v4707_v56 }
 0x26b   :  { %1446 = vmatpush.bf16.msrb.mxu0 %v4740_v9  ;;  %1459 = vmatpush.bf16.msrb.mxu1 %v4785_v49 }
 0x26d   :  { %1342 = vmatpush.bf16.msrb.mxu2 %v4786_v0  ;;  %1355 = vmatpush.bf16.msrb.mxu3 %v4787_v20 }
 0x26f   :  { %1447 = vmatpush.bf16.msrb.mxu0 %v4790_v35  ;;  %1460 = vmatpush.bf16.msrb.mxu1 %v4791_v37 }
 0x270   :  { %1343 = vmatmul.bf16.vlgmr.msrb.gmra.mxu2 %v1220_v2  ;;  %1356 = vmatmul.bf16.vlgmr.msrb.gmra.mxu3 %v1221_v41  ;;  %v4809_v2 = vld [vmem:[#allocation61_spill] sm:$0xff]  ;;  %v4810_v41 = vld [vmem:[#allocation74_spill] sm:$0xff] }
 0x271   :  { %1418 = vmatpush.bf16.msra.mxu2 %v4788_v48  ;;  %1431 = vmatpush.bf16.msra.mxu3 %v4789_v59 }
 0x273   :  { %1448 = vmatpush.bf16.msrb.mxu0 %v4794_v47  ;;  %1461 = vmatpush.bf16.msrb.mxu1 %v4795_v3  ;;  %v4846_v3 = vld [vmem:[#allocation17_spill] sm:$0xff] }
 0x275   :  { %1419 = vmatpush.bf16.msra.mxu2 %v4792_v24  ;;  %1432 = vmatpush.bf16.msra.mxu3 %v4793_v54 }
 0x277   :  { %1449 = vmatpush.bf16.msrb.mxu0 %v4798_v36  ;;  %1462 = vmatpush.bf16.msrb.mxu1 %v4799_v29 }
 0x279   :  { %1420 = vmatpush.bf16.msra.mxu2 %v4796_v43  ;;  %1433 = vmatpush.bf16.msra.mxu3 %v4797_v17 }
 0x27b   :  { %1450 = vmatpush.bf16.msrb.mxu0 %v4802_v40  ;;  %1463 = vmatpush.bf16.msrb.mxu1 %v4803_v7  ;;  %v4813_v40 = vld [vmem:[#allocation63_spill] sm:$0xff]  ;;  %v4814_v7 = vld [vmem:[#allocation78_spill] sm:$0xff] }
 0x27d   :  { %1421 = vmatpush.bf16.msra.mxu2 %v4800_v44  ;;  %1434 = vmatpush.bf16.msra.mxu3 %v4801_v57  ;;  %v4811_v44 = vld [vmem:[#allocation75_spill] sm:$0xff]  ;;  %v4812_v57 = vld [vmem:[#allocation62_spill] sm:$0xff] }
 0x27f   :  { %1451 = vmatpush.bf16.msrb.mxu0 %v4806_v32  ;;  %1464 = vmatpush.bf16.msrb.mxu1 %v4807_v45  ;;  %v4817_v32 = vld [vmem:[#allocation65_spill] sm:$0xff]  ;;  %v4818_v45 = vld [vmem:[#allocation82_spill] sm:$0xff] }
 0x281   :  { %1422 = vmatpush.bf16.msra.mxu2 %v4804_v33  ;;  %1435 = vmatpush.bf16.msra.mxu3 %v4805_v30  ;;  %v4815_v33 = vld [vmem:[#allocation79_spill] sm:$0xff]  ;;  %v4816_v30 = vld [vmem:[#allocation64_spill] sm:$0xff] }
 0x283   :  { %1496 = vmatpush.bf16.msra.mxu0 %v4808_v28  ;;  %1509 = vmatpush.bf16.msra.mxu1 %v4809_v2  ;;  %v4819_v28 = vld [vmem:[#allocation83_spill] sm:$0xff]  ;;  %v4820_v2 = vld [vmem:[#allocation84_spill] sm:$0xff] }
 0x285   :  { %1423 = vmatpush.bf16.msra.mxu2 %v4810_v41  ;;  %1436 = vmatpush.bf16.msra.mxu3 %v4811_v44  ;;  %v4821_v41 = vld [vmem:[#allocation85_spill] sm:$0xff]  ;;  %v4822_v44 = vld [vmem:[#allocation66_spill] sm:$0xff] }
 0x287   :  { %1497 = vmatpush.bf16.msra.mxu0 %v4812_v57  ;;  %1510 = vmatpush.bf16.msra.mxu1 %v4813_v40  ;;  %v4823_v57 = vld [vmem:[#allocation67_spill] sm:$0xff]  ;;  %v4824_v40 = vld [vmem:[#allocation86_spill] sm:$0xff] }
 0x289   :  { %1424 = vmatpush.bf16.msra.mxu2 %v4814_v7  ;;  %1437 = vmatpush.bf16.msra.mxu3 %v4815_v33  ;;  %v4825_v7 = vld [vmem:[#allocation87_spill] sm:$0xff]  ;;  %v4826_v33 = vld [vmem:[#allocation68_spill] sm:$0xff] }
 0x28b   :  { %1498 = vmatpush.bf16.msra.mxu0 %v4816_v30  ;;  %1511 = vmatpush.bf16.msra.mxu1 %v4817_v32  ;;  %v4827_v30 = vld [vmem:[#allocation69_spill] sm:$0xff]  ;;  %v4828_v32 = vld [vmem:[#allocation88_spill] sm:$0xff] }
 0x28d   :  { %1425 = vmatpush.bf16.msra.mxu2 %v4818_v45  ;;  %1438 = vmatpush.bf16.msra.mxu3 %v4819_v28  ;;  %v4829_v45 = vld [vmem:[#allocation89_spill] sm:$0xff]  ;;  %v4830_v28 = vld [vmem:[#allocation72_spill] sm:$0xff] }
 0x28f   :  { %1499 = vmatpush.bf16.msra.mxu0 %v4822_v44  ;;  %1512 = vmatpush.bf16.msra.mxu1 %v4823_v57  ;;  %v4833_v44 = vld [vmem:[#allocation91_spill] sm:$0xff]  ;;  %v4834_v57 = vld [vmem:[#allocation76_spill] sm:$0xff] }
 0x291   :  { %1470 = vmatpush.bf16.msrb.mxu2 %v4820_v2  ;;  %1483 = vmatpush.bf16.msrb.mxu3 %v4821_v41  ;;  %v4831_v2 = vld [vmem:[#allocation73_spill] sm:$0xff]  ;;  %v4832_v41 = vld [vmem:[#allocation90_spill] sm:$0xff] }
 0x293   :  { %1500 = vmatpush.bf16.msra.mxu0 %v4826_v33  ;;  %1513 = vmatpush.bf16.msra.mxu1 %v4827_v30  ;;  %v4837_v33 = vld [vmem:[#allocation93_spill] sm:$0xff]  ;;  %v4838_v30 = vld [vmem:[#allocation80_spill] sm:$0xff] }
 0x295   :  { %1471 = vmatpush.bf16.msrb.mxu2 %v4824_v40  ;;  %1484 = vmatpush.bf16.msrb.mxu3 %v4825_v7  ;;  %v4835_v40 = vld [vmem:[#allocation77_spill] sm:$0xff]  ;;  %v4836_v7 = vld [vmem:[#allocation92_spill] sm:$0xff] }
 0x297   :  { %1501 = vmatpush.bf16.msra.mxu0 %v4830_v28  ;;  %1514 = vmatpush.bf16.msra.mxu1 %v4831_v2  ;;  %v4841_v28 = vld [vmem:[#allocation95_spill] sm:$0xff]  ;;  %v4842_v2 = vld [vmem:[#allocation96_spill] sm:$0xff] }
 0x299   :  { %1472 = vmatpush.bf16.msrb.mxu2 %v4828_v32  ;;  %1485 = vmatpush.bf16.msrb.mxu3 %v4829_v45  ;;  %v4839_v32 = vld [vmem:[#allocation81_spill] sm:$0xff]  ;;  %v4840_v45 = vld [vmem:[#allocation94_spill] sm:$0xff] }
 0x29b   :  { %1502 = vmatpush.bf16.msra.mxu0 %v4834_v57  ;;  %1515 = vmatpush.bf16.msra.mxu1 %v4835_v40  ;;  %v4845_v57 = vld [vmem:[#allocation99_spill] sm:$0xff] }
 0x29d   :  { %1473 = vmatpush.bf16.msrb.mxu2 %v4832_v41  ;;  %1486 = vmatpush.bf16.msrb.mxu3 %v4833_v44  ;;  %v4843_v41 = vld [vmem:[#allocation97_spill] sm:$0xff]  ;;  %v4844_v44 = vld [vmem:[#allocation98_spill] sm:$0xff] }
 0x29f   :  { %1503 = vmatpush.bf16.msra.mxu0 %v4838_v30  ;;  %1516 = vmatpush.bf16.msra.mxu1 %v4839_v32 }
 0x2a1   :  { %1474 = vmatpush.bf16.msrb.mxu2 %v4836_v7  ;;  %1487 = vmatpush.bf16.msrb.mxu3 %v4837_v33 }
 0x2a5   :  { %1475 = vmatpush.bf16.msrb.mxu2 %v4840_v45  ;;  %1488 = vmatpush.bf16.msrb.mxu3 %v4841_v28 }
 0x2a9   :  { %1476 = vmatpush.bf16.msrb.mxu2 %v4842_v2  ;;  %1489 = vmatpush.bf16.msrb.mxu3 %v4843_v41 }
 0x2ad   :  { %1477 = vmatpush.bf16.msrb.mxu2 %v4844_v44  ;;  %1490 = vmatpush.bf16.msrb.mxu3 %v4845_v57 }
 0x2bd   :  { %v1263_v40 = vpop.f32.mrf.mxu0  ;;  %v1276_v7 = vpop.f32.mrf.mxu1 }
 0x2c5   :  { %v1265_v29 = vpop.f32.mrf.mxu0  ;;  %v1278_v33 = vpop.f32.mrf.mxu1 }
 0x2cf   :  { %v1315_v36 = vpop.f32.mrf.mxu0  ;;  %v1328_v30 = vpop.f32.mrf.mxu1 }
 0x2d3   :  { %v1237_v17 = vpop.f32.mrf.mxu2  ;;  %v1250_v32 = vpop.f32.mrf.mxu3 }
 0x2d4   :  { %v1238_v28 = vadd.f32 %v1237_v17, %v4846_v3 }
 0x2d6   :  { %v1251_v54 = vadd.f32 %v1250_v32, %v1238_v28 }
 0x2d7   :  { %v1317_v43 = vpop.f32.mrf.mxu0  ;;  %v1330_v45 = vpop.f32.mrf.mxu1 }
 0x2d8   :  { %v1264_v44 = vadd.f32 %v1263_v40, %v1251_v54 }
 0x2da   :  { %v1277_v33 = vadd.f32 %v1276_v7, %v1264_v44 }
 0x2db   :  { %v1239_v47 = vpop.f32.mrf.mxu2  ;;  %v1252_v2 = vpop.f32.mrf.mxu3 }
 0x2dc   :  { %3091 = vtanh.f32 %v1277_v33 }
 0x2df   :  { %v1370_v41 = vpop.f32.mrf.mxu0  ;;  %v1383_v24 = vpop.f32.mrf.mxu1 }
 0x2e0   :  { %v1384_v47 = vadd.f32 %v1383_v24, %v1370_v41 }
 0x2e2   :  { %v3092_v17 = vpop.eup %3091  ;;  %v1390_v28 = vrot.slane %v1384_v47, 2  ;;  %v4847_v47 = vld [vmem:[#allocation45_spill] sm:$0xff] }
 0x2e3   :  { %v1289_v37 = vpop.f32.mrf.mxu2  ;;  %v1302_v57 = vpop.f32.mrf.mxu3 }
 0x2e4   :  { %v1290_v35 = vadd.f32 %v1289_v37, %v3783_v5 }
 0x2e6   :  { %v1303_v29 = vadd.f32 %v1302_v57, %v1290_v35  ;;  %v1394_v35 = vadd.f32 %v1390_v28, %v3700_v16  ;;  %v4850_v28 = vld [vmem:[#allocation38_spill] sm:$0xff] }
 0x2e7   :  { %v1372_v20 = vpop.f32.mrf.mxu0  ;;  %v1385_v0 = vpop.f32.mrf.mxu1 }
 0x2e8   :  { %v1316_v59 = vadd.f32 %v1315_v36, %v1303_v29 }
 0x2ea   :  { %v1329_v48 = vadd.f32 %v1328_v30, %v1316_v59 }
 0x2eb   :  { %v1291_v43 = vpop.f32.mrf.mxu2  ;;  %v1304_v45 = vpop.f32.mrf.mxu3 }
 0x2ec   :  { %3093 = vtanh.f32 %v1329_v48 }
 0x2ed   :  { %3095 = vtanh.f32 %v1394_v35  ;;  %v4855_v35 = vld [vmem:[#allocation44_spill] sm:$0xff] }
 0x2f2   :  { %v3094_v32 = vpop.eup %3093 }
 0x2f3   :  { %v1334_v2 = vpack.c.bf16 %v3094_v32, %v3092_v17  ;;  %v1344_v54 = vpop.f32.mrf.mxu2  ;;  %v1357_v40 = vpop.f32.mrf.mxu3  ;;  %v4848_v17 = vld [vmem:[#allocation29_spill] sm:$0xff]  ;;  %v4849_v32 = vld [vmem:[#allocation30_spill] sm:$0xff] }
 0x2f4   :  { %v1358_v3 = vadd.f32 %v1357_v40, %v1344_v54  ;;  %v3096_v16 = vpop.eup %3095  ;;  %v4852_v54 = vld [vmem:[#allocation47_spill] sm:$0xff]  ;;  %v4853_v40 = vld [vmem:[#allocation49_spill] sm:$0xff] }
 0x2f5   :  { %v1404_v49 = vunpack.c.l.b16 %v1334_v2  ;;  %v1405_v37 = vunpack.c.h.b16 %v1334_v2  ;;  %v4851_v2 = vld [vmem:[#allocation40_spill] sm:$0xff] }
 0x2f6   :  { %v1389_v36 = vrot.slane %v1358_v3, 2 }
 0x2f7   :  { %v1406_v59 = vpack.c.b16 %v1404_v49, %v1404_v49  ;;  %v1407_v20 = vpack.c.b16 %v1405_v37, %v1405_v37  ;;  %v4854_v37 = vld [vmem:[#allocation42_spill] sm:$0xff] }
 0x2f8   :  { %v1393_v0 = vadd.f32 %v1389_v36, %v3694_v18  ;;  %v4856_v36 = vld [vmem:[#allocation51_spill] sm:$0xff] }
 0x2f9   :  { %v1408_v44 = vrot.slane %v1406_v59, 5  ;;  %v1409_v57 = vrot.slane %v1407_v20, 5  ;;  %v4857_v59 = vld [vmem:[#allocation53_spill] sm:$0xff]  ;;  %v4858_v20 = vld [vmem:[#allocation46_spill] sm:$0xff] }
 0x2fa   :  { %3097 = vtanh.f32 %v1393_v0  ;;  %v4859_v0 = vld [vmem:[#allocation48_spill] sm:$0xff] }
 0x2fb   :  { %v1412_v48 = vrot.slane %v1408_v44, 3  ;;  %v1413_v24 = vrot.slane %v1409_v57, 3  ;;  %v1346_v7 = vpop.f32.mrf.mxu2  ;;  %v1359_v30 = vpop.f32.mrf.mxu3  ;;  %v4860_v44 = vld [vmem:[#allocation54_spill] sm:$0xff]  ;;  %v4861_v57 = vld [vmem:[#allocation55_spill] sm:$0xff] }
 0x2fc   :  { %v4864_v7 = vld [vmem:[#allocation56_spill] sm:$0xff]  ;;  %v4865_v30 = vld [vmem:[#allocation57_spill] sm:$0xff] }
 0x2fd   :  { %1452 = vmatmul.bf16.vlgmr.msrb.gmra.mxu0 %v1412_v48  ;;  %1465 = vmatmul.bf16.vlgmr.msrb.gmra.mxu1 %v1413_v24 }
 0x2fe   :  { %1551 = vmatpush.bf16.msrb.mxu0 %v3380_v53  ;;  %1564 = vmatpush.bf16.msrb.mxu1 %v4724_v6 }
 0x300   :  { %v3098_v3 = vpop.eup %3097 }
 0x301   :  { %v1397_v18 = vpack.c.bf16 %v3096_v16, %v3098_v3  ;;  %v4866_v16 = vld [vmem:[#allocation70_spill] sm:$0xff]  ;;  %v4867_v3 = vld [vmem:[#allocation71_spill] sm:$0xff] }
 0x302   :  { %1552 = vmatpush.bf16.msrb.mxu0 %v4725_v31  ;;  %1565 = vmatpush.bf16.msrb.mxu1 %v4726_v46 }
 0x303   :  { %v1399_v49 = vunpack.c.l.b16 %v1397_v18  ;;  %v1400_v41 = vunpack.c.h.b16 %v1397_v18  ;;  %v4868_v18 = vld [vmem:[#allocation58_spill] sm:$0xff] }
 0x305   :  { %v1401_v29 = vpack.c.b16 %v1399_v49, %v1399_v49  ;;  %v1402_v33 = vpack.c.b16 %v1400_v41, %v1400_v41  ;;  %v4869_v49 = vld [vmem:[#allocation59_spill] sm:$0xff]  ;;  %v4870_v41 = vld [vmem:[#allocation60_spill] sm:$0xff] }
 0x306   :  { %1553 = vmatpush.bf16.msrb.mxu0 %v4727_v51  ;;  %1566 = vmatpush.bf16.msrb.mxu1 %v4728_v42 }
 0x307   :  { %v1410_v43 = vrot.slane %v1401_v29, 3  ;;  %v1411_v45 = vrot.slane %v1402_v33, 3  ;;  %v4871_v29 = vld [vmem:[#allocation61_spill] sm:$0xff]  ;;  %v4872_v33 = vld [vmem:[#allocation74_spill] sm:$0xff] }
 0x309   :  { %1426 = vmatmul.bf16.vlgmr.msra.gmra.mxu2 %v1410_v43  ;;  %1439 = vmatmul.bf16.vlgmr.msra.gmra.mxu3 %v1411_v45 }
 0x30a   :  { %1525 = vmatpush.bf16.msra.mxu2 %v3358_v8  ;;  %1538 = vmatpush.bf16.msra.mxu3 %v3360_v12 }
 0x30b   :  { %1554 = vmatpush.bf16.msrb.mxu0 %v4729_v63  ;;  %1567 = vmatpush.bf16.msrb.mxu1 %v4730_v58 }
 0x30d   :  { %1504 = vmatmul.bf16.vlgmr.msra.gmra.mxu0 %v1412_v48  ;;  %1517 = vmatmul.bf16.vlgmr.msra.gmra.mxu1 %v1413_v24  ;;  %v4862_v48 = vld [vmem:[#allocation50_spill] sm:$0xff]  ;;  %v4863_v24 = vld [vmem:[#allocation52_spill] sm:$0xff] }
 0x30e   :  { %1526 = vmatpush.bf16.msra.mxu2 %v3364_v21  ;;  %1539 = vmatpush.bf16.msra.mxu3 %v3366_v25 }
 0x30f   :  { %1555 = vmatpush.bf16.msrb.mxu0 %v4731_v55  ;;  %1568 = vmatpush.bf16.msrb.mxu1 %v4732_v39 }
 0x312   :  { %1527 = vmatpush.bf16.msra.mxu2 %v3369_v34  ;;  %1540 = vmatpush.bf16.msra.mxu3 %v3372_v38 }
 0x313   :  { %1556 = vmatpush.bf16.msrb.mxu0 %v4733_v27  ;;  %1569 = vmatpush.bf16.msrb.mxu1 %v4734_v14 }
 0x316   :  { %1528 = vmatpush.bf16.msra.mxu2 %v3375_v50  ;;  %1541 = vmatpush.bf16.msra.mxu3 %v3378_v52 }
 0x317   :  { %1557 = vmatpush.bf16.msrb.mxu0 %v3445_v60  ;;  %1570 = vmatpush.bf16.msrb.mxu1 %v3448_v61 }
 0x319   :  { %1478 = vmatmul.bf16.vlgmr.msrb.gmra.mxu2 %v1410_v43  ;;  %1491 = vmatmul.bf16.vlgmr.msrb.gmra.mxu3 %v1411_v45 }
 0x31a   :  { %1529 = vmatpush.bf16.msra.mxu2 %v4698_v62  ;;  %1542 = vmatpush.bf16.msra.mxu3 %v4699_v26 }
 0x31b   :  { %1558 = vmatpush.bf16.msrb.mxu0 %v3451_v11  ;;  %1571 = vmatpush.bf16.msrb.mxu1 %v4735_v10 }
 0x31e   :  { %1559 = vmatmul.bf16.vlgmr.msrb.gmra.mxu0 %v1410_v43  ;;  %1572 = vmatmul.bf16.vlgmr.msrb.gmra.mxu1 %v1411_v45 }
 0x31f   :  { %1622 = vmatpush.bf16.msra.mxu0 %v4736_v19  ;;  %1635 = vmatpush.bf16.msra.mxu1 %v4737_v13 }
 0x320   :  { %1530 = vmatpush.bf16.msra.mxu2 %v4702_v23  ;;  %1543 = vmatpush.bf16.msra.mxu3 %v4703_v22 }
 0x323   :  { %1623 = vmatpush.bf16.msra.mxu0 %v4738_v1  ;;  %1636 = vmatpush.bf16.msra.mxu1 %v4739_v4 }
 0x324   :  { %1531 = vmatpush.bf16.msra.mxu2 %v4706_v15  ;;  %1544 = vmatpush.bf16.msra.mxu3 %v4707_v56 }
 0x327   :  { %1624 = vmatpush.bf16.msra.mxu0 %v4740_v9  ;;  %1637 = vmatpush.bf16.msra.mxu1 %v4847_v47 }
 0x328   :  { %1532 = vmatpush.bf16.msra.mxu2 %v4848_v17  ;;  %1545 = vmatpush.bf16.msra.mxu3 %v4849_v32 }
 0x32b   :  { %1625 = vmatpush.bf16.msra.mxu0 %v4852_v54  ;;  %1638 = vmatpush.bf16.msra.mxu1 %v4853_v40 }
 0x32c   :  { %1596 = vmatpush.bf16.msrb.mxu2 %v4850_v28  ;;  %1609 = vmatpush.bf16.msrb.mxu3 %v4851_v2 }
 0x32d   :  { %1533 = vmatmul.bf16.vlgmr.msra.gmra.mxu2 %v1410_v43  ;;  %1546 = vmatmul.bf16.vlgmr.msra.gmra.mxu3 %v1411_v45  ;;  %v4873_v43 = vld [vmem:[#allocation75_spill] sm:$0xff]  ;;  %v4874_v45 = vld [vmem:[#allocation62_spill] sm:$0xff] }
 0x32f   :  { %1626 = vmatpush.bf16.msra.mxu0 %v4856_v36  ;;  %1639 = vmatpush.bf16.msra.mxu1 %v4857_v59 }
 0x330   :  { %1597 = vmatpush.bf16.msrb.mxu2 %v4854_v37  ;;  %1610 = vmatpush.bf16.msrb.mxu3 %v4855_v35 }
 0x333   :  { %1627 = vmatpush.bf16.msra.mxu0 %v4860_v44  ;;  %1640 = vmatpush.bf16.msra.mxu1 %v4861_v57 }
 0x334   :  { %1598 = vmatpush.bf16.msrb.mxu2 %v4858_v20  ;;  %1611 = vmatpush.bf16.msrb.mxu3 %v4859_v0  ;;  %v4908_v0 = vld [vmem:[#allocation17_spill] sm:$0xff] }
 0x337   :  { %1628 = vmatpush.bf16.msra.mxu0 %v4864_v7  ;;  %1641 = vmatpush.bf16.msra.mxu1 %v4865_v30  ;;  %v4875_v7 = vld [vmem:[#allocation63_spill] sm:$0xff]  ;;  %v4876_v30 = vld [vmem:[#allocation78_spill] sm:$0xff] }
 0x338   :  { %1599 = vmatpush.bf16.msrb.mxu2 %v4862_v48  ;;  %1612 = vmatpush.bf16.msrb.mxu3 %v4863_v24 }
 0x33b   :  { %1629 = vmatpush.bf16.msra.mxu0 %v4868_v18  ;;  %1642 = vmatpush.bf16.msra.mxu1 %v4869_v49  ;;  %v4879_v18 = vld [vmem:[#allocation65_spill] sm:$0xff]  ;;  %v4880_v49 = vld [vmem:[#allocation82_spill] sm:$0xff] }
 0x33c   :  { %1600 = vmatpush.bf16.msrb.mxu2 %v4866_v16  ;;  %1613 = vmatpush.bf16.msrb.mxu3 %v4867_v3  ;;  %v4877_v16 = vld [vmem:[#allocation79_spill] sm:$0xff]  ;;  %v4878_v3 = vld [vmem:[#allocation64_spill] sm:$0xff] }
 0x33f   :  { %1674 = vmatpush.bf16.msrb.mxu0 %v4870_v41  ;;  %1687 = vmatpush.bf16.msrb.mxu1 %v4871_v29  ;;  %v4881_v41 = vld [vmem:[#allocation83_spill] sm:$0xff]  ;;  %v4882_v29 = vld [vmem:[#allocation84_spill] sm:$0xff] }
 0x340   :  { %1601 = vmatpush.bf16.msrb.mxu2 %v4872_v33  ;;  %1614 = vmatpush.bf16.msrb.mxu3 %v4873_v43  ;;  %v4883_v33 = vld [vmem:[#allocation85_spill] sm:$0xff]  ;;  %v4884_v43 = vld [vmem:[#allocation66_spill] sm:$0xff] }
 0x343   :  { %1675 = vmatpush.bf16.msrb.mxu0 %v4874_v45  ;;  %1688 = vmatpush.bf16.msrb.mxu1 %v4875_v7  ;;  %v4885_v45 = vld [vmem:[#allocation67_spill] sm:$0xff]  ;;  %v4886_v7 = vld [vmem:[#allocation86_spill] sm:$0xff] }
 0x344   :  { %1602 = vmatpush.bf16.msrb.mxu2 %v4876_v30  ;;  %1615 = vmatpush.bf16.msrb.mxu3 %v4877_v16  ;;  %v4887_v30 = vld [vmem:[#allocation87_spill] sm:$0xff]  ;;  %v4888_v16 = vld [vmem:[#allocation68_spill] sm:$0xff] }
 0x347   :  { %1676 = vmatpush.bf16.msrb.mxu0 %v4878_v3  ;;  %1689 = vmatpush.bf16.msrb.mxu1 %v4879_v18  ;;  %v4889_v3 = vld [vmem:[#allocation69_spill] sm:$0xff]  ;;  %v4890_v18 = vld [vmem:[#allocation88_spill] sm:$0xff] }
 0x348   :  { %1603 = vmatpush.bf16.msrb.mxu2 %v4880_v49  ;;  %1616 = vmatpush.bf16.msrb.mxu3 %v4881_v41  ;;  %v4891_v49 = vld [vmem:[#allocation89_spill] sm:$0xff]  ;;  %v4892_v41 = vld [vmem:[#allocation72_spill] sm:$0xff] }
 0x34b   :  { %1677 = vmatpush.bf16.msrb.mxu0 %v4884_v43  ;;  %1690 = vmatpush.bf16.msrb.mxu1 %v4885_v45  ;;  %v4895_v43 = vld [vmem:[#allocation91_spill] sm:$0xff]  ;;  %v4896_v45 = vld [vmem:[#allocation76_spill] sm:$0xff] }
 0x34c   :  { %1648 = vmatpush.bf16.msra.mxu2 %v4882_v29  ;;  %1661 = vmatpush.bf16.msra.mxu3 %v4883_v33  ;;  %v4893_v29 = vld [vmem:[#allocation73_spill] sm:$0xff]  ;;  %v4894_v33 = vld [vmem:[#allocation90_spill] sm:$0xff] }
 0x34f   :  { %1678 = vmatpush.bf16.msrb.mxu0 %v4888_v16  ;;  %1691 = vmatpush.bf16.msrb.mxu1 %v4889_v3  ;;  %v4899_v16 = vld [vmem:[#allocation93_spill] sm:$0xff]  ;;  %v4900_v3 = vld [vmem:[#allocation80_spill] sm:$0xff] }
 0x350   :  { %1649 = vmatpush.bf16.msra.mxu2 %v4886_v7  ;;  %1662 = vmatpush.bf16.msra.mxu3 %v4887_v30  ;;  %v4897_v7 = vld [vmem:[#allocation77_spill] sm:$0xff]  ;;  %v4898_v30 = vld [vmem:[#allocation92_spill] sm:$0xff] }
 0x353   :  { %1679 = vmatpush.bf16.msrb.mxu0 %v4892_v41  ;;  %1692 = vmatpush.bf16.msrb.mxu1 %v4893_v29  ;;  %v4903_v41 = vld [vmem:[#allocation95_spill] sm:$0xff]  ;;  %v4904_v29 = vld [vmem:[#allocation96_spill] sm:$0xff] }
 0x354   :  { %1650 = vmatpush.bf16.msra.mxu2 %v4890_v18  ;;  %1663 = vmatpush.bf16.msra.mxu3 %v4891_v49  ;;  %v4901_v18 = vld [vmem:[#allocation81_spill] sm:$0xff]  ;;  %v4902_v49 = vld [vmem:[#allocation94_spill] sm:$0xff] }
 0x357   :  { %1680 = vmatpush.bf16.msrb.mxu0 %v4896_v45  ;;  %1693 = vmatpush.bf16.msrb.mxu1 %v4897_v7  ;;  %v4907_v45 = vld [vmem:[#allocation99_spill] sm:$0xff] }
 0x358   :  { %1651 = vmatpush.bf16.msra.mxu2 %v4894_v33  ;;  %1664 = vmatpush.bf16.msra.mxu3 %v4895_v43  ;;  %v4905_v33 = vld [vmem:[#allocation97_spill] sm:$0xff]  ;;  %v4906_v43 = vld [vmem:[#allocation98_spill] sm:$0xff] }
 0x35b   :  { %1681 = vmatpush.bf16.msrb.mxu0 %v4900_v3  ;;  %1694 = vmatpush.bf16.msrb.mxu1 %v4901_v18 }
 0x35c   :  { %1652 = vmatpush.bf16.msra.mxu2 %v4898_v30  ;;  %1665 = vmatpush.bf16.msra.mxu3 %v4899_v16 }
 0x360   :  { %1653 = vmatpush.bf16.msra.mxu2 %v4902_v49  ;;  %1666 = vmatpush.bf16.msra.mxu3 %v4903_v41 }
 0x364   :  { %1654 = vmatpush.bf16.msra.mxu2 %v4904_v29  ;;  %1667 = vmatpush.bf16.msra.mxu3 %v4905_v33 }
 0x368   :  { %1655 = vmatpush.bf16.msra.mxu2 %v4906_v43  ;;  %1668 = vmatpush.bf16.msra.mxu3 %v4907_v45 }
 0x37a   :  { %v1453_v7 = vpop.f32.mrf.mxu0  ;;  %v1466_v30 = vpop.f32.mrf.mxu1 }
 0x382   :  { %v1455_v24 = vpop.f32.mrf.mxu0  ;;  %v1468_v16 = vpop.f32.mrf.mxu1 }
 0x38a   :  { %v1505_v48 = vpop.f32.mrf.mxu0  ;;  %v1518_v3 = vpop.f32.mrf.mxu1 }
 0x38c   :  { %v1427_v57 = vpop.f32.mrf.mxu2  ;;  %v1440_v18 = vpop.f32.mrf.mxu3 }
 0x38d   :  { %v1428_v41 = vadd.f32 %v1427_v57, %v4908_v0 }
 0x38f   :  { %v1441_v59 = vadd.f32 %v1440_v18, %v1428_v41  ;;  %v4909_v41 = vld [vmem:[#allocation100_spill] sm:$0xff] }
 0x391   :  { %v1454_v43 = vadd.f32 %v1453_v7, %v1441_v59  ;;  %v4911_v59 = vld [vmem:[#allocation102_spill] sm:$0xff] }
 0x392   :  { %v1507_v44 = vpop.f32.mrf.mxu0  ;;  %v1520_v49 = vpop.f32.mrf.mxu1 }
 0x393   :  { %v1467_v16 = vadd.f32 %v1466_v30, %v1454_v43 }
 0x394   :  { %v1429_v20 = vpop.f32.mrf.mxu2  ;;  %v1442_v29 = vpop.f32.mrf.mxu3 }
 0x395   :  { %3099 = vtanh.f32 %v1467_v16  ;;  %v4910_v29 = vperm.slane %v4909_v41, 1 }
 0x397   :  { %v4091_v7 = vadd.f32 %v4911_v59, %v4910_v29  ;;  %v4915_v29 = vld [vmem:[#allocation40_spill] sm:$0xff]  ;;  %v4916_v59 = vld [vmem:[#allocation47_spill] sm:$0xff] }
 0x39b   :  { %v1560_v33 = vpop.f32.mrf.mxu0  ;;  %v1573_v36 = vpop.f32.mrf.mxu1 }
 0x39c   :  { %v1479_v35 = vpop.f32.mrf.mxu2  ;;  %v1492_v45 = vpop.f32.mrf.mxu3  ;;  %v1574_v20 = vadd.f32 %v1573_v36, %v1560_v33 }
 0x39d   :  { %v1480_v37 = vadd.f32 %v1479_v35, %v3783_v5  ;;  %v3100_v57 = vpop.eup %3099 }
 0x39f   :  { %v1493_v24 = vadd.f32 %v1492_v45, %v1480_v37  ;;  %v1578_v37 = vadd.f32 %v1574_v20, %v4091_v7 }
 0x3a1   :  { %v1506_v40 = vadd.f32 %v1505_v48, %v1493_v24 }
 0x3a3   :  { %v1519_v54 = vadd.f32 %v1518_v3, %v1506_v40  ;;  %v1562_v2 = vpop.f32.mrf.mxu0  ;;  %v1575_v28 = vpop.f32.mrf.mxu1 }
 0x3a4   :  { %v1481_v44 = vpop.f32.mrf.mxu2  ;;  %v1494_v49 = vpop.f32.mrf.mxu3  ;;  %v4912_v2 = vperm.slane %v4909_v41, 0  ;;  %v4913_v28 = vld [vmem:[#allocation101_spill] sm:$0xff]  ;;  %v4914_v41 = vld [vmem:[#allocation38_spill] sm:$0xff] }
 0x3a5   :  { %3101 = vtanh.f32 %v1519_v54 }
 0x3a6   :  { %v4097_v40 = vadd.f32 %v4913_v28, %v4912_v2  ;;  %3103 = vtanh.f32 %v1578_v37  ;;  %v4917_v37 = vld [vmem:[#allocation49_spill] sm:$0xff]  ;;  %v4920_v2 = vld [vmem:[#allocation51_spill] sm:$0xff] }
 0x3a7   :  { %v4921_v28 = vld [vmem:[#allocation53_spill] sm:$0xff] }
 0x3ab   :  { %v3102_v18 = vpop.eup %3101 }
 0x3ac   :  { %v1524_v0 = vpack.c.bf16 %v3102_v18, %v3100_v57  ;;  %v3104_v16 = vpop.eup %3103 }
 0x3ae   :  { %v1590_v54 = vunpack.c.l.b16 %v1524_v0  ;;  %v1591_v36 = vunpack.c.h.b16 %v1524_v0 }
 0x3b0   :  { %v1534_v35 = vpop.f32.mrf.mxu2  ;;  %v1547_v48 = vpop.f32.mrf.mxu3  ;;  %v1592_v33 = vpack.c.b16 %v1590_v54, %v1590_v54  ;;  %v1593_v43 = vpack.c.b16 %v1591_v36, %v1591_v36  ;;  %v4923_v54 = vld [vmem:[#allocation48_spill] sm:$0xff]  ;;  %v4924_v36 = vld [vmem:[#allocation54_spill] sm:$0xff] }
 0x3b1   :  { %v1548_v30 = vadd.f32 %v1547_v48, %v1534_v35  ;;  %v4918_v35 = vld [vmem:[#allocation42_spill] sm:$0xff]  ;;  %v4919_v48 = vld [vmem:[#allocation44_spill] sm:$0xff] }
 0x3b2   :  { %1630 = vmatmul.bf16.vlgmr.msra.gmra.mxu0 %v1592_v33  ;;  %1643 = vmatmul.bf16.vlgmr.msra.gmra.mxu1 %v1593_v43 }
 0x3b3   :  { %v1577_v3 = vadd.f32 %v1548_v30, %v4097_v40  ;;  %1729 = vmatpush.bf16.msra.mxu0 %v3380_v53  ;;  %1742 = vmatpush.bf16.msra.mxu1 %v4724_v6  ;;  %v4922_v30 = vld [vmem:[#allocation46_spill] sm:$0xff] }
 0x3b5   :  { %3105 = vtanh.f32 %v1577_v3  ;;  %v4925_v3 = vld [vmem:[#allocation55_spill] sm:$0xff] }
 0x3b7   :  { %1730 = vmatpush.bf16.msra.mxu0 %v4725_v31  ;;  %1743 = vmatpush.bf16.msra.mxu1 %v4726_v46 }
 0x3b8   :  { %v1536_v45 = vpop.f32.mrf.mxu2  ;;  %v1549_v24 = vpop.f32.mrf.mxu3 }
 0x3b9   :  { %v4928_v45 = vld [vmem:[#allocation56_spill] sm:$0xff]  ;;  %v4929_v24 = vld [vmem:[#allocation57_spill] sm:$0xff] }
 0x3bb   :  { %v3106_v0 = vpop.eup %3105  ;;  %1731 = vmatpush.bf16.msra.mxu0 %v4727_v51  ;;  %1744 = vmatpush.bf16.msra.mxu1 %v4728_v42 }
 0x3bc   :  { %v1581_v44 = vpack.c.bf16 %v3104_v16, %v3106_v0  ;;  %v4930_v16 = vld [vmem:[#allocation70_spill] sm:$0xff]  ;;  %v4931_v0 = vld [vmem:[#allocation71_spill] sm:$0xff] }
 0x3be   :  { %v1583_v49 = vunpack.c.l.b16 %v1581_v44  ;;  %v1584_v20 = vunpack.c.h.b16 %v1581_v44  ;;  %v4932_v44 = vld [vmem:[#allocation58_spill] sm:$0xff] }
 0x3bf   :  { %1732 = vmatpush.bf16.msra.mxu0 %v4729_v63  ;;  %1745 = vmatpush.bf16.msra.mxu1 %v4730_v58 }
 0x3c0   :  { %v1585_v57 = vpack.c.b16 %v1583_v49, %v1583_v49  ;;  %v1586_v18 = vpack.c.b16 %v1584_v20, %v1584_v20  ;;  %v4933_v49 = vld [vmem:[#allocation59_spill] sm:$0xff]  ;;  %v4934_v20 = vld [vmem:[#allocation60_spill] sm:$0xff] }
 0x3c2   :  { %1604 = vmatmul.bf16.vlgmr.msrb.gmra.mxu2 %v1585_v57  ;;  %1617 = vmatmul.bf16.vlgmr.msrb.gmra.mxu3 %v1586_v18 }
 0x3c3   :  { %1703 = vmatpush.bf16.msrb.mxu2 %v3358_v8  ;;  %1716 = vmatpush.bf16.msrb.mxu3 %v3360_v12 }
 0x3c4   :  { %1682 = vmatmul.bf16.vlgmr.msrb.gmra.mxu0 %v1592_v33  ;;  %1695 = vmatmul.bf16.vlgmr.msrb.gmra.mxu1 %v1593_v43  ;;  %v4926_v33 = vld [vmem:[#allocation50_spill] sm:$0xff]  ;;  %v4927_v43 = vld [vmem:[#allocation52_spill] sm:$0xff] }
 0x3c5   :  { %1733 = vmatpush.bf16.msra.mxu0 %v4731_v55  ;;  %1746 = vmatpush.bf16.msra.mxu1 %v4732_v39 }
 0x3c7   :  { %1704 = vmatpush.bf16.msrb.mxu2 %v3364_v21  ;;  %1717 = vmatpush.bf16.msrb.mxu3 %v3366_v25 }
 0x3c9   :  { %1734 = vmatpush.bf16.msra.mxu0 %v4733_v27  ;;  %1747 = vmatpush.bf16.msra.mxu1 %v4734_v14 }
 0x3cb   :  { %1705 = vmatpush.bf16.msrb.mxu2 %v3369_v34  ;;  %1718 = vmatpush.bf16.msrb.mxu3 %v3372_v38 }
 0x3cd   :  { %1735 = vmatpush.bf16.msra.mxu0 %v3445_v60  ;;  %1748 = vmatpush.bf16.msra.mxu1 %v3448_v61 }
 0x3cf   :  { %1706 = vmatpush.bf16.msrb.mxu2 %v3375_v50  ;;  %1719 = vmatpush.bf16.msrb.mxu3 %v3378_v52 }
 0x3d1   :  { %1736 = vmatpush.bf16.msra.mxu0 %v3451_v11  ;;  %1749 = vmatpush.bf16.msra.mxu1 %v4735_v10 }
 0x3d2   :  { %1656 = vmatmul.bf16.vlgmr.msra.gmra.mxu2 %v1585_v57  ;;  %1669 = vmatmul.bf16.vlgmr.msra.gmra.mxu3 %v1586_v18 }
 0x3d3   :  { %1707 = vmatpush.bf16.msrb.mxu2 %v4698_v62  ;;  %1720 = vmatpush.bf16.msrb.mxu3 %v4699_v26 }
 0x3d4   :  { %1737 = vmatmul.bf16.vlgmr.msra.gmra.mxu0 %v1585_v57  ;;  %1750 = vmatmul.bf16.vlgmr.msra.gmra.mxu1 %v1586_v18 }
 0x3d5   :  { %1812 = vmatpush.bf16.msrb.mxu0 %v4736_v19  ;;  %1825 = vmatpush.bf16.msrb.mxu1 %v4737_v13 }
 0x3d7   :  { %1708 = vmatpush.bf16.msrb.mxu2 %v4702_v23  ;;  %1721 = vmatpush.bf16.msrb.mxu3 %v4703_v22 }
 0x3d9   :  { %1813 = vmatpush.bf16.msrb.mxu0 %v4738_v1  ;;  %1826 = vmatpush.bf16.msrb.mxu1 %v4739_v4 }
 0x3db   :  { %1709 = vmatpush.bf16.msrb.mxu2 %v4706_v15  ;;  %1722 = vmatpush.bf16.msrb.mxu3 %v4707_v56 }
 0x3dd   :  { %1814 = vmatpush.bf16.msrb.mxu0 %v4740_v9  ;;  %1827 = vmatpush.bf16.msrb.mxu1 %v4847_v47 }
 0x3df   :  { %1710 = vmatpush.bf16.msrb.mxu2 %v4848_v17  ;;  %1723 = vmatpush.bf16.msrb.mxu3 %v4849_v32 }
 0x3e1   :  { %1815 = vmatpush.bf16.msrb.mxu0 %v4916_v59  ;;  %1828 = vmatpush.bf16.msrb.mxu1 %v4917_v37 }
 0x3e2   :  { %1711 = vmatmul.bf16.vlgmr.msrb.gmra.mxu2 %v1585_v57  ;;  %1724 = vmatmul.bf16.vlgmr.msrb.gmra.mxu3 %v1586_v18  ;;  %v4935_v57 = vld [vmem:[#allocation61_spill] sm:$0xff]  ;;  %v4936_v18 = vld [vmem:[#allocation74_spill] sm:$0xff] }
 0x3e3   :  { %1786 = vmatpush.bf16.msra.mxu2 %v4914_v41  ;;  %1799 = vmatpush.bf16.msra.mxu3 %v4915_v29 }
 0x3e5   :  { %1816 = vmatpush.bf16.msrb.mxu0 %v4920_v2  ;;  %1829 = vmatpush.bf16.msrb.mxu1 %v4921_v28  ;;  %v4972_v28 = vld [vmem:[#allocation17_spill] sm:$0xff] }
 0x3e7   :  { %1787 = vmatpush.bf16.msra.mxu2 %v4918_v35  ;;  %1800 = vmatpush.bf16.msra.mxu3 %v4919_v48 }
 0x3e9   :  { %1817 = vmatpush.bf16.msrb.mxu0 %v4924_v36  ;;  %1830 = vmatpush.bf16.msrb.mxu1 %v4925_v3 }
 0x3eb   :  { %1788 = vmatpush.bf16.msra.mxu2 %v4922_v30  ;;  %1801 = vmatpush.bf16.msra.mxu3 %v4923_v54 }
 0x3ed   :  { %1818 = vmatpush.bf16.msrb.mxu0 %v4928_v45  ;;  %1831 = vmatpush.bf16.msrb.mxu1 %v4929_v24  ;;  %v4939_v45 = vld [vmem:[#allocation63_spill] sm:$0xff]  ;;  %v4940_v24 = vld [vmem:[#allocation78_spill] sm:$0xff] }
 0x3ef   :  { %1789 = vmatpush.bf16.msra.mxu2 %v4926_v33  ;;  %1802 = vmatpush.bf16.msra.mxu3 %v4927_v43  ;;  %v4937_v33 = vld [vmem:[#allocation75_spill] sm:$0xff]  ;;  %v4938_v43 = vld [vmem:[#allocation62_spill] sm:$0xff] }
 0x3f1   :  { %1819 = vmatpush.bf16.msrb.mxu0 %v4932_v44  ;;  %1832 = vmatpush.bf16.msrb.mxu1 %v4933_v49  ;;  %v4943_v44 = vld [vmem:[#allocation65_spill] sm:$0xff]  ;;  %v4944_v49 = vld [vmem:[#allocation82_spill] sm:$0xff] }
 0x3f3   :  { %1790 = vmatpush.bf16.msra.mxu2 %v4930_v16  ;;  %1803 = vmatpush.bf16.msra.mxu3 %v4931_v0  ;;  %v4941_v16 = vld [vmem:[#allocation79_spill] sm:$0xff]  ;;  %v4942_v0 = vld [vmem:[#allocation64_spill] sm:$0xff] }
 0x3f5   :  { %1864 = vmatpush.bf16.msra.mxu0 %v4934_v20  ;;  %1877 = vmatpush.bf16.msra.mxu1 %v4935_v57  ;;  %v4945_v20 = vld [vmem:[#allocation83_spill] sm:$0xff]  ;;  %v4946_v57 = vld [vmem:[#allocation84_spill] sm:$0xff] }
 0x3f7   :  { %1791 = vmatpush.bf16.msra.mxu2 %v4936_v18  ;;  %1804 = vmatpush.bf16.msra.mxu3 %v4937_v33  ;;  %v4947_v18 = vld [vmem:[#allocation85_spill] sm:$0xff]  ;;  %v4948_v33 = vld [vmem:[#allocation66_spill] sm:$0xff] }
 0x3f9   :  { %1865 = vmatpush.bf16.msra.mxu0 %v4938_v43  ;;  %1878 = vmatpush.bf16.msra.mxu1 %v4939_v45  ;;  %v4949_v43 = vld [vmem:[#allocation67_spill] sm:$0xff]  ;;  %v4950_v45 = vld [vmem:[#allocation86_spill] sm:$0xff] }
 0x3fb   :  { %1792 = vmatpush.bf16.msra.mxu2 %v4940_v24  ;;  %1805 = vmatpush.bf16.msra.mxu3 %v4941_v16  ;;  %v4951_v24 = vld [vmem:[#allocation87_spill] sm:$0xff]  ;;  %v4952_v16 = vld [vmem:[#allocation68_spill] sm:$0xff] }
 0x3fd   :  { %1866 = vmatpush.bf16.msra.mxu0 %v4942_v0  ;;  %1879 = vmatpush.bf16.msra.mxu1 %v4943_v44  ;;  %v4953_v0 = vld [vmem:[#allocation69_spill] sm:$0xff]  ;;  %v4954_v44 = vld [vmem:[#allocation88_spill] sm:$0xff] }
 0x3ff   :  { %1793 = vmatpush.bf16.msra.mxu2 %v4944_v49  ;;  %1806 = vmatpush.bf16.msra.mxu3 %v4945_v20  ;;  %v4955_v49 = vld [vmem:[#allocation89_spill] sm:$0xff]  ;;  %v4956_v20 = vld [vmem:[#allocation72_spill] sm:$0xff] }
 0x401   :  { %1867 = vmatpush.bf16.msra.mxu0 %v4948_v33  ;;  %1880 = vmatpush.bf16.msra.mxu1 %v4949_v43  ;;  %v4959_v33 = vld [vmem:[#allocation91_spill] sm:$0xff]  ;;  %v4960_v43 = vld [vmem:[#allocation76_spill] sm:$0xff] }
 0x403   :  { %1838 = vmatpush.bf16.msrb.mxu2 %v4946_v57  ;;  %1851 = vmatpush.bf16.msrb.mxu3 %v4947_v18  ;;  %v4957_v57 = vld [vmem:[#allocation73_spill] sm:$0xff]  ;;  %v4958_v18 = vld [vmem:[#allocation90_spill] sm:$0xff] }
 0x405   :  { %1868 = vmatpush.bf16.msra.mxu0 %v4952_v16  ;;  %1881 = vmatpush.bf16.msra.mxu1 %v4953_v0  ;;  %v4963_v16 = vld [vmem:[#allocation93_spill] sm:$0xff]  ;;  %v4964_v0 = vld [vmem:[#allocation80_spill] sm:$0xff] }
 0x407   :  { %1839 = vmatpush.bf16.msrb.mxu2 %v4950_v45  ;;  %1852 = vmatpush.bf16.msrb.mxu3 %v4951_v24  ;;  %v4961_v45 = vld [vmem:[#allocation77_spill] sm:$0xff]  ;;  %v4962_v24 = vld [vmem:[#allocation92_spill] sm:$0xff] }
 0x409   :  { %1869 = vmatpush.bf16.msra.mxu0 %v4956_v20  ;;  %1882 = vmatpush.bf16.msra.mxu1 %v4957_v57  ;;  %v4967_v20 = vld [vmem:[#allocation95_spill] sm:$0xff]  ;;  %v4968_v57 = vld [vmem:[#allocation96_spill] sm:$0xff] }
 0x40b   :  { %1840 = vmatpush.bf16.msrb.mxu2 %v4954_v44  ;;  %1853 = vmatpush.bf16.msrb.mxu3 %v4955_v49  ;;  %v4965_v44 = vld [vmem:[#allocation81_spill] sm:$0xff]  ;;  %v4966_v49 = vld [vmem:[#allocation94_spill] sm:$0xff] }
 0x40d   :  { %1870 = vmatpush.bf16.msra.mxu0 %v4960_v43  ;;  %1883 = vmatpush.bf16.msra.mxu1 %v4961_v45  ;;  %v4971_v43 = vld [vmem:[#allocation99_spill] sm:$0xff] }
 0x40f   :  { %1841 = vmatpush.bf16.msrb.mxu2 %v4958_v18  ;;  %1854 = vmatpush.bf16.msrb.mxu3 %v4959_v33  ;;  %v4969_v18 = vld [vmem:[#allocation97_spill] sm:$0xff]  ;;  %v4970_v33 = vld [vmem:[#allocation98_spill] sm:$0xff] }
 0x411   :  { %1871 = vmatpush.bf16.msra.mxu0 %v4964_v0  ;;  %1884 = vmatpush.bf16.msra.mxu1 %v4965_v44 }
 0x413   :  { %1842 = vmatpush.bf16.msrb.mxu2 %v4962_v24  ;;  %1855 = vmatpush.bf16.msrb.mxu3 %v4963_v16 }
 0x417   :  { %1843 = vmatpush.bf16.msrb.mxu2 %v4966_v49  ;;  %1856 = vmatpush.bf16.msrb.mxu3 %v4967_v20 }
 0x41b   :  { %1844 = vmatpush.bf16.msrb.mxu2 %v4968_v57  ;;  %1857 = vmatpush.bf16.msrb.mxu3 %v4969_v18 }
 0x41f   :  { %1845 = vmatpush.bf16.msrb.mxu2 %v4970_v33  ;;  %1858 = vmatpush.bf16.msrb.mxu3 %v4971_v43 }
 0x42f   :  { %v1631_v45 = vpop.f32.mrf.mxu0  ;;  %v1644_v24 = vpop.f32.mrf.mxu1 }
 0x437   :  { %v1633_v3 = vpop.f32.mrf.mxu0  ;;  %v1646_v16 = vpop.f32.mrf.mxu1 }
 0x441   :  { %v1683_v36 = vpop.f32.mrf.mxu0  ;;  %v1696_v0 = vpop.f32.mrf.mxu1 }
 0x445   :  { %v1605_v54 = vpop.f32.mrf.mxu2  ;;  %v1618_v44 = vpop.f32.mrf.mxu3 }
 0x446   :  { %v1606_v20 = vadd.f32 %v1605_v54, %v4972_v28 }
 0x448   :  { %v1619_v48 = vadd.f32 %v1618_v44, %v1606_v20 }
 0x449   :  { %v1685_v30 = vpop.f32.mrf.mxu0  ;;  %v1698_v49 = vpop.f32.mrf.mxu1 }
 0x44a   :  { %v1632_v33 = vadd.f32 %v1631_v45, %v1619_v48 }
 0x44c   :  { %v1645_v16 = vadd.f32 %v1644_v24, %v1632_v33 }
 0x44d   :  { %v1607_v2 = vpop.f32.mrf.mxu2  ;;  %v1620_v57 = vpop.f32.mrf.mxu3 }
 0x44e   :  { %3107 = vtanh.f32 %v1645_v16 }
 0x451   :  { %v1738_v18 = vpop.f32.mrf.mxu0  ;;  %v1751_v35 = vpop.f32.mrf.mxu1 }
 0x452   :  { %v1752_v2 = vadd.f32 %v1751_v35, %v1738_v18 }
 0x454   :  { %v3108_v54 = vpop.eup %3107  ;;  %v1758_v20 = vrot.slane %v1752_v2, 6 }
 0x455   :  { %v1657_v37 = vpop.f32.mrf.mxu2  ;;  %v1670_v43 = vpop.f32.mrf.mxu3 }
 0x456   :  { %v1658_v59 = vadd.f32 %v1657_v37, %v3783_v5 }
 0x458   :  { %v1671_v3 = vadd.f32 %v1670_v43, %v1658_v59  ;;  %v1762_v59 = vadd.f32 %v1758_v20, %v4091_v7  ;;  %v4974_v20 = vld [vmem:[#allocation29_spill] sm:$0xff] }
 0x459   :  { %v1740_v32 = vpop.f32.mrf.mxu0  ;;  %v1753_v17 = vpop.f32.mrf.mxu1 }
 0x45a   :  { %v1684_v29 = vadd.f32 %v1683_v36, %v1671_v3 }
 0x45c   :  { %v1697_v41 = vadd.f32 %v1696_v0, %v1684_v29 }
 0x45d   :  { %v1659_v30 = vpop.f32.mrf.mxu2  ;;  %v1672_v49 = vpop.f32.mrf.mxu3 }
 0x45e   :  { %3109 = vtanh.f32 %v1697_v41 }
 0x45f   :  { %3111 = vtanh.f32 %v1762_v59  ;;  %v4979_v59 = vld [vmem:[#allocation49_spill] sm:$0xff] }
 0x464   :  { %v3110_v44 = vpop.eup %3109 }
 0x465   :  { %v1702_v57 = vpack.c.bf16 %v3110_v44, %v3108_v54  ;;  %v1712_v48 = vpop.f32.mrf.mxu2  ;;  %v1725_v45 = vpop.f32.mrf.mxu3  ;;  %v4973_v44 = vld [vmem:[#allocation45_spill] sm:$0xff] }
 0x466   :  { %v1726_v28 = vadd.f32 %v1725_v45, %v1712_v48  ;;  %v3112_v18 = vpop.eup %3111  ;;  %v4976_v48 = vld [vmem:[#allocation38_spill] sm:$0xff]  ;;  %v4977_v45 = vld [vmem:[#allocation40_spill] sm:$0xff] }
 0x467   :  { %v1772_v47 = vunpack.c.l.b16 %v1702_v57  ;;  %v1773_v37 = vunpack.c.h.b16 %v1702_v57  ;;  %v4975_v57 = vld [vmem:[#allocation30_spill] sm:$0xff] }
 0x468   :  { %v1757_v36 = vrot.slane %v1726_v28, 6 }
 0x469   :  { %v1774_v29 = vpack.c.b16 %v1772_v47, %v1772_v47  ;;  %v1775_v32 = vpack.c.b16 %v1773_v37, %v1773_v37  ;;  %v4978_v37 = vld [vmem:[#allocation47_spill] sm:$0xff] }
 0x46a   :  { %v1761_v17 = vadd.f32 %v1757_v36, %v4097_v40  ;;  %v4980_v36 = vld [vmem:[#allocation42_spill] sm:$0xff] }
 0x46b   :  { %v1776_v33 = vrot.slane %v1774_v29, 7  ;;  %v1777_v43 = vrot.slane %v1775_v32, 7  ;;  %v4981_v29 = vld [vmem:[#allocation44_spill] sm:$0xff]  ;;  %v4982_v32 = vld [vmem:[#allocation51_spill] sm:$0xff] }
 0x46c   :  { %3113 = vtanh.f32 %v1761_v17  ;;  %v4983_v17 = vld [vmem:[#allocation53_spill] sm:$0xff] }
 0x46d   :  { %v1780_v41 = vrot.slane %v1776_v33, 1  ;;  %v1781_v35 = vrot.slane %v1777_v43, 1  ;;  %v1714_v24 = vpop.f32.mrf.mxu2  ;;  %v1727_v0 = vpop.f32.mrf.mxu3  ;;  %v4984_v33 = vld [vmem:[#allocation46_spill] sm:$0xff]  ;;  %v4985_v43 = vld [vmem:[#allocation48_spill] sm:$0xff] }
 0x46e   :  { %v4988_v24 = vld [vmem:[#allocation50_spill] sm:$0xff]  ;;  %v4989_v0 = vld [vmem:[#allocation52_spill] sm:$0xff] }
 0x46f   :  { %1820 = vmatmul.bf16.vlgmr.msrb.gmra.mxu0 %v1780_v41  ;;  %1833 = vmatmul.bf16.vlgmr.msrb.gmra.mxu1 %v1781_v35 }
 0x470   :  { %1919 = vmatpush.bf16.msrb.mxu0 %v3380_v53  ;;  %1932 = vmatpush.bf16.msrb.mxu1 %v4724_v6 }
 0x472   :  { %v3114_v28 = vpop.eup %3113 }
 0x473   :  { %v1765_v47 = vpack.c.bf16 %v3112_v18, %v3114_v28  ;;  %v4990_v18 = vld [vmem:[#allocation56_spill] sm:$0xff]  ;;  %v4991_v28 = vld [vmem:[#allocation57_spill] sm:$0xff] }
 0x474   :  { %1920 = vmatpush.bf16.msrb.mxu0 %v4725_v31  ;;  %1933 = vmatpush.bf16.msrb.mxu1 %v4726_v46 }
 0x475   :  { %v1767_v3 = vunpack.c.l.b16 %v1765_v47  ;;  %v1768_v16 = vunpack.c.h.b16 %v1765_v47  ;;  %v4992_v47 = vld [vmem:[#allocation70_spill] sm:$0xff] }
 0x477   :  { %v1769_v30 = vpack.c.b16 %v1767_v3, %v1767_v3  ;;  %v1770_v49 = vpack.c.b16 %v1768_v16, %v1768_v16  ;;  %v4993_v3 = vld [vmem:[#allocation71_spill] sm:$0xff]  ;;  %v4994_v16 = vld [vmem:[#allocation58_spill] sm:$0xff] }
 0x478   :  { %1921 = vmatpush.bf16.msrb.mxu0 %v4727_v51  ;;  %1934 = vmatpush.bf16.msrb.mxu1 %v4728_v42 }
 0x479   :  { %v1778_v2 = vrot.slane %v1769_v30, 1  ;;  %v1779_v54 = vrot.slane %v1770_v49, 1  ;;  %v4995_v30 = vld [vmem:[#allocation59_spill] sm:$0xff]  ;;  %v4996_v49 = vld [vmem:[#allocation60_spill] sm:$0xff] }
 0x47b   :  { %1794 = vmatmul.bf16.vlgmr.msra.gmra.mxu2 %v1778_v2  ;;  %1807 = vmatmul.bf16.vlgmr.msra.gmra.mxu3 %v1779_v54 }
 0x47c   :  { %1893 = vmatpush.bf16.msra.mxu2 %v3358_v8  ;;  %1906 = vmatpush.bf16.msra.mxu3 %v3360_v12 }
 0x47d   :  { %1922 = vmatpush.bf16.msrb.mxu0 %v4729_v63  ;;  %1935 = vmatpush.bf16.msrb.mxu1 %v4730_v58 }
 0x47f   :  { %1872 = vmatmul.bf16.vlgmr.msra.gmra.mxu0 %v1780_v41  ;;  %1885 = vmatmul.bf16.vlgmr.msra.gmra.mxu1 %v1781_v35  ;;  %v4986_v41 = vld [vmem:[#allocation54_spill] sm:$0xff]  ;;  %v4987_v35 = vld [vmem:[#allocation55_spill] sm:$0xff] }
 0x480   :  { %1894 = vmatpush.bf16.msra.mxu2 %v3364_v21  ;;  %1907 = vmatpush.bf16.msra.mxu3 %v3366_v25 }
 0x481   :  { %1923 = vmatpush.bf16.msrb.mxu0 %v4731_v55  ;;  %1936 = vmatpush.bf16.msrb.mxu1 %v4732_v39 }
 0x484   :  { %1895 = vmatpush.bf16.msra.mxu2 %v3369_v34  ;;  %1908 = vmatpush.bf16.msra.mxu3 %v3372_v38 }
 0x485   :  { %1924 = vmatpush.bf16.msrb.mxu0 %v4733_v27  ;;  %1937 = vmatpush.bf16.msrb.mxu1 %v4734_v14 }
 0x488   :  { %1896 = vmatpush.bf16.msra.mxu2 %v3375_v50  ;;  %1909 = vmatpush.bf16.msra.mxu3 %v3378_v52 }
 0x489   :  { %1925 = vmatpush.bf16.msrb.mxu0 %v3445_v60  ;;  %1938 = vmatpush.bf16.msrb.mxu1 %v3448_v61 }
 0x48b   :  { %1846 = vmatmul.bf16.vlgmr.msrb.gmra.mxu2 %v1778_v2  ;;  %1859 = vmatmul.bf16.vlgmr.msrb.gmra.mxu3 %v1779_v54 }
 0x48c   :  { %1897 = vmatpush.bf16.msra.mxu2 %v4698_v62  ;;  %1910 = vmatpush.bf16.msra.mxu3 %v4699_v26 }
 0x48d   :  { %1926 = vmatpush.bf16.msrb.mxu0 %v3451_v11  ;;  %1939 = vmatpush.bf16.msrb.mxu1 %v4735_v10 }
 0x490   :  { %1927 = vmatmul.bf16.vlgmr.msrb.gmra.mxu0 %v1778_v2  ;;  %1940 = vmatmul.bf16.vlgmr.msrb.gmra.mxu1 %v1779_v54 }
 0x491   :  { %2002 = vmatpush.bf16.msra.mxu0 %v4736_v19  ;;  %2015 = vmatpush.bf16.msra.mxu1 %v4737_v13 }
 0x492   :  { %1898 = vmatpush.bf16.msra.mxu2 %v4702_v23  ;;  %1911 = vmatpush.bf16.msra.mxu3 %v4703_v22 }
 0x495   :  { %2003 = vmatpush.bf16.msra.mxu0 %v4738_v1  ;;  %2016 = vmatpush.bf16.msra.mxu1 %v4739_v4 }
 0x496   :  { %1899 = vmatpush.bf16.msra.mxu2 %v4706_v15  ;;  %1912 = vmatpush.bf16.msra.mxu3 %v4707_v56 }
 0x499   :  { %2004 = vmatpush.bf16.msra.mxu0 %v4740_v9  ;;  %2017 = vmatpush.bf16.msra.mxu1 %v4973_v44 }
 0x49a   :  { %1900 = vmatpush.bf16.msra.mxu2 %v4974_v20  ;;  %1913 = vmatpush.bf16.msra.mxu3 %v4975_v57 }
 0x49d   :  { %2005 = vmatpush.bf16.msra.mxu0 %v4978_v37  ;;  %2018 = vmatpush.bf16.msra.mxu1 %v4979_v59 }
 0x49e   :  { %1976 = vmatpush.bf16.msrb.mxu2 %v4976_v48  ;;  %1989 = vmatpush.bf16.msrb.mxu3 %v4977_v45 }
 0x49f   :  { %1901 = vmatmul.bf16.vlgmr.msra.gmra.mxu2 %v1778_v2  ;;  %1914 = vmatmul.bf16.vlgmr.msra.gmra.mxu3 %v1779_v54  ;;  %v4997_v2 = vld [vmem:[#allocation61_spill] sm:$0xff]  ;;  %v4998_v54 = vld [vmem:[#allocation74_spill] sm:$0xff] }
 0x4a1   :  { %2006 = vmatpush.bf16.msra.mxu0 %v4982_v32  ;;  %2019 = vmatpush.bf16.msra.mxu1 %v4983_v17  ;;  %v5034_v17 = vld [vmem:[#allocation17_spill] sm:$0xff] }
 0x4a2   :  { %1977 = vmatpush.bf16.msrb.mxu2 %v4980_v36  ;;  %1990 = vmatpush.bf16.msrb.mxu3 %v4981_v29 }
 0x4a5   :  { %2007 = vmatpush.bf16.msra.mxu0 %v4986_v41  ;;  %2020 = vmatpush.bf16.msra.mxu1 %v4987_v35 }
 0x4a6   :  { %1978 = vmatpush.bf16.msrb.mxu2 %v4984_v33  ;;  %1991 = vmatpush.bf16.msrb.mxu3 %v4985_v43 }
 0x4a9   :  { %2008 = vmatpush.bf16.msra.mxu0 %v4990_v18  ;;  %2021 = vmatpush.bf16.msra.mxu1 %v4991_v28  ;;  %v5001_v18 = vld [vmem:[#allocation63_spill] sm:$0xff]  ;;  %v5002_v28 = vld [vmem:[#allocation78_spill] sm:$0xff] }
 0x4aa   :  { %1979 = vmatpush.bf16.msrb.mxu2 %v4988_v24  ;;  %1992 = vmatpush.bf16.msrb.mxu3 %v4989_v0  ;;  %v4999_v24 = vld [vmem:[#allocation75_spill] sm:$0xff]  ;;  %v5000_v0 = vld [vmem:[#allocation62_spill] sm:$0xff] }
 0x4ad   :  { %2009 = vmatpush.bf16.msra.mxu0 %v4994_v16  ;;  %2022 = vmatpush.bf16.msra.mxu1 %v4995_v30  ;;  %v5005_v16 = vld [vmem:[#allocation65_spill] sm:$0xff]  ;;  %v5006_v30 = vld [vmem:[#allocation82_spill] sm:$0xff] }
 0x4ae   :  { %1980 = vmatpush.bf16.msrb.mxu2 %v4992_v47  ;;  %1993 = vmatpush.bf16.msrb.mxu3 %v4993_v3  ;;  %v5003_v47 = vld [vmem:[#allocation79_spill] sm:$0xff]  ;;  %v5004_v3 = vld [vmem:[#allocation64_spill] sm:$0xff] }
 0x4b1   :  { %2054 = vmatpush.bf16.msrb.mxu0 %v4996_v49  ;;  %2067 = vmatpush.bf16.msrb.mxu1 %v4997_v2  ;;  %v5007_v49 = vld [vmem:[#allocation83_spill] sm:$0xff]  ;;  %v5008_v2 = vld [vmem:[#allocation84_spill] sm:$0xff] }
 0x4b2   :  { %1981 = vmatpush.bf16.msrb.mxu2 %v4998_v54  ;;  %1994 = vmatpush.bf16.msrb.mxu3 %v4999_v24  ;;  %v5009_v54 = vld [vmem:[#allocation85_spill] sm:$0xff]  ;;  %v5010_v24 = vld [vmem:[#allocation66_spill] sm:$0xff] }
 0x4b5   :  { %2055 = vmatpush.bf16.msrb.mxu0 %v5000_v0  ;;  %2068 = vmatpush.bf16.msrb.mxu1 %v5001_v18  ;;  %v5011_v0 = vld [vmem:[#allocation67_spill] sm:$0xff]  ;;  %v5012_v18 = vld [vmem:[#allocation86_spill] sm:$0xff] }
 0x4b6   :  { %1982 = vmatpush.bf16.msrb.mxu2 %v5002_v28  ;;  %1995 = vmatpush.bf16.msrb.mxu3 %v5003_v47  ;;  %v5013_v28 = vld [vmem:[#allocation87_spill] sm:$0xff]  ;;  %v5014_v47 = vld [vmem:[#allocation68_spill] sm:$0xff] }
 0x4b9   :  { %2056 = vmatpush.bf16.msrb.mxu0 %v5004_v3  ;;  %2069 = vmatpush.bf16.msrb.mxu1 %v5005_v16  ;;  %v5015_v3 = vld [vmem:[#allocation69_spill] sm:$0xff]  ;;  %v5016_v16 = vld [vmem:[#allocation88_spill] sm:$0xff] }
 0x4ba   :  { %1983 = vmatpush.bf16.msrb.mxu2 %v5006_v30  ;;  %1996 = vmatpush.bf16.msrb.mxu3 %v5007_v49  ;;  %v5017_v30 = vld [vmem:[#allocation89_spill] sm:$0xff]  ;;  %v5018_v49 = vld [vmem:[#allocation72_spill] sm:$0xff] }
 0x4bd   :  { %2057 = vmatpush.bf16.msrb.mxu0 %v5010_v24  ;;  %2070 = vmatpush.bf16.msrb.mxu1 %v5011_v0  ;;  %v5021_v24 = vld [vmem:[#allocation91_spill] sm:$0xff]  ;;  %v5022_v0 = vld [vmem:[#allocation76_spill] sm:$0xff] }
 0x4be   :  { %2028 = vmatpush.bf16.msra.mxu2 %v5008_v2  ;;  %2041 = vmatpush.bf16.msra.mxu3 %v5009_v54  ;;  %v5019_v2 = vld [vmem:[#allocation73_spill] sm:$0xff]  ;;  %v5020_v54 = vld [vmem:[#allocation90_spill] sm:$0xff] }
 0x4c1   :  { %2058 = vmatpush.bf16.msrb.mxu0 %v5014_v47  ;;  %2071 = vmatpush.bf16.msrb.mxu1 %v5015_v3  ;;  %v5025_v47 = vld [vmem:[#allocation93_spill] sm:$0xff]  ;;  %v5026_v3 = vld [vmem:[#allocation80_spill] sm:$0xff] }
 0x4c2   :  { %2029 = vmatpush.bf16.msra.mxu2 %v5012_v18  ;;  %2042 = vmatpush.bf16.msra.mxu3 %v5013_v28  ;;  %v5023_v18 = vld [vmem:[#allocation77_spill] sm:$0xff]  ;;  %v5024_v28 = vld [vmem:[#allocation92_spill] sm:$0xff] }
 0x4c5   :  { %2059 = vmatpush.bf16.msrb.mxu0 %v5018_v49  ;;  %2072 = vmatpush.bf16.msrb.mxu1 %v5019_v2  ;;  %v5029_v49 = vld [vmem:[#allocation95_spill] sm:$0xff]  ;;  %v5030_v2 = vld [vmem:[#allocation96_spill] sm:$0xff] }
 0x4c6   :  { %2030 = vmatpush.bf16.msra.mxu2 %v5016_v16  ;;  %2043 = vmatpush.bf16.msra.mxu3 %v5017_v30  ;;  %v5027_v16 = vld [vmem:[#allocation81_spill] sm:$0xff]  ;;  %v5028_v30 = vld [vmem:[#allocation94_spill] sm:$0xff] }
 0x4c9   :  { %2060 = vmatpush.bf16.msrb.mxu0 %v5022_v0  ;;  %2073 = vmatpush.bf16.msrb.mxu1 %v5023_v18  ;;  %v5033_v0 = vld [vmem:[#allocation99_spill] sm:$0xff] }
 0x4ca   :  { %2031 = vmatpush.bf16.msra.mxu2 %v5020_v54  ;;  %2044 = vmatpush.bf16.msra.mxu3 %v5021_v24  ;;  %v5031_v54 = vld [vmem:[#allocation97_spill] sm:$0xff]  ;;  %v5032_v24 = vld [vmem:[#allocation98_spill] sm:$0xff] }
 0x4cd   :  { %2061 = vmatpush.bf16.msrb.mxu0 %v5026_v3  ;;  %2074 = vmatpush.bf16.msrb.mxu1 %v5027_v16 }
 0x4ce   :  { %2032 = vmatpush.bf16.msra.mxu2 %v5024_v28  ;;  %2045 = vmatpush.bf16.msra.mxu3 %v5025_v47 }
 0x4d2   :  { %2033 = vmatpush.bf16.msra.mxu2 %v5028_v30  ;;  %2046 = vmatpush.bf16.msra.mxu3 %v5029_v49 }
 0x4d6   :  { %2034 = vmatpush.bf16.msra.mxu2 %v5030_v2  ;;  %2047 = vmatpush.bf16.msra.mxu3 %v5031_v54 }
 0x4da   :  { %2035 = vmatpush.bf16.msra.mxu2 %v5032_v24  ;;  %2048 = vmatpush.bf16.msra.mxu3 %v5033_v0 }
 0x4ec   :  { %v1821_v18 = vpop.f32.mrf.mxu0  ;;  %v1834_v28 = vpop.f32.mrf.mxu1 }
 0x4f4   :  { %v1823_v35 = vpop.f32.mrf.mxu0  ;;  %v1836_v47 = vpop.f32.mrf.mxu1 }
 0x4fc   :  { %v1873_v41 = vpop.f32.mrf.mxu0  ;;  %v1886_v3 = vpop.f32.mrf.mxu1 }
 0x4fe   :  { %v1795_v43 = vpop.f32.mrf.mxu2  ;;  %v1808_v16 = vpop.f32.mrf.mxu3 }
 0x4ff   :  { %v1796_v49 = vadd.f32 %v1795_v43, %v5034_v17 }
 0x501   :  { %v1809_v29 = vadd.f32 %v1808_v16, %v1796_v49 }
 0x503   :  { %v1822_v24 = vadd.f32 %v1821_v18, %v1809_v29 }
 0x504   :  { %v1875_v33 = vpop.f32.mrf.mxu0  ;;  %v1888_v30 = vpop.f32.mrf.mxu1 }
 0x505   :  { %v1835_v47 = vadd.f32 %v1834_v28, %v1822_v24 }
 0x506   :  { %v1797_v32 = vpop.f32.mrf.mxu2  ;;  %v1810_v2 = vpop.f32.mrf.mxu3 }
 0x507   :  { %3115 = vtanh.f32 %v1835_v47 }
 0x50d   :  { %v1928_v54 = vpop.f32.mrf.mxu0  ;;  %v1941_v36 = vpop.f32.mrf.mxu1 }
 0x50e   :  { %v1847_v59 = vpop.f32.mrf.mxu2  ;;  %v1860_v0 = vpop.f32.mrf.mxu3  ;;  %v1942_v32 = vadd.f32 %v1941_v36, %v1928_v54 }
 0x50f   :  { %v1848_v37 = vadd.f32 %v1847_v59, %v3783_v5  ;;  %v3116_v43 = vpop.eup %3115 }
 0x510   :  { %v1948_v49 = vrot.slane %v1942_v32, 4 }
 0x511   :  { %v1861_v35 = vadd.f32 %v1860_v0, %v1848_v37 }
 0x512   :  { %v1952_v37 = vadd.f32 %v1948_v49, %v4091_v7  ;;  %v5071_v49 = vld [vmem:[#allocation85_spill] sm:$0xff] }
 0x513   :  { %v1874_v45 = vadd.f32 %v1873_v41, %v1861_v35 }
 0x515   :  { %v1887_v48 = vadd.f32 %v1886_v3, %v1874_v45  ;;  %v1930_v57 = vpop.f32.mrf.mxu0  ;;  %v1943_v20 = vpop.f32.mrf.mxu1 }
 0x516   :  { %v1849_v33 = vpop.f32.mrf.mxu2  ;;  %v1862_v30 = vpop.f32.mrf.mxu3 }
 0x517   :  { %3117 = vtanh.f32 %v1887_v48 }
 0x518   :  { %3119 = vtanh.f32 %v1952_v37  ;;  %v5076_v37 = vld [vmem:[#allocation68_spill] sm:$0xff] }
 0x51d   :  { %v3118_v16 = vpop.eup %3117 }
 0x51e   :  { %v1892_v2 = vpack.c.bf16 %v3118_v16, %v3116_v43  ;;  %v3120_v54 = vpop.eup %3119  ;;  %v5070_v16 = vld [vmem:[#allocation84_spill] sm:$0xff] }
 0x520   :  { %v1962_v44 = vunpack.c.l.b16 %v1892_v2  ;;  %v1963_v59 = vunpack.c.h.b16 %v1892_v2  ;;  %v5072_v2 = vld [vmem:[#allocation66_spill] sm:$0xff] }
 0x522   :  { %v1902_v29 = vpop.f32.mrf.mxu2  ;;  %v1915_v18 = vpop.f32.mrf.mxu3  ;;  %v1964_v45 = vpack.c.b16 %v1962_v44, %v1962_v44  ;;  %v1965_v57 = vpack.c.b16 %v1963_v59, %v1963_v59  ;;  %v5075_v59 = vld [vmem:[#allocation87_spill] sm:$0xff] }
 0x523   :  { %v1916_v17 = vadd.f32 %v1915_v18, %v1902_v29  ;;  %v5073_v29 = vld [vmem:[#allocation67_spill] sm:$0xff]  ;;  %v5074_v18 = vld [vmem:[#allocation86_spill] sm:$0xff] }
 0x524   :  { %v1966_v24 = vrot.slane %v1964_v45, 6  ;;  %v1967_v0 = vrot.slane %v1965_v57, 6  ;;  %v5078_v45 = vld [vmem:[#allocation88_spill] sm:$0xff]  ;;  %v5079_v57 = vld [vmem:[#allocation89_spill] sm:$0xff] }
 0x525   :  { %v1947_v41 = vrot.slane %v1916_v17, 4 }
 0x526   :  { %v1970_v48 = vrot.slane %v1966_v24, 2  ;;  %v1971_v36 = vrot.slane %v1967_v0, 2  ;;  %v5081_v24 = vld [vmem:[#allocation73_spill] sm:$0xff]  ;;  %v5082_v0 = vld [vmem:[#allocation90_spill] sm:$0xff] }
 0x527   :  { %v1951_v20 = vadd.f32 %v1947_v41, %v4097_v40  ;;  %v5077_v41 = vld [vmem:[#allocation69_spill] sm:$0xff] }
 0x528   :  { %2010 = vmatmul.bf16.vlgmr.msra.gmra.mxu0 %v1970_v48  ;;  %2023 = vmatmul.bf16.vlgmr.msra.gmra.mxu1 %v1971_v36 }
 0x529   :  { %3121 = vtanh.f32 %v1951_v20  ;;  %2109 = vmatpush.bf16.msra.mxu0 %v3380_v53  ;;  %2122 = vmatpush.bf16.msra.mxu1 %v4724_v6  ;;  %v5043_v53 = vld [vmem:[#allocation44_spill] sm:$0xff]  ;;  %v5053_v6 = vld [vmem:[#allocation57_spill] sm:$0xff] }
 0x52a   :  { %v1904_v28 = vpop.f32.mrf.mxu2  ;;  %v1917_v3 = vpop.f32.mrf.mxu3  ;;  %v5080_v20 = vld [vmem:[#allocation72_spill] sm:$0xff] }
 0x52b   :  { %v5085_v28 = vld [vmem:[#allocation77_spill] sm:$0xff]  ;;  %v5086_v3 = vld [vmem:[#allocation92_spill] sm:$0xff] }
 0x52d   :  { %2110 = vmatpush.bf16.msra.mxu0 %v4725_v31  ;;  %2123 = vmatpush.bf16.msra.mxu1 %v4726_v46  ;;  %v5054_v31 = vld [vmem:[#allocation70_spill] sm:$0xff]  ;;  %v5055_v46 = vld [vmem:[#allocation71_spill] sm:$0xff] }
 0x52f   :  { %v3122_v17 = vpop.eup %3121 }
 0x530   :  { %v1955_v44 = vpack.c.bf16 %v3120_v54, %v3122_v17  ;;  %v5087_v54 = vld [vmem:[#allocation93_spill] sm:$0xff]  ;;  %v5088_v17 = vld [vmem:[#allocation80_spill] sm:$0xff] }
 0x531   :  { %2111 = vmatpush.bf16.msra.mxu0 %v4727_v51  ;;  %2124 = vmatpush.bf16.msra.mxu1 %v4728_v42  ;;  %v5056_v51 = vld [vmem:[#allocation58_spill] sm:$0xff]  ;;  %v5057_v42 = vld [vmem:[#allocation59_spill] sm:$0xff] }
 0x532   :  { %v1957_v35 = vunpack.c.l.b16 %v1955_v44  ;;  %v1958_v47 = vunpack.c.h.b16 %v1955_v44  ;;  %v5089_v44 = vld [vmem:[#allocation81_spill] sm:$0xff] }
 0x534   :  { %v1959_v33 = vpack.c.b16 %v1957_v35, %v1957_v35  ;;  %v1960_v30 = vpack.c.b16 %v1958_v47, %v1958_v47  ;;  %v5090_v35 = vld [vmem:[#allocation94_spill] sm:$0xff]  ;;  %v5091_v47 = vld [vmem:[#allocation95_spill] sm:$0xff] }
 0x535   :  { %2112 = vmatpush.bf16.msra.mxu0 %v4729_v63  ;;  %2125 = vmatpush.bf16.msra.mxu1 %v4730_v58  ;;  %v5058_v63 = vld [vmem:[#allocation60_spill] sm:$0xff]  ;;  %v5059_v58 = vld [vmem:[#allocation61_spill] sm:$0xff] }
 0x536   :  { %v1968_v32 = vrot.slane %v1959_v33, 2  ;;  %v1969_v43 = vrot.slane %v1960_v30, 2  ;;  %v5092_v33 = vld [vmem:[#allocation96_spill] sm:$0xff]  ;;  %v5093_v30 = vld [vmem:[#allocation97_spill] sm:$0xff] }
 0x538   :  { %1984 = vmatmul.bf16.vlgmr.msrb.gmra.mxu2 %v1968_v32  ;;  %1997 = vmatmul.bf16.vlgmr.msrb.gmra.mxu3 %v1969_v43 }
 0x539   :  { %2083 = vmatpush.bf16.msrb.mxu2 %v3358_v8  ;;  %2096 = vmatpush.bf16.msrb.mxu3 %v3360_v12  ;;  %v5035_v8 = vld [vmem:[#allocation45_spill] sm:$0xff] }
 0x53a   :  { %2062 = vmatmul.bf16.vlgmr.msrb.gmra.mxu0 %v1970_v48  ;;  %2075 = vmatmul.bf16.vlgmr.msrb.gmra.mxu1 %v1971_v36  ;;  %v5036_v12 = vld [vmem:[#allocation29_spill] sm:$0xff]  ;;  %v5083_v48 = vld [vmem:[#allocation91_spill] sm:$0xff]  ;;  %v5084_v36 = vld [vmem:[#allocation76_spill] sm:$0xff] }
 0x53b   :  { %2113 = vmatpush.bf16.msra.mxu0 %v4731_v55  ;;  %2126 = vmatpush.bf16.msra.mxu1 %v4732_v39  ;;  %v5060_v55 = vld [vmem:[#allocation74_spill] sm:$0xff]  ;;  %v5061_v39 = vld [vmem:[#allocation75_spill] sm:$0xff] }
 0x53d   :  { %2084 = vmatpush.bf16.msrb.mxu2 %v3364_v21  ;;  %2097 = vmatpush.bf16.msrb.mxu3 %v3366_v25  ;;  %v5037_v21 = vld [vmem:[#allocation30_spill] sm:$0xff] }
 0x53e   :  { %v5038_v25 = vld [vmem:[#allocation38_spill] sm:$0xff] }
 0x53f   :  { %2114 = vmatpush.bf16.msra.mxu0 %v4733_v27  ;;  %2127 = vmatpush.bf16.msra.mxu1 %v4734_v14  ;;  %v5062_v27 = vld [vmem:[#allocation62_spill] sm:$0xff]  ;;  %v5063_v14 = vld [vmem:[#allocation63_spill] sm:$0xff] }
 0x541   :  { %2085 = vmatpush.bf16.msrb.mxu2 %v3369_v34  ;;  %2098 = vmatpush.bf16.msrb.mxu3 %v3372_v38  ;;  %v5039_v34 = vld [vmem:[#allocation40_spill] sm:$0xff]  ;;  %v5040_v38 = vld [vmem:[#allocation47_spill] sm:$0xff] }
 0x543   :  { %2115 = vmatpush.bf16.msra.mxu0 %v3445_v60  ;;  %2128 = vmatpush.bf16.msra.mxu1 %v3448_v61  ;;  %v5044_v60 = vld [vmem:[#allocation51_spill] sm:$0xff]  ;;  %v5045_v61 = vld [vmem:[#allocation53_spill] sm:$0xff] }
 0x545   :  { %2086 = vmatpush.bf16.msrb.mxu2 %v3375_v50  ;;  %2099 = vmatpush.bf16.msrb.mxu3 %v3378_v52  ;;  %v5041_v50 = vld [vmem:[#allocation49_spill] sm:$0xff]  ;;  %v5042_v52 = vld [vmem:[#allocation42_spill] sm:$0xff] }
 0x547   :  { %2116 = vmatpush.bf16.msra.mxu0 %v3451_v11  ;;  %2129 = vmatpush.bf16.msra.mxu1 %v4735_v10  ;;  %v5046_v11 = vld [vmem:[#allocation46_spill] sm:$0xff] }
 0x548   :  { %2036 = vmatmul.bf16.vlgmr.msra.gmra.mxu2 %v1968_v32  ;;  %2049 = vmatmul.bf16.vlgmr.msra.gmra.mxu3 %v1969_v43  ;;  %v5064_v10 = vld [vmem:[#allocation78_spill] sm:$0xff] }
 0x549   :  { %2087 = vmatpush.bf16.msrb.mxu2 %v4698_v62  ;;  %2100 = vmatpush.bf16.msrb.mxu3 %v4699_v26  ;;  %v5051_v62 = vld [vmem:[#allocation52_spill] sm:$0xff] }
 0x54a   :  { %2117 = vmatmul.bf16.vlgmr.msra.gmra.mxu0 %v1968_v32  ;;  %2130 = vmatmul.bf16.vlgmr.msra.gmra.mxu1 %v1969_v43  ;;  %v5052_v26 = vld [vmem:[#allocation56_spill] sm:$0xff] }
 0x54b   :  { %2192 = vmatpush.bf16.msrb.mxu0 %v4736_v19  ;;  %2205 = vmatpush.bf16.msrb.mxu1 %v4737_v13  ;;  %v5065_v19 = vld [vmem:[#allocation79_spill] sm:$0xff]  ;;  %v5066_v13 = vld [vmem:[#allocation64_spill] sm:$0xff] }
 0x54d   :  { %2088 = vmatpush.bf16.msrb.mxu2 %v4702_v23  ;;  %2101 = vmatpush.bf16.msrb.mxu3 %v4703_v22  ;;  %v5048_v22 = vld [vmem:[#allocation54_spill] sm:$0xff]  ;;  %v5049_v23 = vld [vmem:[#allocation55_spill] sm:$0xff] }
 0x54f   :  { %2193 = vmatpush.bf16.msrb.mxu0 %v4738_v1  ;;  %2206 = vmatpush.bf16.msrb.mxu1 %v4739_v4  ;;  %v5067_v1 = vld [vmem:[#allocation65_spill] sm:$0xff]  ;;  %v5068_v4 = vld [vmem:[#allocation82_spill] sm:$0xff] }
 0x551   :  { %2089 = vmatpush.bf16.msrb.mxu2 %v4706_v15  ;;  %2102 = vmatpush.bf16.msrb.mxu3 %v4707_v56  ;;  %v5047_v56 = vld [vmem:[#allocation48_spill] sm:$0xff]  ;;  %v5050_v15 = vld [vmem:[#allocation50_spill] sm:$0xff] }
 0x553   :  { %2194 = vmatpush.bf16.msrb.mxu0 %v4740_v9  ;;  %2207 = vmatpush.bf16.msrb.mxu1 %v5035_v8  ;;  %v5069_v9 = vld [vmem:[#allocation83_spill] sm:$0xff] }
 0x555   :  { %2090 = vmatpush.bf16.msrb.mxu2 %v5036_v12  ;;  %2103 = vmatpush.bf16.msrb.mxu3 %v5037_v21 }
 0x557   :  { %2195 = vmatpush.bf16.msrb.mxu0 %v5040_v38  ;;  %2208 = vmatpush.bf16.msrb.mxu1 %v5041_v50 }
 0x558   :  { %2091 = vmatmul.bf16.vlgmr.msrb.gmra.mxu2 %v1968_v32  ;;  %2104 = vmatmul.bf16.vlgmr.msrb.gmra.mxu3 %v1969_v43  ;;  %v5094_v32 = vld [vmem:[#allocation98_spill] sm:$0xff]  ;;  %v5095_v43 = vld [vmem:[#allocation99_spill] sm:$0xff] }
 0x559   :  { %2166 = vmatpush.bf16.msra.mxu2 %v5038_v25  ;;  %2179 = vmatpush.bf16.msra.mxu3 %v5039_v34 }
 0x55b   :  { %2196 = vmatpush.bf16.msrb.mxu0 %v5044_v60  ;;  %2209 = vmatpush.bf16.msrb.mxu1 %v5045_v61  ;;  %v5096_v61 = vld [vmem:[#allocation17_spill] sm:$0xff] }
 0x55d   :  { %2167 = vmatpush.bf16.msra.mxu2 %v5042_v52  ;;  %2180 = vmatpush.bf16.msra.mxu3 %v5043_v53 }
 0x55f   :  { %2197 = vmatpush.bf16.msrb.mxu0 %v5048_v22  ;;  %2210 = vmatpush.bf16.msrb.mxu1 %v5049_v23 }
 0x561   :  { %2168 = vmatpush.bf16.msra.mxu2 %v5046_v11  ;;  %2181 = vmatpush.bf16.msra.mxu3 %v5047_v56 }
 0x563   :  { %2198 = vmatpush.bf16.msrb.mxu0 %v5052_v26  ;;  %2211 = vmatpush.bf16.msrb.mxu1 %v5053_v6 }
 0x565   :  { %2169 = vmatpush.bf16.msra.mxu2 %v5050_v15  ;;  %2182 = vmatpush.bf16.msra.mxu3 %v5051_v62 }
 0x567   :  { %2199 = vmatpush.bf16.msrb.mxu0 %v5056_v51  ;;  %2212 = vmatpush.bf16.msrb.mxu1 %v5057_v42 }
 0x569   :  { %2170 = vmatpush.bf16.msra.mxu2 %v5054_v31  ;;  %2183 = vmatpush.bf16.msra.mxu3 %v5055_v46 }
 0x56b   :  { %2244 = vmatpush.bf16.msra.mxu0 %v5058_v63  ;;  %2257 = vmatpush.bf16.msra.mxu1 %v5059_v58 }
 0x56d   :  { %2171 = vmatpush.bf16.msra.mxu2 %v5060_v55  ;;  %2184 = vmatpush.bf16.msra.mxu3 %v5061_v39 }
 0x56f   :  { %2245 = vmatpush.bf16.msra.mxu0 %v5062_v27  ;;  %2258 = vmatpush.bf16.msra.mxu1 %v5063_v14 }
 0x571   :  { %2172 = vmatpush.bf16.msra.mxu2 %v5064_v10  ;;  %2185 = vmatpush.bf16.msra.mxu3 %v5065_v19 }
 0x573   :  { %2246 = vmatpush.bf16.msra.mxu0 %v5066_v13  ;;  %2259 = vmatpush.bf16.msra.mxu1 %v5067_v1 }
 0x575   :  { %2173 = vmatpush.bf16.msra.mxu2 %v5068_v4  ;;  %2186 = vmatpush.bf16.msra.mxu3 %v5069_v9 }
 0x577   :  { %2247 = vmatpush.bf16.msra.mxu0 %v5072_v2  ;;  %2260 = vmatpush.bf16.msra.mxu1 %v5073_v29 }
 0x579   :  { %2218 = vmatpush.bf16.msrb.mxu2 %v5070_v16  ;;  %2231 = vmatpush.bf16.msrb.mxu3 %v5071_v49 }
 0x57b   :  { %2248 = vmatpush.bf16.msra.mxu0 %v5076_v37  ;;  %2261 = vmatpush.bf16.msra.mxu1 %v5077_v41 }
 0x57d   :  { %2219 = vmatpush.bf16.msrb.mxu2 %v5074_v18  ;;  %2232 = vmatpush.bf16.msrb.mxu3 %v5075_v59 }
 0x57f   :  { %2249 = vmatpush.bf16.msra.mxu0 %v5080_v20  ;;  %2262 = vmatpush.bf16.msra.mxu1 %v5081_v24 }
 0x581   :  { %2220 = vmatpush.bf16.msrb.mxu2 %v5078_v45  ;;  %2233 = vmatpush.bf16.msrb.mxu3 %v5079_v57 }
 0x583   :  { %2250 = vmatpush.bf16.msra.mxu0 %v5084_v36  ;;  %2263 = vmatpush.bf16.msra.mxu1 %v5085_v28 }
 0x585   :  { %2221 = vmatpush.bf16.msrb.mxu2 %v5082_v0  ;;  %2234 = vmatpush.bf16.msrb.mxu3 %v5083_v48 }
 0x587   :  { %2251 = vmatpush.bf16.msra.mxu0 %v5088_v17  ;;  %2264 = vmatpush.bf16.msra.mxu1 %v5089_v44 }
 0x589   :  { %2222 = vmatpush.bf16.msrb.mxu2 %v5086_v3  ;;  %2235 = vmatpush.bf16.msrb.mxu3 %v5087_v54 }
 0x58d   :  { %2223 = vmatpush.bf16.msrb.mxu2 %v5090_v35  ;;  %2236 = vmatpush.bf16.msrb.mxu3 %v5091_v47 }
 0x591   :  { %2224 = vmatpush.bf16.msrb.mxu2 %v5092_v33  ;;  %2237 = vmatpush.bf16.msrb.mxu3 %v5093_v30  ;;  %v3049_v30 = vld [vmem:[#allocation10 + $0x30] sm:$0xff] }
 0x595   :  { %2225 = vmatpush.bf16.msrb.mxu2 %v5094_v32  ;;  %2238 = vmatpush.bf16.msrb.mxu3 %v5095_v43  ;;  %v3048_v32 = vld [vmem:[#allocation10 + $0x28] sm:$0xff]  ;;  %v3047_v43 = vld [vmem:[#allocation10 + $0x20] sm:$0xff] }
 0x5a5   :  { %v2011_v8 = vpop.f32.mrf.mxu0  ;;  %v2024_v12 = vpop.f32.mrf.mxu1 }
 0x5ad   :  { %v2013_v21 = vpop.f32.mrf.mxu0  ;;  %v2026_v25 = vpop.f32.mrf.mxu1 }
 0x5ae   :  { %v3045_v21 = vld [vmem:[#allocation10 + $0x10] sm:$0xff] }
 0x5af   :  { %v3057_v25 = vld [vmem:[#allocation10 + $0x70] sm:$0xff] }
 0x5b7   :  { %v2063_v34 = vpop.f32.mrf.mxu0  ;;  %v2076_v38 = vpop.f32.mrf.mxu1 }
 0x5bb   :  { %v1985_v50 = vpop.f32.mrf.mxu2  ;;  %v1998_v52 = vpop.f32.mrf.mxu3 }
 0x5bc   :  { %v1986_v11 = vadd.f32 %v1985_v50, %v5096_v61 }
 0x5be   :  { %v1999_v23 = vadd.f32 %v1998_v52, %v1986_v11  ;;  %v3054_v11 = vld [vmem:[#allocation10 + $0x58] sm:$0xff] }
 0x5bf   :  { %v2065_v53 = vpop.f32.mrf.mxu0  ;;  %v2078_v60 = vpop.f32.mrf.mxu1 }
 0x5c0   :  { %v2012_v26 = vadd.f32 %v2011_v8, %v1999_v23  ;;  %v3046_v8 = vld [vmem:[#allocation10 + $0x18] sm:$0xff]  ;;  %v3043_v53 = vld [vmem:[#allocation10] sm:$0xff]  ;;  %v3053_v23 = vld [vmem:[#allocation10 + $0x50] sm:$0xff] }
 0x5c1   :  { %v3055_v60 = vld [vmem:[#allocation10 + $0x60] sm:$0xff] }
 0x5c2   :  { %v2025_v42 = vadd.f32 %v2024_v12, %v2012_v26  ;;  %v3058_v12 = vld [vmem:[#allocation10 + $0x78] sm:$0xff] }
 0x5c3   :  { %v1987_v56 = vpop.f32.mrf.mxu2  ;;  %v2000_v22 = vpop.f32.mrf.mxu3 }
 0x5c4   :  { %3123 = vtanh.f32 %v2025_v42 }
 0x5c7   :  { %v2118_v15 = vpop.f32.mrf.mxu0  ;;  %v2131_v62 = vpop.f32.mrf.mxu1 }
 0x5c8   :  { %v2132_v10 = vadd.f32 %v2131_v62, %v2118_v15  ;;  %v3052_v15 = vld [vmem:[#allocation10 + $0x48] sm:$0xff] }
 0x5ca   :  { %v3124_v19 = vpop.eup %3123  ;;  %v2138_v1 = vrot.slane %v2132_v10, 2 }
 0x5cb   :  { %v2037_v6 = vpop.f32.mrf.mxu2  ;;  %v2050_v31 = vpop.f32.mrf.mxu3 }
 0x5cc   :  { %v2038_v46 = vadd.f32 %v2037_v6, %v3783_v5  ;;  %v2142_v18 = vadd.f32 %v2138_v1, %v4091_v7  ;;  %v3051_v6 = vld [vmem:[#allocation10 + $0x40] sm:$0xff] }
 0x5ce   :  { %v2051_v51 = vadd.f32 %v2050_v31, %v2038_v46 }
 0x5cf   :  { %v2120_v55 = vpop.f32.mrf.mxu0  ;;  %v2133_v39 = vpop.f32.mrf.mxu1 }
 0x5d0   :  { %v2064_v63 = vadd.f32 %v2063_v34, %v2051_v51  ;;  %v3044_v34 = vld [vmem:[#allocation10 + $0x8] sm:$0xff] }
 0x5d2   :  { %v2077_v58 = vadd.f32 %v2076_v38, %v2064_v63  ;;  %v3056_v38 = vld [vmem:[#allocation10 + $0x68] sm:$0xff] }
 0x5d3   :  { %v2039_v27 = vpop.f32.mrf.mxu2  ;;  %v2052_v14 = vpop.f32.mrf.mxu3 }
 0x5d4   :  { %3125 = vtanh.f32 %v2077_v58 }
 0x5d5   :  { %3127 = vtanh.f32 %v2142_v18 }
 0x5da   :  { %v3126_v13 = vpop.eup %3125 }
 0x5db   :  { %v2082_v4 = vpack.c.bf16 %v3126_v13, %v3124_v19  ;;  %v2092_v9 = vpop.f32.mrf.mxu2  ;;  %v2105_v16 = vpop.f32.mrf.mxu3 }
 0x5dc   :  { %v2106_v49 = vadd.f32 %v2105_v16, %v2092_v9  ;;  %v3128_v28 = vpop.eup %3127 }
 0x5dd   :  { %v2152_v2 = vunpack.c.l.b16 %v2082_v4  ;;  %v2153_v29 = vunpack.c.h.b16 %v2082_v4 }
 0x5de   :  { %v2137_v59 = vrot.slane %v2106_v49, 2 }
 0x5df   :  { %v2154_v37 = vpack.c.b16 %v2152_v2, %v2152_v2  ;;  %v2155_v41 = vpack.c.b16 %v2153_v29, %v2153_v29 }
 0x5e0   :  { %v2141_v45 = vadd.f32 %v2137_v59, %v4097_v40  ;;  %v3050_v40 = vld [vmem:[#allocation10 + $0x38] sm:$0xff] }
 0x5e1   :  { %v2156_v57 = vrot.slane %v2154_v37, 5  ;;  %v2157_v20 = vrot.slane %v2155_v41, 5  ;;  %v3070_v41 = vld [vmem:[%s4415_s7] ss:$0 sm:$0xff] }
 0x5e2   :  { %3129 = vtanh.f32 %v2141_v45 }
 0x5e3   :  { %v2160_v24 = vrot.slane %v2156_v57, 3  ;;  %v2161_v0 = vrot.slane %v2157_v20, 3  ;;  %v2094_v48 = vpop.f32.mrf.mxu2  ;;  %v2107_v36 = vpop.f32.mrf.mxu3 }
 0x5e5   :  { %2200 = vmatmul.bf16.vlgmr.msrb.gmra.mxu0 %v2160_v24  ;;  %2213 = vmatmul.bf16.vlgmr.msrb.gmra.mxu1 %v2161_v0 }
 0x5e8   :  { %v3130_v3 = vpop.eup %3129 }
 0x5e9   :  { %v2145_v54 = vpack.c.bf16 %v3128_v28, %v3130_v3 }
 0x5eb   :  { %v2147_v17 = vunpack.c.l.b16 %v2145_v54  ;;  %v2148_v7 = vunpack.c.h.b16 %v2145_v54 }
 0x5ed   :  { %v2149_v44 = vpack.c.b16 %v2147_v17, %v2147_v17  ;;  %v2150_v35 = vpack.c.b16 %v2148_v7, %v2148_v7 }
 0x5ef   :  { %v2158_v47 = vrot.slane %v2149_v44, 3  ;;  %v2159_v33 = vrot.slane %v2150_v35, 3 }
 0x5f1   :  { %2174 = vmatmul.bf16.vlgmr.msra.gmra.mxu2 %v2158_v47  ;;  %2187 = vmatmul.bf16.vlgmr.msra.gmra.mxu3 %v2159_v33 }
 0x5f2   :  { %2406 = vmatpush.bf16.msra.mxu2 %v3050_v40  ;;  %2419 = vmatpush.bf16.msra.mxu3 %v3058_v12 }
 0x5f5   :  { %2252 = vmatmul.bf16.vlgmr.msra.gmra.mxu0 %v2160_v24  ;;  %2265 = vmatmul.bf16.vlgmr.msra.gmra.mxu1 %v2161_v0 }
 0x5f6   :  { %2407 = vmatpush.bf16.msra.mxu2 %v3049_v30  ;;  %2420 = vmatpush.bf16.msra.mxu3 %v3057_v25 }
 0x5fa   :  { %2408 = vmatpush.bf16.msra.mxu2 %v3048_v32  ;;  %2421 = vmatpush.bf16.msra.mxu3 %v3056_v38 }
 0x5fe   :  { %2409 = vmatpush.bf16.msra.mxu2 %v3047_v43  ;;  %2422 = vmatpush.bf16.msra.mxu3 %v3055_v60 }
 0x601   :  { %2226 = vmatmul.bf16.vlgmr.msrb.gmra.mxu2 %v2158_v47  ;;  %2239 = vmatmul.bf16.vlgmr.msrb.gmra.mxu3 %v2159_v33 }
 0x602   :  { %2410 = vmatpush.bf16.msra.mxu2 %v3046_v8  ;;  %2423 = vmatpush.bf16.msra.mxu3 %v3054_v11 }
 0x606   :  { %2411 = vmatpush.bf16.msra.mxu2 %v3045_v21  ;;  %2424 = vmatpush.bf16.msra.mxu3 %v3053_v23 }
 0x60a   :  { %2412 = vmatpush.bf16.msra.mxu2 %v3044_v34  ;;  %2425 = vmatpush.bf16.msra.mxu3 %v3052_v15 }
 0x60e   :  { %2413 = vmatpush.bf16.msra.mxu2 %v3043_v53  ;;  %2426 = vmatpush.bf16.msra.mxu3 %v3051_v6 }
 0x662   :  { %v2201_v50 = vpop.f32.mrf.mxu0  ;;  %v2214_v52 = vpop.f32.mrf.mxu1 }
 0x66a   :  { %v2203_v56 = vpop.f32.mrf.mxu0  ;;  %v2216_v22 = vpop.f32.mrf.mxu1 }
 0x672   :  { %v2253_v62 = vpop.f32.mrf.mxu0  ;;  %v2266_v26 = vpop.f32.mrf.mxu1 }
 0x674   :  { %v2175_v31 = vpop.f32.mrf.mxu2  ;;  %v2188_v46 = vpop.f32.mrf.mxu3 }
 0x675   :  { %v2176_v51 = vadd.f32 %v2175_v31, %v5096_v61 }
 0x677   :  { %v2189_v42 = vadd.f32 %v2188_v46, %v2176_v51 }
 0x679   :  { %v2202_v63 = vadd.f32 %v2201_v50, %v2189_v42 }
 0x67a   :  { %v2255_v58 = vpop.f32.mrf.mxu0  ;;  %v2268_v55 = vpop.f32.mrf.mxu1 }
 0x67b   :  { %v2215_v39 = vadd.f32 %v2214_v52, %v2202_v63 }
 0x67c   :  { %v2177_v27 = vpop.f32.mrf.mxu2  ;;  %v2190_v14 = vpop.f32.mrf.mxu3 }
 0x67d   :  { %3131 = vtanh.f32 %v2215_v39 }
 0x683   :  { %v3132_v10 = vpop.eup %3131 }
 0x684   :  { %v2272_v19 = vpack.c.bf16 %v3132_v10, %v3132_v10  ;;  %v2227_v13 = vpop.f32.mrf.mxu2  ;;  %v2240_v1 = vpop.f32.mrf.mxu3 }
 0x685   :  { %v2228_v4 = vadd.f32 %v2227_v13, %v3783_v5 }
 0x686   :  { %2414 = vmatmul.bf16.vlgmr.msra.gmra.mxu2 %v2272_v19 }
 0x687   :  { %v2241_v9 = vadd.f32 %v2240_v1, %v2228_v4 }
 0x689   :  { %v2254_v16 = vadd.f32 %v2253_v62, %v2241_v9 }
 0x68b   :  { %v2267_v49 = vadd.f32 %v2266_v26, %v2254_v16 }
 0x68c   :  { %v2229_v2 = vpop.f32.mrf.mxu2  ;;  %v2242_v61 = vpop.f32.mrf.mxu3 }
 0x68d   :  { %3133 = vtanh.f32 %v2267_v49 }
 0x693   :  { %v3134_v29 = vpop.eup %3133 }
 0x694   :  { %v2273_v18 = vpack.c.bf16 %v3134_v29, %v3134_v29 }
 0x696   :  { %2427 = vmatmul.bf16.vlgmr.msra.gmra.mxu3 %v2273_v18 }
 0x709   :  { %v2415_v59 = vpop.f32.mrf.mxu2 }
 0x70a   :  { %v2416_v5 = vadd.f32 %v3070_v41, %v2415_v59 }
 0x711   :  { %v2417_v37 = vpop.f32.mrf.mxu2 }
 0x719   :  { %v2428_v45 = vpop.f32.mrf.mxu3 }
 0x71a   :  { %v2429_v57 = vadd.f32 %v2428_v45, %v2416_v5 }
 0x71c   :  { %2432 = vst [vmem:[#allocation11] sm:$0x3] %v2429_v57 }
 0x71d   :  { %2443 = dma.vmem_to_hbm [thread:$0]  %s2439_s12, 32, %s2441_s15, [#allocation4]  }
 0x721   :  { %v2430_v20 = vpop.f32.mrf.mxu3 }
 0x722   :  { %3285 = dma.done.wait [#allocation4], 32  }
 0x723   :  { %3286 = vsyncadd [#allocation4], 4294967264 }
 0x724   :  { %2448 = vsyncpa [#allocation3], 1 }
 0x725   :  { %2449 = vsyncpa [#allocation6], 1 }
 0x726   :  { %2450 = vsyncpa [#allocation9], 1 }
 0x727   :  { %2451 = vsyncpa [#allocation4], 1 }

</bundles_post_ra>
